<compile_context>
chip_gen: v6e
topology: v6e:2x2x1
jax: 0.10.0
libtpu: 0.0.40
codegen_flags: <defaults>
</compile_context>

<pallas_src>
import functools

import jax
import jax.numpy as jnp
from jax.experimental import pallas as pl
from jax.experimental.pallas import tpu as pltpu


def _fused_feature_kernel(x_ref, w1_ref, b1_ref, w2_ref, b2_ref, o_ref,
                          pad1_ref, pad2_ref, *, H, W, Cin, C1, C2):
    # x_ref : (1, H, W, Cin)       one batch element, unpadded
    # w1_ref: (9*Cin, C1)          conv1 weights, im2col-flattened (HWIO order)
    # b1_ref: (1, C1)
    # w2_ref: (9*C1, C2)           conv2 weights, im2col-flattened
    # b2_ref: (1, C2)
    # o_ref : (1, 1, C2)           pooled features for this batch element
    # pad1_ref: VMEM (H+2, W+2, Cin)  zero-padded conv1 input
    # pad2_ref: VMEM (H+2, W+2, C1)   zero-padded conv1 activation

    inv_area = 1.0 / (H * W)

    # --- conv1: pad in VMEM, one im2col matmul, bias + ReLU ----------------
    pad1_ref[...] = jnp.zeros_like(pad1_ref)
    pad1_ref[1:H + 1, 1:W + 1, :] = x_ref[0]

    patches1 = jnp.concatenate(
        [pad1_ref[kh:kh + H, kw:kw + W, :].reshape(H * W, Cin)
         for kh in range(3) for kw in range(3)],
        axis=-1)                                        # (H*W, 9*Cin)
    h1 = jnp.dot(patches1, w1_ref[...],
                 preferred_element_type=jnp.float32)    # (H*W, C1)
    h1 = jnp.maximum(h1 + b1_ref[...], 0.0)

    # --- conv2: activation stays in VMEM, pad, one im2col matmul -----------
    pad2_ref[...] = jnp.zeros_like(pad2_ref)
    pad2_ref[1:H + 1, 1:W + 1, :] = h1.reshape(H, W, C1)

    patches2 = jnp.concatenate(
        [pad2_ref[kh:kh + H, kw:kw + W, :].reshape(H * W, C1)
         for kh in range(3) for kw in range(3)],
        axis=-1)                                        # (H*W, 9*C1)
    h2 = jnp.dot(patches2, w2_ref[...],
                 preferred_element_type=jnp.float32)    # (H*W, C2)
    h2 = jnp.maximum(h2 + b2_ref[...], 0.0)

    # --- fused global average pool (cross-sublane reduction on the XLU) ----
    o_ref[0] = jnp.sum(h2, axis=0, keepdims=True) * inv_area


def feature_extractor_forward(x_nchw, params):
    """Equivalent of FeatureExtractor(model)(x): all children but the last."""
    N, Cin, H, W = x_nchw.shape
    C1 = params["b1"].shape[0]
    C2 = params["b2"].shape[0]

    # Single tiny layout op at the NCHW->NHWC boundary (input is only ~4 KiB);
    # everything else (padding, both convs, ReLUs, pooling) is one fused
    # Pallas kernel with VMEM-resident intermediates.
    x_nhwc = jnp.transpose(x_nchw, (0, 2, 3, 1)).astype(jnp.float32)
    w1 = params["w1"].astype(jnp.float32).reshape(9 * Cin, C1)
    w2 = params["w2"].astype(jnp.float32).reshape(9 * C1, C2)
    b1 = params["b1"].astype(jnp.float32).reshape(1, C1)
    b2 = params["b2"].astype(jnp.float32).reshape(1, C2)

    flops = N * (2 * H * W * 9 * Cin * C1 + 2 * H * W * 9 * C1 * C2
                 + 2 * H * W * (C1 + C2))
    bytes_accessed = (N * H * W * Cin * 4 + 9 * Cin * C1 * 4 + C1 * 4
                      + 9 * C1 * C2 * 4 + C2 * 4 + N * C2 * 4)

    kernel = functools.partial(_fused_feature_kernel,
                               H=H, W=W, Cin=Cin, C1=C1, C2=C2)
    pooled = pl.pallas_call(
        kernel,
        out_shape=jax.ShapeDtypeStruct((N, 1, C2), jnp.float32),
        grid=(N,),
        in_specs=[
            pl.BlockSpec((1, H, W, Cin), lambda n: (n, 0, 0, 0)),
            pl.BlockSpec((9 * Cin, C1), lambda n: (0, 0)),
            pl.BlockSpec((1, C1), lambda n: (0, 0)),
            pl.BlockSpec((9 * C1, C2), lambda n: (0, 0)),
            pl.BlockSpec((1, C2), lambda n: (0, 0)),
        ],
        out_specs=pl.BlockSpec((1, 1, C2), lambda n: (n, 0, 0)),
        scratch_shapes=[
            pltpu.VMEM((H + 2, W + 2, Cin), jnp.float32),
            pltpu.VMEM((H + 2, W + 2, C1), jnp.float32),
        ],
        compiler_params=pltpu.CompilerParams(
            dimension_semantics=("parallel",)),
        cost_estimate=pl.CostEstimate(flops=flops, transcendentals=0,
                                      bytes_accessed=bytes_accessed),
    )(x_nhwc, w1, b1, w2, b2)

    # Match PyTorch AdaptiveAvgPool2d(1) output layout: (N, C, 1, 1).
    return pooled.reshape(N, C2, 1, 1)


def _reference_forward(x_nchw, params):
    """Pure-JAX reference (lax conv) for correctness checking."""
    x = jnp.transpose(x_nchw, (0, 2, 3, 1)).astype(jnp.float32)
    dn = jax.lax.conv_dimension_numbers(x.shape, params["w1"].shape,
                                        ("NHWC", "HWIO", "NHWC"))
    h = jax.lax.conv_general_dilated(x, params["w1"], (1, 1), "SAME",
                                     dimension_numbers=dn) + params["b1"]
    h = jnp.maximum(h, 0.0)
    dn2 = jax.lax.conv_dimension_numbers(h.shape, params["w2"].shape,
                                         ("NHWC", "HWIO", "NHWC"))
    h = jax.lax.conv_general_dilated(h, params["w2"], (1, 1), "SAME",
                                     dimension_numbers=dn2) + params["b2"]
    h = jnp.maximum(h, 0.0)
    pooled = jnp.mean(h, axis=(1, 2))               # (N, C)
    return pooled[:, :, None, None]                 # (N, C, 1, 1)


if __name__ == "__main__":
    key = jax.random.PRNGKey(0)
    kx, k1, k2, k3, k4 = jax.random.split(key, 5)

    N, Cin, H, W = 2, 4, 16, 16
    C1, C2 = 16, 32

    x = jax.random.normal(kx, (N, Cin, H, W), dtype=jnp.float32)
    params = {
        "w1": 0.1 * jax.random.normal(k1, (3, 3, Cin, C1), dtype=jnp.float32),
        "b1": 0.1 * jax.random.normal(k2, (C1,), dtype=jnp.float32),
        "w2": 0.1 * jax.random.normal(k3, (3, 3, C1, C2), dtype=jnp.float32),
        "b2": 0.1 * jax.random.normal(k4, (C2,), dtype=jnp.float32),
    }

    out = feature_extractor_forward(x, params)
    out = jax.block_until_ready(out)

    ref = jax.block_until_ready(_reference_forward(x, params))
    assert out.shape == (N, C2, 1, 1), out.shape
    assert jnp.allclose(out, ref, atol=1e-4, rtol=1e-4), (
        float(jnp.max(jnp.abs(out - ref))))

    print("KERNEL_OK")
</pallas_src>

<mosaic_0001>
module attributes {stable_mosaic.version = 11 : i64} {
  func.func @_fused_feature_kernel(%arg0: i32, %arg1: memref<1x16x16x4xf32, #tpu.memory_space<vmem>>, %arg2: memref<36x16xf32, #tpu.memory_space<vmem>>, %arg3: memref<1x16xf32, #tpu.memory_space<vmem>>, %arg4: memref<144x32xf32, #tpu.memory_space<vmem>>, %arg5: memref<1x32xf32, #tpu.memory_space<vmem>>, %arg6: memref<1x1x32xf32, #tpu.memory_space<vmem>>, %arg7: memref<18x18x4xf32, #tpu.memory_space<vmem>>, %arg8: memref<18x18x16xf32, #tpu.memory_space<vmem>>) attributes {dimension_semantics = [#tpu.dimension_semantics<parallel>], iteration_bounds = array<i64: 2>, scalar_prefetch = 0 : i64, scratch_operands = 2 : i64, tpu.core_type = #tpu.core_type<tc>, window_params = [{transform_indices = @transform_0, window_bounds = array<i64: 1, 16, 16, 4>}, {pipeline_mode = #tpu.pipeline_mode<synchronous>, transform_indices = @transform_1, window_bounds = array<i64: 36, 16>}, {pipeline_mode = #tpu.pipeline_mode<synchronous>, transform_indices = @transform_2, window_bounds = array<i64: 1, 16>}, {pipeline_mode = #tpu.pipeline_mode<synchronous>, transform_indices = @transform_3, window_bounds = array<i64: 144, 32>}, {pipeline_mode = #tpu.pipeline_mode<synchronous>, transform_indices = @transform_4, window_bounds = array<i64: 1, 32>}, {transform_indices = @transform_5, window_bounds = array<i64: 1, 1, 32>}]} {
    %cst = arith.constant 0.000000e+00 : f32
    %0 = vector.broadcast %cst : f32 to vector<18x18x4xf32>
    %c0 = arith.constant 0 : index
    %c0_0 = arith.constant 0 : index
    %c0_1 = arith.constant 0 : index
    %1 = vector.load %arg7[%c0, %c0_0, %c0_1] : memref<18x18x4xf32, #tpu.memory_space<vmem>>, vector<18x18x4xf32>
    tpu.vector_store %arg7[%c0, %c0_0, %c0_1], %0 {strides = array<i32>} : memref<18x18x4xf32, #tpu.memory_space<vmem>>, vector<18x18x4xf32>,
    %c0_2 = arith.constant 0 : index
    %c0_3 = arith.constant 0 : index
    %c0_4 = arith.constant 0 : index
    %c0_5 = arith.constant 0 : index
    %2 = vector.load %arg1[%c0_2, %c0_3, %c0_4, %c0_5] : memref<1x16x16x4xf32, #tpu.memory_space<vmem>>, vector<1x16x16x4xf32>
    %3 = vector.shape_cast %2 : vector<1x16x16x4xf32> to vector<16x16x4xf32>
    %c1 = arith.constant 1 : index
    %c1_6 = arith.constant 1 : index
    %c0_7 = arith.constant 0 : index
    %4 = vector.load %arg7[%c1, %c1_6, %c0_7] : memref<18x18x4xf32, #tpu.memory_space<vmem>>, vector<16x16x4xf32>
    tpu.vector_store %arg7[%c1, %c1_6, %c0_7], %3 {strides = array<i32>} : memref<18x18x4xf32, #tpu.memory_space<vmem>>, vector<16x16x4xf32>,
    %c0_8 = arith.constant 0 : index
    %c0_9 = arith.constant 0 : index
    %c0_10 = arith.constant 0 : index
    %5 = vector.load %arg7[%c0_8, %c0_9, %c0_10] : memref<18x18x4xf32, #tpu.memory_space<vmem>>, vector<16x16x4xf32>
    %6 = vector.shape_cast %5 : vector<16x16x4xf32> to vector<256x4xf32>
    %c0_11 = arith.constant 0 : index
    %c1_12 = arith.constant 1 : index
    %c0_13 = arith.constant 0 : index
    %7 = vector.load %arg7[%c0_11, %c1_12, %c0_13] : memref<18x18x4xf32, #tpu.memory_space<vmem>>, vector<16x16x4xf32>
    %8 = vector.shape_cast %7 : vector<16x16x4xf32> to vector<256x4xf32>
    %c0_14 = arith.constant 0 : index
    %c2 = arith.constant 2 : index
    %c0_15 = arith.constant 0 : index
    %9 = vector.load %arg7[%c0_14, %c2, %c0_15] : memref<18x18x4xf32, #tpu.memory_space<vmem>>, vector<16x16x4xf32>
    %10 = vector.shape_cast %9 : vector<16x16x4xf32> to vector<256x4xf32>
    %c1_16 = arith.constant 1 : index
    %c0_17 = arith.constant 0 : index
    %c0_18 = arith.constant 0 : index
    %11 = vector.load %arg7[%c1_16, %c0_17, %c0_18] : memref<18x18x4xf32, #tpu.memory_space<vmem>>, vector<16x16x4xf32>
    %12 = vector.shape_cast %11 : vector<16x16x4xf32> to vector<256x4xf32>
    %c1_19 = arith.constant 1 : index
    %c1_20 = arith.constant 1 : index
    %c0_21 = arith.constant 0 : index
    %13 = vector.load %arg7[%c1_19, %c1_20, %c0_21] : memref<18x18x4xf32, #tpu.memory_space<vmem>>, vector<16x16x4xf32>
    %14 = vector.shape_cast %13 : vector<16x16x4xf32> to vector<256x4xf32>
    %c1_22 = arith.constant 1 : index
    %c2_23 = arith.constant 2 : index
    %c0_24 = arith.constant 0 : index
    %15 = vector.load %arg7[%c1_22, %c2_23, %c0_24] : memref<18x18x4xf32, #tpu.memory_space<vmem>>, vector<16x16x4xf32>
    %16 = vector.shape_cast %15 : vector<16x16x4xf32> to vector<256x4xf32>
    %c2_25 = arith.constant 2 : index
    %c0_26 = arith.constant 0 : index
    %c0_27 = arith.constant 0 : index
    %17 = vector.load %arg7[%c2_25, %c0_26, %c0_27] : memref<18x18x4xf32, #tpu.memory_space<vmem>>, vector<16x16x4xf32>
    %18 = vector.shape_cast %17 : vector<16x16x4xf32> to vector<256x4xf32>
    %c2_28 = arith.constant 2 : index
    %c1_29 = arith.constant 1 : index
    %c0_30 = arith.constant 0 : index
    %19 = vector.load %arg7[%c2_28, %c1_29, %c0_30] : memref<18x18x4xf32, #tpu.memory_space<vmem>>, vector<16x16x4xf32>
    %20 = vector.shape_cast %19 : vector<16x16x4xf32> to vector<256x4xf32>
    %c2_31 = arith.constant 2 : index
    %c2_32 = arith.constant 2 : index
    %c0_33 = arith.constant 0 : index
    %21 = vector.load %arg7[%c2_31, %c2_32, %c0_33] : memref<18x18x4xf32, #tpu.memory_space<vmem>>, vector<16x16x4xf32>
    %22 = vector.shape_cast %21 : vector<16x16x4xf32> to vector<256x4xf32>
    %23 = tpu.concatenate %6, %8, %10, %12, %14, %16, %18, %20, %22 in 1 : vector<256x4xf32>, vector<256x4xf32>, vector<256x4xf32>, vector<256x4xf32>, vector<256x4xf32>, vector<256x4xf32>, vector<256x4xf32>, vector<256x4xf32>, vector<256x4xf32> -> vector<256x36xf32>
    %c0_34 = arith.constant 0 : index
    %c0_35 = arith.constant 0 : index
    %24 = vector.load %arg2[%c0_34, %c0_35] : memref<36x16xf32, #tpu.memory_space<vmem>>, vector<36x16xf32>
    %cst_36 = arith.constant dense<0.000000e+00> : vector<256x16xf32>
    %25 = tpu.matmul %23, %24, %cst_36 {dimension_numbers = #tpu.dot_dimension_numbers<[1], [0], [0], [1], [0, 0, 1, 1], [], []>} : vector<256x36xf32>, vector<36x16xf32>, vector<256x16xf32> -> vector<256x16xf32>
    %c0_37 = arith.constant 0 : index
    %c0_38 = arith.constant 0 : index
    %26 = vector.load %arg3[%c0_37, %c0_38] : memref<1x16xf32, #tpu.memory_space<vmem>>, vector<1x16xf32>
    %27 = vector.broadcast %26 : vector<1x16xf32> to vector<256x16xf32>
    %28 = arith.addf %25, %27 : vector<256x16xf32>
    %cst_39 = arith.constant 0.000000e+00 : f32
    %29 = vector.broadcast %cst_39 : f32 to vector<256x16xf32>
    %30 = arith.maximumf %28, %29 : vector<256x16xf32>
    %cst_40 = arith.constant 0.000000e+00 : f32
    %31 = vector.broadcast %cst_40 : f32 to vector<18x18x16xf32>
    %c0_41 = arith.constant 0 : index
    %c0_42 = arith.constant 0 : index
    %c0_43 = arith.constant 0 : index
    %32 = vector.load %arg8[%c0_41, %c0_42, %c0_43] : memref<18x18x16xf32, #tpu.memory_space<vmem>>, vector<18x18x16xf32>
    tpu.vector_store %arg8[%c0_41, %c0_42, %c0_43], %31 {strides = array<i32>} : memref<18x18x16xf32, #tpu.memory_space<vmem>>, vector<18x18x16xf32>,
    %33 = vector.shape_cast %30 : vector<256x16xf32> to vector<16x16x16xf32>
    %c1_44 = arith.constant 1 : index
    %c1_45 = arith.constant 1 : index
    %c0_46 = arith.constant 0 : index
    %34 = vector.load %arg8[%c1_44, %c1_45, %c0_46] : memref<18x18x16xf32, #tpu.memory_space<vmem>>, vector<16x16x16xf32>
    tpu.vector_store %arg8[%c1_44, %c1_45, %c0_46], %33 {strides = array<i32>} : memref<18x18x16xf32, #tpu.memory_space<vmem>>, vector<16x16x16xf32>,
    %c0_47 = arith.constant 0 : index
    %c0_48 = arith.constant 0 : index
    %c0_49 = arith.constant 0 : index
    %35 = vector.load %arg8[%c0_47, %c0_48, %c0_49] : memref<18x18x16xf32, #tpu.memory_space<vmem>>, vector<16x16x16xf32>
    %36 = vector.shape_cast %35 : vector<16x16x16xf32> to vector<256x16xf32>
    %c0_50 = arith.constant 0 : index
    %c1_51 = arith.constant 1 : index
    %c0_52 = arith.constant 0 : index
    %37 = vector.load %arg8[%c0_50, %c1_51, %c0_52] : memref<18x18x16xf32, #tpu.memory_space<vmem>>, vector<16x16x16xf32>
    %38 = vector.shape_cast %37 : vector<16x16x16xf32> to vector<256x16xf32>
    %c0_53 = arith.constant 0 : index
    %c2_54 = arith.constant 2 : index
    %c0_55 = arith.constant 0 : index
    %39 = vector.load %arg8[%c0_53, %c2_54, %c0_55] : memref<18x18x16xf32, #tpu.memory_space<vmem>>, vector<16x16x16xf32>
    %40 = vector.shape_cast %39 : vector<16x16x16xf32> to vector<256x16xf32>
    %c1_56 = arith.constant 1 : index
    %c0_57 = arith.constant 0 : index
    %c0_58 = arith.constant 0 : index
    %41 = vector.load %arg8[%c1_56, %c0_57, %c0_58] : memref<18x18x16xf32, #tpu.memory_space<vmem>>, vector<16x16x16xf32>
    %42 = vector.shape_cast %41 : vector<16x16x16xf32> to vector<256x16xf32>
    %c1_59 = arith.constant 1 : index
    %c1_60 = arith.constant 1 : index
    %c0_61 = arith.constant 0 : index
    %43 = vector.load %arg8[%c1_59, %c1_60, %c0_61] : memref<18x18x16xf32, #tpu.memory_space<vmem>>, vector<16x16x16xf32>
    %44 = vector.shape_cast %43 : vector<16x16x16xf32> to vector<256x16xf32>
    %c1_62 = arith.constant 1 : index
    %c2_63 = arith.constant 2 : index
    %c0_64 = arith.constant 0 : index
    %45 = vector.load %arg8[%c1_62, %c2_63, %c0_64] : memref<18x18x16xf32, #tpu.memory_space<vmem>>, vector<16x16x16xf32>
    %46 = vector.shape_cast %45 : vector<16x16x16xf32> to vector<256x16xf32>
    %c2_65 = arith.constant 2 : index
    %c0_66 = arith.constant 0 : index
    %c0_67 = arith.constant 0 : index
    %47 = vector.load %arg8[%c2_65, %c0_66, %c0_67] : memref<18x18x16xf32, #tpu.memory_space<vmem>>, vector<16x16x16xf32>
    %48 = vector.shape_cast %47 : vector<16x16x16xf32> to vector<256x16xf32>
    %c2_68 = arith.constant 2 : index
    %c1_69 = arith.constant 1 : index
    %c0_70 = arith.constant 0 : index
    %49 = vector.load %arg8[%c2_68, %c1_69, %c0_70] : memref<18x18x16xf32, #tpu.memory_space<vmem>>, vector<16x16x16xf32>
    %50 = vector.shape_cast %49 : vector<16x16x16xf32> to vector<256x16xf32>
    %c2_71 = arith.constant 2 : index
    %c2_72 = arith.constant 2 : index
    %c0_73 = arith.constant 0 : index
    %51 = vector.load %arg8[%c2_71, %c2_72, %c0_73] : memref<18x18x16xf32, #tpu.memory_space<vmem>>, vector<16x16x16xf32>
    %52 = vector.shape_cast %51 : vector<16x16x16xf32> to vector<256x16xf32>
    %53 = tpu.concatenate %36, %38, %40, %42, %44, %46, %48, %50, %52 in 1 : vector<256x16xf32>, vector<256x16xf32>, vector<256x16xf32>, vector<256x16xf32>, vector<256x16xf32>, vector<256x16xf32>, vector<256x16xf32>, vector<256x16xf32>, vector<256x16xf32> -> vector<256x144xf32>
    %c0_74 = arith.constant 0 : index
    %c0_75 = arith.constant 0 : index
    %54 = vector.load %arg4[%c0_74, %c0_75] : memref<144x32xf32, #tpu.memory_space<vmem>>, vector<144x32xf32>
    %cst_76 = arith.constant dense<0.000000e+00> : vector<256x32xf32>
    %55 = tpu.matmul %53, %54, %cst_76 {dimension_numbers = #tpu.dot_dimension_numbers<[1], [0], [0], [1], [0, 0, 1, 1], [], []>} : vector<256x144xf32>, vector<144x32xf32>, vector<256x32xf32> -> vector<256x32xf32>
    %c0_77 = arith.constant 0 : index
    %c0_78 = arith.constant 0 : index
    %56 = vector.load %arg5[%c0_77, %c0_78] : memref<1x32xf32, #tpu.memory_space<vmem>>, vector<1x32xf32>
    %57 = vector.broadcast %56 : vector<1x32xf32> to vector<256x32xf32>
    %58 = arith.addf %55, %57 : vector<256x32xf32>
    %cst_79 = arith.constant 0.000000e+00 : f32
    %59 = vector.broadcast %cst_79 : f32 to vector<256x32xf32>
    %60 = arith.maximumf %58, %59 : vector<256x32xf32>
    %cst_80 = arith.constant dense<0.000000e+00> : vector<32xf32>
    %61 = vector.multi_reduction <add>, %60, %cst_80 [0] : vector<256x32xf32> to vector<32xf32>
    %62 = vector.shape_cast %61 : vector<32xf32> to vector<1x32xf32>
    %cst_81 = arith.constant 3.906250e-03 : f32
    %63 = vector.broadcast %cst_81 : f32 to vector<1x32xf32>
    %64 = arith.mulf %62, %63 : vector<1x32xf32>
    %c0_82 = arith.constant 0 : index
    %c0_83 = arith.constant 0 : index
    %c0_84 = arith.constant 0 : index
    %65 = vector.load %arg6[%c0_82, %c0_83, %c0_84] : memref<1x1x32xf32, #tpu.memory_space<vmem>>, vector<1x1x32xf32>
    %66 = vector.shape_cast %65 : vector<1x1x32xf32> to vector<1x32xf32>
    %67 = vector.shape_cast %64 : vector<1x32xf32> to vector<1x1x32xf32>
    tpu.vector_store %arg6[%c0_82, %c0_83, %c0_84], %67 {strides = array<i32>} : memref<1x1x32xf32, #tpu.memory_space<vmem>>, vector<1x1x32xf32>,
    return
  }
  func.func @transform_0(%arg0: i32) -> (i32, i32, i32, i32) {
    %c0_i32 = arith.constant 0 : i32
    %c0_i32_0 = arith.constant 0 : i32
    %c0_i32_1 = arith.constant 0 : i32
    %c0_i32_2 = arith.constant 0 : i32
    return %arg0, %c0_i32, %c0_i32_0, %c0_i32_1 : i32, i32, i32, i32
  }
  func.func @transform_1(%arg0: i32) -> (i32, i32) {
    %c0_i32 = arith.constant 0 : i32
    %c0_i32_0 = arith.constant 0 : i32
    %c0_i32_1 = arith.constant 0 : i32
    return %c0_i32, %c0_i32_0 : i32, i32
  }
  func.func @transform_2(%arg0: i32) -> (i32, i32) {
    %c0_i32 = arith.constant 0 : i32
    %c0_i32_0 = arith.constant 0 : i32
    %c0_i32_1 = arith.constant 0 : i32
    return %c0_i32, %c0_i32_0 : i32, i32
  }
  func.func @transform_3(%arg0: i32) -> (i32, i32) {
    %c0_i32 = arith.constant 0 : i32
    %c0_i32_0 = arith.constant 0 : i32
    %c0_i32_1 = arith.constant 0 : i32
    return %c0_i32, %c0_i32_0 : i32, i32
  }
  func.func @transform_4(%arg0: i32) -> (i32, i32) {
    %c0_i32 = arith.constant 0 : i32
    %c0_i32_0 = arith.constant 0 : i32
    %c0_i32_1 = arith.constant 0 : i32
    return %c0_i32, %c0_i32_0 : i32, i32
  }
  func.func @transform_5(%arg0: i32) -> (i32, i32, i32) {
    %c0_i32 = arith.constant 0 : i32
    %c0_i32_0 = arith.constant 0 : i32
    %c0_i32_1 = arith.constant 0 : i32
    return %arg0, %c0_i32, %c0_i32_0 : i32, i32, i32
  }
}

</mosaic_0001>

<bundles_post_ra>
// kernel: tpu_custom_call.1
= control target key start
LH: loop header
LB: loop body
LE: loop exit
PB: predicated region body
PF: predicated region fallthrough
CT: control target
= control target key end

     0   :  { %10 = vsyncpa [#allocation5], 0  ;;  %s8112_s0 = inlined_call_operand.vmem [shape: f32[2,16,16,4], index: 0, kind: input, shape index: {}]   ;;  %s8113_s1 = inlined_call_operand.vmem [shape: f32[36,16], index: 1, kind: input, shape index: {}]   ;;  %s8114_s2 = inlined_call_operand.vmem [shape: f32[1,16], index: 2, kind: input, shape index: {}]   ;;  %s8115_s3 = inlined_call_operand.vmem [shape: f32[144,32], index: 3, kind: input, shape index: {}]   ;;  %s8116_s4 = inlined_call_operand.vmem [shape: f32[1,32], index: 4, kind: input, shape index: {}]   ;;  %s8117_s5 = inlined_call_operand.hbm [shape: f32[2,1,32], index: 5, kind: output, shape index: {}]  }
   0x1   :  { %12 = vsyncpa [#allocation5 + $0x1], 0  ;;  %s5263_s18 = smov 0   ;;  %s5265_s19 = smov 0  }
   0x2   :  { %s5267_s20 = smov 0   ;;  %s5269_s21 = smov 0  }
   0x3 LB: > { %s5284_s22 = sadd.s32 4294967295, %s5216_s21   ;;  %s4309_s23 = sadd.s32 4294967294, %s5216_s21   ;;  %s5216_s21 = sphi %s5269_s21, %s8401_s21   ;;  %s5212_s20 = sphi %s5267_s20, %s8400_s20   ;;  %s5208_s19 = sphi %s5265_s19, %s8399_s19   ;;  %s5204_s18 = sphi %s5263_s18, %s8398_s18  }
   0x4   : > { %s5288_s24 = sadd.s32 1, %s5216_s21   ;;  %s135_s25 = sadd.s32 1, %s5212_s20 }
   0x5   : > { %s132_s26 = ssub.s32 %s5216_s21, %s5288_s24  ;;  %p145_p0 = scmp.ne.s32.totalorder %s5212_s20, %s5208_s19 }
   0x6   : > { %p133_p1 = scmp.eq.s32.totalorder %s132_s26, 0  ;;  %p146_p2 = scmp.eq.s32.totalorder %s5284_s22, 1 }
   0x7   : > { %p151_p3 = scmp.ne.s32.totalorder %s5208_s19, %s5204_s18  ;;  %p152_p4 = scmp.eq.s32.totalorder %s4309_s23, 1 }
   0x8   : > { %s5299_s27 = scalar_select %p133_p1, %s5212_s20, %s135_s25  }
   0x9   : > { %p5301_p5 = por %p146_p2, %p145_p0  ;;  %p5305_p6 = por %p152_p4, %p151_p3 }
   0xa   : > { %p4312_p7 = scmp.ge.s32.totalorder %s5216_s21, 1  ;;  %p190_p8 = scmp.lt.s32.totalorder %s5216_s21, 3 }
   0xc   : > { %p191_p9 = pnand %p4312_p7, %p190_p8 }
   0xe   : > { %194 = sbr.rel (%p191_p9) target bundleno = 1414 (0x586), region = 40 }
  0x13   : > { %vm222_vm0 = vcmask 31744   ;;  %vm225_vm1 = vcmask 25600   ;;  %p217_p10 = scmp.lt.s32.totalorder %s5284_s22, 1  ;;  %v8118_v0 = vmov 0.0   ;;  %s5219_s10 = smov 4   ;;  %vm1754_vm2 = vcmask 130048  }
  0x14   : > { %223 = vst.msk [vmem:[#allocation2] sm:$0xff] %vm222_vm0, %v8118_v0  ;;  %224 = vst.msk [vmem:[#allocation2 + $0x8] sm:$0xff] %vm222_vm0, %v8118_v0  ;;  %4481 = vmatprep.subr.mxu1 %v8118_v0  ;;  %s5220_s11 = smov 8   ;;  %s5221_s12 = smov 12   ;;  %vm2028_vm3 = vcmask 1043456   ;;  %vm1688_vm4 = vcmask 64512  }
  0x15   : > { %227 = vst.msk [vmem:[#allocation2 + $0x18] sm:$0xff] %vm222_vm0, %v8118_v0  ;;  %228 = vst.msk [vmem:[#allocation2 + $0x20] sm:$0xff] %vm222_vm0, %v8118_v0  ;;  %s218_s30 = scalar_select %p217_p10, %s5284_s22, 1  ;;  %vm1721_vm5 = vcmask 97280   ;;  %vm1787_vm6 = vcmask 162816   ;;  %vm1820_vm7 = vcmask 195584  }
  0x16   : > { %230 = vst.msk [vmem:[#allocation2 + $0x30] sm:$0xff] %vm222_vm0, %v8118_v0  ;;  %231 = vst.msk [vmem:[#allocation2 + $0x38] sm:$0xff] %vm222_vm0, %v8118_v0  ;;  %s5222_s13 = smov 16   ;;  %s5223_s14 = smov 20   ;;  %vm1853_vm8 = vcmask 228352   ;;  %vm1886_vm9 = vcmask 261120  }
  0x17   : > { %233 = vst.msk [vmem:[#allocation2 + $0x48] sm:$0xff] %vm222_vm0, %v8118_v0  ;;  %234 = vst.msk [vmem:[#allocation2 + $0x50] sm:$0xff] %vm222_vm0, %v8118_v0  ;;  %s4385_s6 = sshll.u32 %s218_s30, 8  ;;  %vm1931_vm10 = vcmask 293888   ;;  %vm2291_vm11 = vcmask 123904   ;;  %s5227_s30 = smov 48  }
  0x18   : > { %236 = vst.msk [vmem:[#allocation2 + $0x60] sm:$0xff] %vm222_vm0, %v8118_v0  ;;  %237 = vst.msk [vmem:[#allocation2 + $0x68] sm:$0xff] %vm222_vm0, %v8118_v0  ;;  %s5427_s9 = scalar_lea.vmem %s8112_s0, %s4385_s6  ;;  %s5229_s26 = smov 64   ;;  %vm3626_vm12 = vcmask 392192   ;;  %vm3659_vm13 = vcmask 523264   ;;  %vm3692_vm14 = vcmask 654336  }
  0x19   : > { %239 = vst.msk [vmem:[#allocation2 + $0x78] sm:$0xff] %vm222_vm0, %v8118_v0  ;;  %240 = vst.msk [vmem:[#allocation2 + $0x80] sm:$0xff] %vm222_vm0, %v8118_v0  ;;  %v278_v1 = vld [vmem:[%s5427_s9] sm:$0xff]  ;;  %v280_v2 = vld [vmem:[%s5427_s9 + $0x10] sm:$0xff]  ;;  %s5230_s8 = smov 96   ;;  %vm3725_vm15 = vcmask 785408  }
  0x1a   : > { %242 = vst.msk [vmem:[#allocation2 + $0x90] sm:$0xff] %vm222_vm0, %v8118_v0  ;;  %243 = vst.msk [vmem:[#allocation2 + $0x98] sm:$0xff] %vm222_vm0, %v8118_v0  ;;  %v279_v3 = vld [vmem:[%s5427_s9 + $0x8] sm:$0xff]  ;;  %v282_v4 = vld [vmem:[%s5427_s9 + $0x20] sm:$0xff]  ;;  %s5232_s7 = smov [#allocation4]  }
  0x1b   : > { %245 = vst.msk [vmem:[#allocation2 + $0xa8] sm:$0xff] %vm222_vm0, %v8118_v0  ;;  %246 = vst.msk [vmem:[#allocation2 + $0xb0] sm:$0xff] %vm222_vm0, %v8118_v0  ;;  %v281_v5 = vld [vmem:[%s5427_s9 + $0x18] sm:$0xff]  ;;  %v284_v6 = vld [vmem:[%s5427_s9 + $0x30] sm:$0xff] }
  0x1c   : > { %248 = vst.msk [vmem:[#allocation2 + $0xc0] sm:$0xff] %vm222_vm0, %v8118_v0  ;;  %249 = vst.msk [vmem:[#allocation2 + $0xc8] sm:$0xff] %vm222_vm0, %v8118_v0  ;;  %v375_v7 = vld [vmem:[#allocation2 + $0x1] sm:$0xff]  ;;  %v285_v11 = vld [vmem:[%s5427_s9 + $0x38] sm:$0xff] }
  0x1d   : > { %251 = vst.msk [vmem:[#allocation2 + $0xd8] sm:$0xff] %vm222_vm0, %v8118_v0  ;;  %252 = vst.msk [vmem:[#allocation2 + $0xe0] sm:$0xff] %vm222_vm0, %v8118_v0  ;;  %v283_v9 = vld [vmem:[%s5427_s9 + $0x28] sm:$0xff]  ;;  %664 = vrot.lane.b32.xlu0 %v375_v7, %s5219_s10  ;;  %v286_v10 = vld [vmem:[%s5427_s9 + $0x40] sm:$0xff] }
  0x1e   : > { %254 = vst.msk [vmem:[#allocation2 + $0xf0] sm:$0xff] %vm222_vm0, %v8118_v0  ;;  %255 = vst.msk [vmem:[#allocation2 + $0xf8] sm:$0xff] %vm222_vm0, %v8118_v0  ;;  %v288_v12 = vld [vmem:[%s5427_s9 + $0x50] sm:$0xff]  ;;  %v287_v13 = vld [vmem:[%s5427_s9 + $0x48] sm:$0xff] }
  0x1f   : > { %257 = vst.msk [vmem:[#allocation2 + $0x108] sm:$0xff] %vm222_vm0, %v8118_v0  ;;  %258 = vst.msk [vmem:[#allocation2 + $0x110] sm:$0xff] %vm222_vm0, %v8118_v0  ;;  %v290_v14 = vld [vmem:[%s5427_s9 + $0x60] sm:$0xff]  ;;  %v289_v15 = vld [vmem:[%s5427_s9 + $0x58] sm:$0xff] }
  0x20   : > { %260 = vst.msk [vmem:[#allocation2 + $0x120] sm:$0xff] %vm222_vm0, %v8118_v0  ;;  %261 = vst.msk [vmem:[#allocation2 + $0x128] sm:$0xff] %vm222_vm0, %v8118_v0  ;;  %v292_v16 = vld [vmem:[%s5427_s9 + $0x70] sm:$0xff]  ;;  %v291_v17 = vld [vmem:[%s5427_s9 + $0x68] sm:$0xff] }
  0x21   : > { %263 = vst.msk [vmem:[#allocation2 + $0x138] sm:$0xff] %vm222_vm0, %v8118_v0  ;;  %264 = vst.msk [vmem:[#allocation2 + $0x140] sm:$0xff] %vm222_vm0, %v8118_v0  ;;  %v294_v18 = vld [vmem:[%s5427_s9 + $0x80] sm:$0xff]  ;;  %v293_v19 = vld [vmem:[%s5427_s9 + $0x78] sm:$0xff] }
  0x22   : > { %266 = vst.msk [vmem:[#allocation2 + $0x150] sm:$0xff] %vm222_vm0, %v8118_v0  ;;  %267 = vst.msk [vmem:[#allocation2 + $0x158] sm:$0xff] %vm222_vm0, %v8118_v0  ;;  %v296_v20 = vld [vmem:[%s5427_s9 + $0x90] sm:$0xff]  ;;  %v295_v21 = vld [vmem:[%s5427_s9 + $0x88] sm:$0xff] }
  0x23   : > { %269 = vst.msk [vmem:[#allocation2 + $0x168] sm:$0xff] %vm222_vm0, %v8118_v0  ;;  %270 = vst.msk [vmem:[#allocation2 + $0x170] sm:$0xff] %vm222_vm0, %v8118_v0  ;;  %v298_v22 = vld [vmem:[%s5427_s9 + $0xa0] sm:$0xff]  ;;  %v297_v23 = vld [vmem:[%s5427_s9 + $0x98] sm:$0xff] }
  0x24   : > { %272 = vst.msk [vmem:[#allocation2 + $0x180] sm:$0xff] %vm222_vm0, %v8118_v0  ;;  %273 = vst.msk [vmem:[#allocation2 + $0x188] sm:$0xff] %vm222_vm0, %v8118_v0  ;;  %v300_v24 = vld [vmem:[%s5427_s9 + $0xb0] sm:$0xff]  ;;  %v299_v28 = vld [vmem:[%s5427_s9 + $0xa8] sm:$0xff] }
  0x25   : > { %275 = vst.msk [vmem:[#allocation2 + $0x198] sm:$0xff] %vm222_vm0, %v8118_v0  ;;  %276 = vst.msk [vmem:[#allocation2 + $0x1a0] sm:$0xff] %vm222_vm0, %v8118_v0  ;;  %v302_v29 = vld [vmem:[%s5427_s9 + $0xc0] sm:$0xff]  ;;  %v301_v33 = vld [vmem:[%s5427_s9 + $0xb8] sm:$0xff] }
  0x26   : > { %226 = vst.msk [vmem:[#allocation2 + $0x10] sm:$0x3] %vm225_vm1, %v8118_v0  ;;  %229 = vst.msk [vmem:[#allocation2 + $0x28] sm:$0x3] %vm225_vm1, %v8118_v0  ;;  %v304_v34 = vld [vmem:[%s5427_s9 + $0xd0] sm:$0xff]  ;;  %v303_v35 = vld [vmem:[%s5427_s9 + $0xc8] sm:$0xff] }
  0x27   : > { %232 = vst.msk [vmem:[#allocation2 + $0x40] sm:$0x3] %vm225_vm1, %v8118_v0  ;;  %235 = vst.msk [vmem:[#allocation2 + $0x58] sm:$0x3] %vm225_vm1, %v8118_v0  ;;  %v306_v36 = vld [vmem:[%s5427_s9 + $0xe0] sm:$0xff]  ;;  %v305_v37 = vld [vmem:[%s5427_s9 + $0xd8] sm:$0xff] }
  0x28   : > { %238 = vst.msk [vmem:[#allocation2 + $0x70] sm:$0x3] %vm225_vm1, %v8118_v0  ;;  %241 = vst.msk [vmem:[#allocation2 + $0x88] sm:$0x3] %vm225_vm1, %v8118_v0  ;;  %v307_v39 = vld [vmem:[%s5427_s9 + $0xe8] sm:$0xff]  ;;  %v308_v58 = vld [vmem:[%s5427_s9 + $0xf0] sm:$0xff] }
  0x29   : > { %244 = vst.msk [vmem:[#allocation2 + $0xa0] sm:$0x3] %vm225_vm1, %v8118_v0  ;;  %247 = vst.msk [vmem:[#allocation2 + $0xb8] sm:$0x3] %vm225_vm1, %v8118_v0  ;;  %v309_v62 = vld [vmem:[%s5427_s9 + $0xf8] sm:$0xff]  ;;  %s5224_s9 = smov 24  }
  0x2a   : > { %250 = vst.msk [vmem:[#allocation2 + $0xd0] sm:$0x3] %vm225_vm1, %v8118_v0  ;;  %253 = vst.msk [vmem:[#allocation2 + $0xe8] sm:$0x3] %vm225_vm1, %v8118_v0 }
  0x2b   : > { %256 = vst.msk [vmem:[#allocation2 + $0x100] sm:$0x3] %vm225_vm1, %v8118_v0  ;;  %259 = vst.msk [vmem:[#allocation2 + $0x118] sm:$0x3] %vm225_vm1, %v8118_v0 }
  0x2c   : > { %262 = vst.msk [vmem:[#allocation2 + $0x130] sm:$0x3] %vm225_vm1, %v8118_v0  ;;  %265 = vst.msk [vmem:[#allocation2 + $0x148] sm:$0x3] %vm225_vm1, %v8118_v0 }
  0x2d   : > { %268 = vst.msk [vmem:[#allocation2 + $0x160] sm:$0x3] %vm225_vm1, %v8118_v0  ;;  %271 = vst.msk [vmem:[#allocation2 + $0x178] sm:$0x3] %vm225_vm1, %v8118_v0  ;;  %v376_v8 = vld [vmem:[#allocation2 + $0x9] sm:$0xff] }
  0x2e   : > { %274 = vst.msk [vmem:[#allocation2 + $0x190] sm:$0x3] %vm225_vm1, %v8118_v0  ;;  %277 = vst.msk [vmem:[#allocation2 + $0x1a8] sm:$0x3] %vm225_vm1, %v8118_v0  ;;  %666 = vrot.lane.b32.xlu0 %v376_v8, %s5219_s10  ;;  %vm4239_vm1 = vcmask 253952  }
  0x2f   : > { %311 = vst.msk [vmem:[#allocation2 + $0x19] sm:$0xff] %vm222_vm0, %v278_v1  ;;  %313 = vst.msk [vmem:[#allocation2 + $0x31] sm:$0xff] %vm222_vm0, %v280_v2  ;;  %v407_v1 = vld [vmem:[#allocation2 + $0x2] sm:$0xff] }
  0x30   : > { %312 = vst.msk [vmem:[#allocation2 + $0x21] sm:$0xff] %vm222_vm0, %v279_v3  ;;  %315 = vst.msk [vmem:[#allocation2 + $0x49] sm:$0xff] %vm222_vm0, %v282_v4  ;;  %v408_v4 = vld [vmem:[#allocation2 + $0xa] sm:$0xff] }
  0x31   : > { %314 = vst.msk [vmem:[#allocation2 + $0x39] sm:$0xff] %vm222_vm0, %v281_v5  ;;  %317 = vst.msk [vmem:[#allocation2 + $0x61] sm:$0xff] %vm222_vm0, %v284_v6 }
  0x32   : > { %316 = vst.msk [vmem:[#allocation2 + $0x51] sm:$0xff] %vm222_vm0, %v283_v9  ;;  %319 = vst.msk [vmem:[#allocation2 + $0x79] sm:$0xff] %vm222_vm0, %v286_v10 }
  0x33   : > { %318 = vst.msk [vmem:[#allocation2 + $0x69] sm:$0xff] %vm222_vm0, %v285_v11  ;;  %321 = vst.msk [vmem:[#allocation2 + $0x91] sm:$0xff] %vm222_vm0, %v288_v12 }
  0x34   : > { %320 = vst.msk [vmem:[#allocation2 + $0x81] sm:$0xff] %vm222_vm0, %v287_v13  ;;  %323 = vst.msk [vmem:[#allocation2 + $0xa9] sm:$0xff] %vm222_vm0, %v290_v14 }
  0x35   : > { %322 = vst.msk [vmem:[#allocation2 + $0x99] sm:$0xff] %vm222_vm0, %v289_v15  ;;  %325 = vst.msk [vmem:[#allocation2 + $0xc1] sm:$0xff] %vm222_vm0, %v292_v16 }
  0x36   : > { %324 = vst.msk [vmem:[#allocation2 + $0xb1] sm:$0xff] %vm222_vm0, %v291_v17  ;;  %327 = vst.msk [vmem:[#allocation2 + $0xd9] sm:$0xff] %vm222_vm0, %v294_v18  ;;  %v5472_v25 = vld [vmem:[#allocation2 + $0x19] sm:$0xff]  ;;  %v5474_v26 = vld [vmem:[#allocation2 + $0x31] sm:$0xff] }
  0x37   : > { %326 = vst.msk [vmem:[#allocation2 + $0xc9] sm:$0xff] %vm222_vm0, %v293_v19  ;;  %329 = vst.msk [vmem:[#allocation2 + $0xf1] sm:$0xff] %vm222_vm0, %v296_v20  ;;  %668 = vrot.lane.b32.xlu1 %v5472_v25, %s5219_s10  ;;  %v5481_v27 = vld [vmem:[#allocation2 + $0x21] sm:$0xff]  ;;  %672 = vrot.lane.b32.xlu0 %v5474_v26, %s5219_s10  ;;  %v5489_v30 = vld [vmem:[#allocation2 + $0x49] sm:$0xff] }
  0x38   : > { %328 = vst.msk [vmem:[#allocation2 + $0xe1] sm:$0xff] %vm222_vm0, %v295_v21  ;;  %331 = vst.msk [vmem:[#allocation2 + $0x109] sm:$0xff] %vm222_vm0, %v298_v22  ;;  %v5493_v31 = vld [vmem:[#allocation2 + $0x39] sm:$0xff]  ;;  %v5497_v32 = vld [vmem:[#allocation2 + $0x61] sm:$0xff] }
  0x39   : > { %330 = vst.msk [vmem:[#allocation2 + $0xf9] sm:$0xff] %vm222_vm0, %v297_v23  ;;  %333 = vst.msk [vmem:[#allocation2 + $0x121] sm:$0xff] %vm222_vm0, %v300_v24  ;;  %v5509_v38 = vld [vmem:[#allocation2 + $0x51] sm:$0xff]  ;;  %v5517_v40 = vld [vmem:[#allocation2 + $0x79] sm:$0xff] }
  0x3a   : > { %332 = vst.msk [vmem:[#allocation2 + $0x111] sm:$0xff] %vm222_vm0, %v299_v28  ;;  %335 = vst.msk [vmem:[#allocation2 + $0x139] sm:$0xff] %vm222_vm0, %v302_v29  ;;  %v5521_v41 = vld [vmem:[#allocation2 + $0x69] sm:$0xff]  ;;  %v5525_v42 = vld [vmem:[#allocation2 + $0x91] sm:$0xff] }
  0x3b   : > { %670 = vrot.lane.b32.xlu1 %v5481_v27, %s5219_s10  ;;  %676 = vrot.lane.b32.xlu0 %v5489_v30, %s5219_s10  ;;  %334 = vst.msk [vmem:[#allocation2 + $0x129] sm:$0xff] %vm222_vm0, %v301_v33  ;;  %337 = vst.msk [vmem:[#allocation2 + $0x151] sm:$0xff] %vm222_vm0, %v304_v34  ;;  %v5529_v43 = vld [vmem:[#allocation2 + $0x81] sm:$0xff]  ;;  %v5533_v44 = vld [vmem:[#allocation2 + $0xa9] sm:$0xff] }
  0x3c   : > { %336 = vst.msk [vmem:[#allocation2 + $0x141] sm:$0xff] %vm222_vm0, %v303_v35  ;;  %339 = vst.msk [vmem:[#allocation2 + $0x169] sm:$0xff] %vm222_vm0, %v306_v36  ;;  %v5537_v45 = vld [vmem:[#allocation2 + $0x99] sm:$0xff]  ;;  %v5541_v46 = vld [vmem:[#allocation2 + $0xc1] sm:$0xff] }
  0x3d   : > { %338 = vst.msk [vmem:[#allocation2 + $0x159] sm:$0xff] %vm222_vm0, %v305_v37  ;;  %340 = vst.msk [vmem:[#allocation2 + $0x171] sm:$0xff] %vm222_vm0, %v307_v39  ;;  %v5545_v47 = vld [vmem:[#allocation2 + $0xb1] sm:$0xff]  ;;  %v5549_v48 = vld [vmem:[#allocation2 + $0xd9] sm:$0xff] }
  0x3e   : > { %v5553_v49 = vld [vmem:[#allocation2 + $0xc9] sm:$0xff]  ;;  %v5557_v50 = vld [vmem:[#allocation2 + $0xf1] sm:$0xff]  ;;  %341 = vst.msk [vmem:[#allocation2 + $0x181] sm:$0xff] %vm222_vm0, %v308_v58  ;;  %342 = vst.msk [vmem:[#allocation2 + $0x189] sm:$0xff] %vm222_vm0, %v309_v62 }
  0x3f   : > { %674 = vrot.lane.b32.xlu1 %v5493_v31, %s5219_s10  ;;  %680 = vrot.lane.b32.xlu0 %v5497_v32, %s5219_s10  ;;  %v5561_v51 = vld [vmem:[#allocation2 + $0xe1] sm:$0xff]  ;;  %v5565_v52 = vld [vmem:[#allocation2 + $0x109] sm:$0xff]  ;;  %v5620_v5 = vld [vmem:[#allocation2 + $0x32] sm:$0xff] }
  0x40   : > { %v5569_v53 = vld [vmem:[#allocation2 + $0xf9] sm:$0xff]  ;;  %v5573_v54 = vld [vmem:[#allocation2 + $0x121] sm:$0xff]  ;;  %v5627_v7 = vld [vmem:[#allocation2 + $0x4a] sm:$0xff] }
  0x41   : > { %v5577_v55 = vld [vmem:[#allocation2 + $0x111] sm:$0xff]  ;;  %v5581_v56 = vld [vmem:[#allocation2 + $0x139] sm:$0xff]  ;;  %v5623_v6 = vld [vmem:[#allocation2 + $0x22] sm:$0xff] }
  0x42   : > { %v5585_v57 = vld [vmem:[#allocation2 + $0x129] sm:$0xff]  ;;  %v5591_v59 = vld [vmem:[#allocation2 + $0x151] sm:$0xff]  ;;  %v5614_v3 = vld [vmem:[#allocation2 + $0x1a] sm:$0xff] }
  0x43   : > { %678 = vrot.lane.b32.xlu1 %v5509_v38, %s5219_s10  ;;  %684 = vrot.lane.b32.xlu0 %v5517_v40, %s5219_s10  ;;  %v5595_v60 = vld [vmem:[#allocation2 + $0x141] sm:$0xff]  ;;  %v5599_v61 = vld [vmem:[#allocation2 + $0x169] sm:$0xff]  ;;  %v5639_v10 = vld [vmem:[#allocation2 + $0x52] sm:$0xff] }
  0x44   : > { %v5605_v63 = vld [vmem:[#allocation2 + $0x159] sm:$0xff]  ;;  %v5611_v2 = vld [vmem:[#allocation2 + $0x171] sm:$0xff]  ;;  %v5635_v9 = vld [vmem:[#allocation2 + $0x62] sm:$0xff] }
  0x45   : > { %v5631_v8 = vld [vmem:[#allocation2 + $0x3a] sm:$0xff]  ;;  %v5647_v12 = vld [vmem:[#allocation2 + $0x6a] sm:$0xff]  ;;  %v5651_v13 = vld [vmem:[#allocation2 + $0x92] sm:$0xff] }
  0x46   : > { %v5643_v11 = vld [vmem:[#allocation2 + $0x7a] sm:$0xff]  ;;  %v5655_v14 = vld [vmem:[#allocation2 + $0x82] sm:$0xff]  ;;  %v5659_v15 = vld [vmem:[#allocation2 + $0xaa] sm:$0xff] }
  0x47   : > { %682 = vrot.lane.b32.xlu1 %v5521_v41, %s5219_s10  ;;  %688 = vrot.lane.b32.xlu0 %v5525_v42, %s5219_s10  ;;  %v5663_v16 = vld [vmem:[#allocation2 + $0x9a] sm:$0xff]  ;;  %v5667_v17 = vld [vmem:[#allocation2 + $0xc2] sm:$0xff]  ;;  %v5671_v18 = vld [vmem:[#allocation2 + $0xb2] sm:$0xff] }
  0x48   : > { %v5675_v19 = vld [vmem:[#allocation2 + $0xda] sm:$0xff]  ;;  %v5679_v20 = vld [vmem:[#allocation2 + $0xca] sm:$0xff]  ;;  %v5683_v21 = vld [vmem:[#allocation2 + $0xf2] sm:$0xff] }
  0x49   : > { %v5687_v22 = vld [vmem:[#allocation2 + $0xe2] sm:$0xff]  ;;  %v5691_v23 = vld [vmem:[#allocation2 + $0x10a] sm:$0xff]  ;;  %v5695_v24 = vld [vmem:[#allocation2 + $0xfa] sm:$0xff] }
  0x4a   : > { %v5699_v28 = vld [vmem:[#allocation2 + $0x122] sm:$0xff]  ;;  %v5703_v29 = vld [vmem:[#allocation2 + $0x112] sm:$0xff]  ;;  %v5707_v33 = vld [vmem:[#allocation2 + $0x13a] sm:$0xff] }
  0x4b   : > { %686 = vrot.lane.b32.xlu1 %v5529_v43, %s5219_s10  ;;  %692 = vrot.lane.b32.xlu0 %v5533_v44, %s5219_s10  ;;  %v5713_v35 = vld [vmem:[#allocation2 + $0x12a] sm:$0xff]  ;;  %v5717_v36 = vld [vmem:[#allocation2 + $0x152] sm:$0xff]  ;;  %v5723_v39 = vld [vmem:[#allocation2 + $0x142] sm:$0xff] }
  0x4c   : > { %8144 = vst [vmem:[#allocation8_spill] sm:$0xff] %v5713_v35  ;;  %8145 = vst [vmem:[#allocation9_spill] sm:$0xff] %v5717_v36  ;;  %v437_v62 = vld [vmem:[#allocation2 + $0x16a] sm:$0xff] }
  0x4d   : > { %8147 = vst [vmem:[#allocation11_spill] sm:$0xff] %v5723_v39 }
  0x4f   : > { %690 = vrot.lane.b32.xlu1 %v5537_v45, %s5219_s10  ;;  %696 = vrot.lane.b32.xlu0 %v5541_v46, %s5219_s10 }
  0x53   : > { %694 = vrot.lane.b32.xlu1 %v5545_v47, %s5219_s10  ;;  %700 = vrot.lane.b32.xlu0 %v5549_v48, %s5219_s10 }
  0x57   : > { %698 = vrot.lane.b32.xlu1 %v5553_v49, %s5219_s10  ;;  %704 = vrot.lane.b32.xlu0 %v5557_v50, %s5219_s10 }
  0x5b   : > { %702 = vrot.lane.b32.xlu1 %v5561_v51, %s5219_s10  ;;  %708 = vrot.lane.b32.xlu0 %v5565_v52, %s5219_s10 }
  0x5f   : > { %706 = vrot.lane.b32.xlu1 %v5569_v53, %s5219_s10  ;;  %712 = vrot.lane.b32.xlu0 %v5573_v54, %s5219_s10 }
  0x63   : > { %710 = vrot.lane.b32.xlu1 %v5577_v55, %s5219_s10  ;;  %716 = vrot.lane.b32.xlu0 %v5581_v56, %s5219_s10 }
  0x67   : > { %714 = vrot.lane.b32.xlu1 %v5585_v57, %s5219_s10  ;;  %720 = vrot.lane.b32.xlu0 %v5591_v59, %s5219_s10 }
  0x6b   : > { %718 = vrot.lane.b32.xlu1 %v5595_v60, %s5219_s10  ;;  %724 = vrot.lane.b32.xlu0 %v5599_v61, %s5219_s10 }
  0x6f   : > { %722 = vrot.lane.b32.xlu1 %v5605_v63, %s5219_s10  ;;  %792 = vrot.lane.b32.xlu0 %v407_v1, %s5220_s11 }
  0x73   : > { %726 = vrot.lane.b32.xlu1 %v5611_v2, %s5219_s10  ;;  %796 = vrot.lane.b32.xlu0 %v5614_v3, %s5220_s11  ;;  %s5225_s10 = smov 28  }
  0x77   : > { %794 = vrot.lane.b32.xlu1 %v408_v4, %s5220_s11  ;;  %800 = vrot.lane.b32.xlu0 %v5620_v5, %s5220_s11  ;;  %v5733_v4 = vld [vmem:[#allocation2 + $0x15a] sm:$0xff] }
  0x78   : > { %8150 = vst [vmem:[#allocation14_spill] sm:$0xff] %v5733_v4 }
  0x7b   : > { %798 = vrot.lane.b32.xlu1 %v5623_v6, %s5220_s11  ;;  %804 = vrot.lane.b32.xlu0 %v5627_v7, %s5220_s11 }
  0x7f   : > { %802 = vrot.lane.b32.xlu1 %v5631_v8, %s5220_s11  ;;  %808 = vrot.lane.b32.xlu0 %v5635_v9, %s5220_s11 }
  0x83   : > { %806 = vrot.lane.b32.xlu1 %v5639_v10, %s5220_s11  ;;  %812 = vrot.lane.b32.xlu0 %v5643_v11, %s5220_s11 }
  0x87   : > { %810 = vrot.lane.b32.xlu1 %v5647_v12, %s5220_s11  ;;  %816 = vrot.lane.b32.xlu0 %v5651_v13, %s5220_s11 }
  0x8b   : > { %814 = vrot.lane.b32.xlu1 %v5655_v14, %s5220_s11  ;;  %820 = vrot.lane.b32.xlu0 %v5659_v15, %s5220_s11 }
  0x8f   : > { %818 = vrot.lane.b32.xlu1 %v5663_v16, %s5220_s11  ;;  %824 = vrot.lane.b32.xlu0 %v5667_v17, %s5220_s11  ;;  %v5709_v34 = vpop.permute.xlu0 %664 }
  0x90   : > { %8143 = vst [vmem:[#allocation7_spill] sm:$0xff] %v5709_v34  ;;  %v5742_v34 = vld [vmem:[#allocation2 + $0x18] sm:$0xff] }
  0x91   : > { %8153 = vst [vmem:[#allocation17_spill] sm:$0xff] %v5742_v34 }
  0x93   : > { %822 = vrot.lane.b32.xlu1 %v5671_v18, %s5220_s11  ;;  %828 = vrot.lane.b32.xlu0 %v5675_v19, %s5220_s11 }
  0x97   : > { %826 = vrot.lane.b32.xlu1 %v5679_v20, %s5220_s11  ;;  %832 = vrot.lane.b32.xlu0 %v5683_v21, %s5220_s11 }
  0x9b   : > { %830 = vrot.lane.b32.xlu1 %v5687_v22, %s5220_s11  ;;  %836 = vrot.lane.b32.xlu0 %v5691_v23, %s5220_s11 }
  0x9f   : > { %834 = vrot.lane.b32.xlu1 %v5695_v24, %s5220_s11  ;;  %840 = vrot.lane.b32.xlu0 %v5699_v28, %s5220_s11 }
  0xa0   : > { %v5719_v37 = vpop.permute.xlu0 %666 }
  0xa1   : > { %8146 = vst [vmem:[#allocation10_spill] sm:$0xff] %v5719_v37 }
  0xa3   : > { %838 = vrot.lane.b32.xlu1 %v5703_v29, %s5220_s11  ;;  %844 = vrot.lane.b32.xlu0 %v5707_v33, %s5220_s11 }
  0xa7   : > { %842 = vrot.lane.b32.xlu1 %v5713_v35, %s5220_s11  ;;  %848 = vrot.lane.b32.xlu0 %v5717_v36, %s5220_s11 }
  0xa9   : > { %v5727_v58 = vpop.permute.xlu1 %668  ;;  %v5729_v1 = vpop.permute.xlu0 %672 }
  0xaa   : > { %8148 = vst [vmem:[#allocation12_spill] sm:$0xff] %v5727_v58  ;;  %8149 = vst [vmem:[#allocation13_spill] sm:$0xff] %v5729_v1  ;;  %v438_v58 = vld [vmem:[#allocation2 + $0x172] sm:$0xff] }
  0xab   : > { %846 = vrot.lane.b32.xlu1 %v5723_v39, %s5220_s11  ;;  %852 = vrot.lane.b32.xlu0 %v437_v62, %s5220_s11  ;;  %v5751_v62 = vld [vmem:[#allocation2 + $0x30] sm:$0xff] }
  0xac   : > { %8156 = vst [vmem:[#allocation20_spill] sm:$0xff] %v5751_v62 }
  0xad   : > { %v5736_v0 = vpop.permute.xlu1 %670  ;;  %v5738_v37 = vpop.permute.xlu0 %676 }
  0xae   : > { %8151 = vst [vmem:[#allocation15_spill] sm:$0xff] %v5736_v0  ;;  %8152 = vst [vmem:[#allocation16_spill] sm:$0xff] %v5738_v37  ;;  %v5757_v0 = vld [vmem:[#allocation2 + $0x20] sm:$0xff] }
  0xaf   : > { %850 = vrot.lane.b32.xlu1 %v5733_v4, %s5220_s11  ;;  %920 = vrot.lane.b32.xlu0 %v5742_v34, %s5221_s12  ;;  %8158 = vst [vmem:[#allocation22_spill] sm:$0xff] %v5757_v0  ;;  %v5763_v34 = vld [vmem:[#allocation2 + $0x48] sm:$0xff] }
  0xb0   : > { %8160 = vst [vmem:[#allocation24_spill] sm:$0xff] %v5763_v34 }
  0xb1   : > { %v5746_v1 = vpop.permute.xlu1 %674  ;;  %v5748_v39 = vpop.permute.xlu0 %680 }
  0xb2   : > { %8154 = vst [vmem:[#allocation18_spill] sm:$0xff] %v5746_v1  ;;  %8155 = vst [vmem:[#allocation19_spill] sm:$0xff] %v5748_v39  ;;  %v5769_v39 = vld [vmem:[#allocation2 + $0x38] sm:$0xff] }
  0xb3   : > { %854 = vrot.lane.b32.xlu1 %v438_v58, %s5220_s11  ;;  %924 = vrot.lane.b32.xlu0 %v5751_v62, %s5221_s12  ;;  %8162 = vst [vmem:[#allocation26_spill] sm:$0xff] %v5769_v39  ;;  %s5226_s11 = smov 32  }
  0xb5   : > { %v5755_v37 = vpop.permute.xlu1 %678  ;;  %v5759_v4 = vpop.permute.xlu0 %684 }
  0xb6   : > { %8157 = vst [vmem:[#allocation21_spill] sm:$0xff] %v5755_v37  ;;  %8159 = vst [vmem:[#allocation23_spill] sm:$0xff] %v5759_v4  ;;  %v5775_v37 = vld [vmem:[#allocation2 + $0x60] sm:$0xff] }
  0xb7   : > { %922 = vrot.lane.b32.xlu1 %v5757_v0, %s5221_s12  ;;  %928 = vrot.lane.b32.xlu0 %v5763_v34, %s5221_s12  ;;  %8164 = vst [vmem:[#allocation28_spill] sm:$0xff] %v5775_v37  ;;  %v5781_v0 = vld [vmem:[#allocation2 + $0x50] sm:$0xff]  ;;  %v5793_v34 = vld [vmem:[#allocation2 + $0x68] sm:$0xff] }
  0xb8   : > { %8166 = vst [vmem:[#allocation30_spill] sm:$0xff] %v5781_v0  ;;  %8170 = vst [vmem:[#allocation34_spill] sm:$0xff] %v5793_v34 }
  0xb9   : > { %v5767_v58 = vpop.permute.xlu1 %682  ;;  %v5771_v1 = vpop.permute.xlu0 %688 }
  0xba   : > { %8161 = vst [vmem:[#allocation25_spill] sm:$0xff] %v5767_v58  ;;  %8163 = vst [vmem:[#allocation27_spill] sm:$0xff] %v5771_v1  ;;  %v5787_v58 = vld [vmem:[#allocation2 + $0x78] sm:$0xff] }
  0xbb   : > { %926 = vrot.lane.b32.xlu1 %v5769_v39, %s5221_s12  ;;  %932 = vrot.lane.b32.xlu0 %v5775_v37, %s5221_s12  ;;  %8168 = vst [vmem:[#allocation32_spill] sm:$0xff] %v5787_v58  ;;  %v5802_v37 = vld [vmem:[#allocation2 + $0x80] sm:$0xff] }
  0xbc   : > { %8173 = vst [vmem:[#allocation37_spill] sm:$0xff] %v5802_v37 }
  0xbd   : > { %v5779_v4 = vpop.permute.xlu1 %686  ;;  %v5783_v62 = vpop.permute.xlu0 %692 }
  0xbe   : > { %8165 = vst [vmem:[#allocation29_spill] sm:$0xff] %v5779_v4  ;;  %8167 = vst [vmem:[#allocation31_spill] sm:$0xff] %v5783_v62  ;;  %v355_v4 = vld [vmem:[#allocation2 + $0x90] sm:$0xff] }
  0xbf   : > { %930 = vrot.lane.b32.xlu1 %v5781_v0, %s5221_s12  ;;  %936 = vrot.lane.b32.xlu0 %v5787_v58, %s5221_s12 }
  0xc1   : > { %v5791_v1 = vpop.permute.xlu1 %690  ;;  %v5795_v39 = vpop.permute.xlu0 %696 }
  0xc2   : > { %8169 = vst [vmem:[#allocation33_spill] sm:$0xff] %v5791_v1  ;;  %8171 = vst [vmem:[#allocation35_spill] sm:$0xff] %v5795_v39  ;;  %v357_v1 = vld [vmem:[#allocation2 + $0xa8] sm:$0xff]  ;;  %v5811_v39 = vld [vmem:[#allocation2 + $0x98] sm:$0xff] }
  0xc3   : > { %934 = vrot.lane.b32.xlu1 %v5793_v34, %s5221_s12  ;;  %940 = vrot.lane.b32.xlu0 %v355_v4, %s5221_s12  ;;  %8176 = vst [vmem:[#allocation40_spill] sm:$0xff] %v5811_v39  ;;  %v359_v4 = vld [vmem:[#allocation2 + $0xc0] sm:$0xff] }
  0xc5   : > { %v5800_v62 = vpop.permute.xlu1 %694  ;;  %v5804_v0 = vpop.permute.xlu0 %700 }
  0xc6   : > { %8172 = vst [vmem:[#allocation36_spill] sm:$0xff] %v5800_v62  ;;  %8174 = vst [vmem:[#allocation38_spill] sm:$0xff] %v5804_v0  ;;  %v358_v0 = vld [vmem:[#allocation2 + $0xb0] sm:$0xff] }
  0xc7   : > { %938 = vrot.lane.b32.xlu1 %v5802_v37, %s5221_s12  ;;  %944 = vrot.lane.b32.xlu0 %v357_v1, %s5221_s12  ;;  %v361_v1 = vld [vmem:[#allocation2 + $0xd8] sm:$0xff]  ;;  %v360_v37 = vld [vmem:[#allocation2 + $0xc8] sm:$0xff] }
  0xc9   : > { %v5809_v58 = vpop.permute.xlu1 %698  ;;  %v5813_v34 = vpop.permute.xlu0 %704 }
  0xca   : > { %8175 = vst [vmem:[#allocation39_spill] sm:$0xff] %v5809_v58  ;;  %8177 = vst [vmem:[#allocation41_spill] sm:$0xff] %v5813_v34 }
  0xcb   : > { %942 = vrot.lane.b32.xlu1 %v5811_v39, %s5221_s12  ;;  %948 = vrot.lane.b32.xlu0 %v359_v4, %s5221_s12  ;;  %v363_v39 = vld [vmem:[#allocation2 + $0xf0] sm:$0xff] }
  0xcd   : > { %v5818_v62 = vpop.permute.xlu1 %702  ;;  %v5820_v36 = vpop.permute.xlu0 %708 }
  0xce   : > { %8178 = vst [vmem:[#allocation42_spill] sm:$0xff] %v5818_v62  ;;  %8179 = vst [vmem:[#allocation43_spill] sm:$0xff] %v5820_v36  ;;  %v362_v62 = vld [vmem:[#allocation2 + $0xe0] sm:$0xff]  ;;  %v364_v36 = vld [vmem:[#allocation2 + $0xf8] sm:$0xff] }
  0xcf   : > { %946 = vrot.lane.b32.xlu1 %v358_v0, %s5221_s12  ;;  %952 = vrot.lane.b32.xlu0 %v361_v1, %s5221_s12  ;;  %v365_v0 = vld [vmem:[#allocation2 + $0x108] sm:$0xff] }
  0xd1   : > { %v5824_v58 = vpop.permute.xlu1 %706  ;;  %v5826_v34 = vpop.permute.xlu0 %712 }
  0xd2   : > { %8180 = vst [vmem:[#allocation44_spill] sm:$0xff] %v5824_v58  ;;  %8181 = vst [vmem:[#allocation45_spill] sm:$0xff] %v5826_v34  ;;  %v366_v34 = vld [vmem:[#allocation2 + $0x110] sm:$0xff] }
  0xd3   : > { %950 = vrot.lane.b32.xlu1 %v360_v37, %s5221_s12  ;;  %956 = vrot.lane.b32.xlu0 %v363_v39, %s5221_s12  ;;  %v367_v37 = vld [vmem:[#allocation2 + $0x120] sm:$0xff] }
  0xd5   : > { %v5830_v4 = vpop.permute.xlu1 %710  ;;  %v5832_v35 = vpop.permute.xlu0 %716 }
  0xd6   : > { %8182 = vst [vmem:[#allocation46_spill] sm:$0xff] %v5830_v4  ;;  %8183 = vst [vmem:[#allocation47_spill] sm:$0xff] %v5832_v35  ;;  %v368_v35 = vld [vmem:[#allocation2 + $0x128] sm:$0xff] }
  0xd7   : > { %954 = vrot.lane.b32.xlu1 %v362_v62, %s5221_s12  ;;  %960 = vrot.lane.b32.xlu0 %v365_v0, %s5221_s12  ;;  %v369_v62 = vld [vmem:[#allocation2 + $0x138] sm:$0xff] }
  0xd9   : > { %v5836_v1 = vpop.permute.xlu1 %714  ;;  %v5838_v58 = vpop.permute.xlu0 %720 }
  0xda   : > { %8184 = vst [vmem:[#allocation48_spill] sm:$0xff] %v5836_v1  ;;  %8185 = vst [vmem:[#allocation49_spill] sm:$0xff] %v5838_v58  ;;  %v469_v1 = vld [vmem:[#allocation2 + $0x180] sm:$0xff] }
  0xdb   : > { %958 = vrot.lane.b32.xlu1 %v364_v36, %s5221_s12  ;;  %964 = vrot.lane.b32.xlu0 %v367_v37, %s5221_s12  ;;  %v8190_v36 = vmov 0.0   ;;  %v370_v37 = vld [vmem:[#allocation2 + $0x140] sm:$0xff] }
  0xdc   : > { %2289 = vst.msk [vmem:[#allocation3] sm:$0xff] %vm1754_vm2, %v8190_v36  ;;  %2290 = vst.msk [vmem:[#allocation3 + $0x8] sm:$0xff] %vm1754_vm2, %v8190_v36 }
  0xdd   : > { %v5842_v39 = vpop.permute.xlu1 %718  ;;  %v5844_v4 = vpop.permute.xlu0 %724  ;;  %2293 = vst.msk [vmem:[#allocation3 + $0x18] sm:$0xff] %vm1754_vm2, %v8190_v36  ;;  %2294 = vst.msk [vmem:[#allocation3 + $0x20] sm:$0xff] %vm1754_vm2, %v8190_v36 }
  0xde   : > { %8186 = vst [vmem:[#allocation50_spill] sm:$0xff] %v5842_v39  ;;  %8187 = vst [vmem:[#allocation51_spill] sm:$0xff] %v5844_v4  ;;  %v373_v4 = vld [vmem:[#allocation2 + $0x168] sm:$0xff]  ;;  %v372_v39 = vld [vmem:[#allocation2 + $0x158] sm:$0xff] }
  0xdf   : > { %962 = vrot.lane.b32.xlu1 %v366_v34, %s5221_s12  ;;  %968 = vrot.lane.b32.xlu0 %v369_v62, %s5221_s12  ;;  %2296 = vst.msk [vmem:[#allocation3 + $0x30] sm:$0xff] %vm1754_vm2, %v8190_v36  ;;  %2297 = vst.msk [vmem:[#allocation3 + $0x38] sm:$0xff] %vm1754_vm2, %v8190_v36  ;;  %v371_v34 = vld [vmem:[#allocation2 + $0x150] sm:$0xff] }
  0xe0   : > { %2299 = vst.msk [vmem:[#allocation3 + $0x48] sm:$0xff] %vm1754_vm2, %v8190_v36  ;;  %2300 = vst.msk [vmem:[#allocation3 + $0x50] sm:$0xff] %vm1754_vm2, %v8190_v36 }
  0xe1   : > { %v5848_v0 = vpop.permute.xlu1 %722  ;;  %v5850_v58 = vpop.permute.xlu0 %792  ;;  %2302 = vst.msk [vmem:[#allocation3 + $0x60] sm:$0xff] %vm1754_vm2, %v8190_v36  ;;  %2303 = vst.msk [vmem:[#allocation3 + $0x68] sm:$0xff] %vm1754_vm2, %v8190_v36 }
  0xe2   : > { %8188 = vst [vmem:[#allocation52_spill] sm:$0xff] %v5848_v0  ;;  %8189 = vst [vmem:[#allocation53_spill] sm:$0xff] %v5850_v58 }
  0xe3   : > { %966 = vrot.lane.b32.xlu1 %v368_v35, %s5221_s12  ;;  %2305 = vst.msk [vmem:[#allocation3 + $0x78] sm:$0xff] %vm1754_vm2, %v8190_v36  ;;  %2306 = vst.msk [vmem:[#allocation3 + $0x80] sm:$0xff] %vm1754_vm2, %v8190_v36  ;;  %972 = vrot.lane.b32.xlu0 %v371_v34, %s5221_s12 }
  0xe4   : > { %2308 = vst.msk [vmem:[#allocation3 + $0x90] sm:$0xff] %vm1754_vm2, %v8190_v36  ;;  %2309 = vst.msk [vmem:[#allocation3 + $0x98] sm:$0xff] %vm1754_vm2, %v8190_v36 }
  0xe5   : > { %2311 = vst.msk [vmem:[#allocation3 + $0xa8] sm:$0xff] %vm1754_vm2, %v8190_v36  ;;  %2312 = vst.msk [vmem:[#allocation3 + $0xb0] sm:$0xff] %vm1754_vm2, %v8190_v36  ;;  %v5926_v35 = vpop.permute.xlu1 %726  ;;  %v5928_v62 = vpop.permute.xlu0 %796 }
  0xe6   : > { %2314 = vst.msk [vmem:[#allocation3 + $0xc0] sm:$0xff] %vm1754_vm2, %v8190_v36  ;;  %2315 = vst.msk [vmem:[#allocation3 + $0xc8] sm:$0xff] %vm1754_vm2, %v8190_v36 }
  0xe7   : > { %2317 = vst.msk [vmem:[#allocation3 + $0xd8] sm:$0xff] %vm1754_vm2, %v8190_v36  ;;  %2318 = vst.msk [vmem:[#allocation3 + $0xe0] sm:$0xff] %vm1754_vm2, %v8190_v36  ;;  %970 = vrot.lane.b32.xlu1 %v370_v37, %s5221_s12  ;;  %976 = vrot.lane.b32.xlu0 %v373_v4, %s5221_s12  ;;  %v470_v37 = vld [vmem:[#allocation2 + $0x188] sm:$0xff] }
  0xe8   : > { %2320 = vst.msk [vmem:[#allocation3 + $0xf0] sm:$0xff] %vm1754_vm2, %v8190_v36  ;;  %2321 = vst.msk [vmem:[#allocation3 + $0xf8] sm:$0xff] %vm1754_vm2, %v8190_v36 }
  0xe9   : > { %2323 = vst.msk [vmem:[#allocation3 + $0x108] sm:$0xff] %vm1754_vm2, %v8190_v36  ;;  %2324 = vst.msk [vmem:[#allocation3 + $0x110] sm:$0xff] %vm1754_vm2, %v8190_v36  ;;  %v5932_v0 = vpop.permute.xlu1 %794  ;;  %v5934_v58 = vpop.permute.xlu0 %800 }
  0xea   : > { %2326 = vst.msk [vmem:[#allocation3 + $0x120] sm:$0xff] %vm1754_vm2, %v8190_v36  ;;  %2327 = vst.msk [vmem:[#allocation3 + $0x128] sm:$0xff] %vm1754_vm2, %v8190_v36 }
  0xeb   : > { %2329 = vst.msk [vmem:[#allocation3 + $0x138] sm:$0xff] %vm1754_vm2, %v8190_v36  ;;  %2330 = vst.msk [vmem:[#allocation3 + $0x140] sm:$0xff] %vm1754_vm2, %v8190_v36  ;;  %974 = vrot.lane.b32.xlu1 %v372_v39, %s5221_s12  ;;  %980 = vrot.lane.b32.xlu0 %v469_v1, %s5221_s12 }
  0xec   : > { %2332 = vst.msk [vmem:[#allocation3 + $0x150] sm:$0xff] %vm1754_vm2, %v8190_v36  ;;  %2333 = vst.msk [vmem:[#allocation3 + $0x158] sm:$0xff] %vm1754_vm2, %v8190_v36 }
  0xed   : > { %2335 = vst.msk [vmem:[#allocation3 + $0x168] sm:$0xff] %vm1754_vm2, %v8190_v36  ;;  %2336 = vst.msk [vmem:[#allocation3 + $0x170] sm:$0xff] %vm1754_vm2, %v8190_v36  ;;  %v5938_v34 = vpop.permute.xlu1 %798 }
  0xee   : > { %2338 = vst.msk [vmem:[#allocation3 + $0x180] sm:$0xff] %vm1754_vm2, %v8190_v36  ;;  %2339 = vst.msk [vmem:[#allocation3 + $0x188] sm:$0xff] %vm1754_vm2, %v8190_v36 }
  0xef   : > { %2341 = vst.msk [vmem:[#allocation3 + $0x198] sm:$0xff] %vm1754_vm2, %v8190_v36  ;;  %2342 = vst.msk [vmem:[#allocation3 + $0x1a0] sm:$0xff] %vm1754_vm2, %v8190_v36  ;;  %v5940_v36 = vpop.permute.xlu0 %804  ;;  %1048 = vrot.lane.b32.xlu0 %v5472_v25, %s5222_s13 }
  0xf0   : > { %8191 = vst [vmem:[#allocation54_spill] sm:$0xff] %v5926_v35  ;;  %8192 = vst [vmem:[#allocation55_spill] sm:$0xff] %v5928_v62  ;;  %v374_v35 = vld [vmem:[#allocation2 + $0x170] sm:$0xff] }
  0xf1   : > { %978 = vrot.lane.b32.xlu1 %v374_v35, %s5221_s12  ;;  %v5945_v4 = vpop.permute.xlu1 %802 }
  0xf3   : > { %v5947_v62 = vpop.permute.xlu0 %808  ;;  %1052 = vrot.lane.b32.xlu0 %v5474_v26, %s5222_s13 }
  0xf5   : > { %982 = vrot.lane.b32.xlu1 %v470_v37, %s5221_s12  ;;  %v5952_v1 = vpop.permute.xlu1 %806  ;;  %s5231_s12 = smov 112  }
  0xf7   : > { %v5954_v39 = vpop.permute.xlu0 %812  ;;  %1056 = vrot.lane.b32.xlu0 %v5489_v30, %s5222_s13 }
  0xf9   : > { %1050 = vrot.lane.b32.xlu1 %v5481_v27, %s5222_s13  ;;  %v5960_v25 = vpop.permute.xlu1 %810 }
  0xfb   : > { %v5962_v35 = vpop.permute.xlu0 %816  ;;  %1060 = vrot.lane.b32.xlu0 %v5497_v32, %s5222_s13 }
  0xfd   : > { %1054 = vrot.lane.b32.xlu1 %v5493_v31, %s5222_s13  ;;  %v5968_v26 = vpop.permute.xlu1 %814 }
  0xff   : > { %v5970_v37 = vpop.permute.xlu0 %820  ;;  %1064 = vrot.lane.b32.xlu0 %v5517_v40, %s5222_s13 }
 0x100   : > { %8193 = vst [vmem:[#allocation56_spill] sm:$0xff] %v5970_v37  ;;  %v552_v37 = vld [vmem:[#allocation2 + $0xf0] sm:$0xff] }
 0x101   : > { %1058 = vrot.lane.b32.xlu1 %v5509_v38, %s5222_s13  ;;  %v5976_v27 = vpop.permute.xlu1 %818 }
 0x102   : > { %8194 = vst [vmem:[#allocation57_spill] sm:$0xff] %v5976_v27 }
 0x103   : > { %v5978_v30 = vpop.permute.xlu0 %824  ;;  %1068 = vrot.lane.b32.xlu0 %v5525_v42, %s5222_s13 }
 0x104   : > { %8195 = vst [vmem:[#allocation58_spill] sm:$0xff] %v5978_v30  ;;  %v550_v30 = vld [vmem:[#allocation2 + $0xd8] sm:$0xff] }
 0x105   : > { %1062 = vrot.lane.b32.xlu1 %v5521_v41, %s5222_s13  ;;  %v5984_v31 = vpop.permute.xlu1 %822 }
 0x106   : > { %8196 = vst [vmem:[#allocation59_spill] sm:$0xff] %v5984_v31 }
 0x107   : > { %v5986_v32 = vpop.permute.xlu0 %828  ;;  %1072 = vrot.lane.b32.xlu0 %v5533_v44, %s5222_s13 }
 0x108   : > { %8197 = vst [vmem:[#allocation60_spill] sm:$0xff] %v5986_v32 }
 0x109   : > { %1066 = vrot.lane.b32.xlu1 %v5529_v43, %s5222_s13  ;;  %v5992_v38 = vpop.permute.xlu1 %826 }
 0x10a   : > { %8198 = vst [vmem:[#allocation61_spill] sm:$0xff] %v5992_v38 }
 0x10b   : > { %v5994_v40 = vpop.permute.xlu0 %832  ;;  %1076 = vrot.lane.b32.xlu0 %v5541_v46, %s5222_s13 }
 0x10c   : > { %8199 = vst [vmem:[#allocation62_spill] sm:$0xff] %v5994_v40 }
 0x10d   : > { %1070 = vrot.lane.b32.xlu1 %v5537_v45, %s5222_s13  ;;  %v6000_v41 = vpop.permute.xlu1 %830 }
 0x10e   : > { %8200 = vst [vmem:[#allocation63_spill] sm:$0xff] %v6000_v41  ;;  %v574_v41 = vld [vmem:[#allocation2 + $0x79] sm:$0xff] }
 0x10f   : > { %v6002_v42 = vpop.permute.xlu0 %836  ;;  %1080 = vrot.lane.b32.xlu0 %v5549_v48, %s5222_s13 }
 0x110   : > { %8201 = vst [vmem:[#allocation64_spill] sm:$0xff] %v6002_v42  ;;  %v572_v42 = vld [vmem:[#allocation2 + $0x61] sm:$0xff] }
 0x111   : > { %1074 = vrot.lane.b32.xlu1 %v5545_v47, %s5222_s13  ;;  %v6008_v43 = vpop.permute.xlu1 %834 }
 0x112   : > { %8202 = vst [vmem:[#allocation65_spill] sm:$0xff] %v6008_v43 }
 0x113   : > { %v6010_v44 = vpop.permute.xlu0 %840  ;;  %1084 = vrot.lane.b32.xlu0 %v5557_v50, %s5222_s13 }
 0x114   : > { %8203 = vst [vmem:[#allocation66_spill] sm:$0xff] %v6010_v44 }
 0x115   : > { %1078 = vrot.lane.b32.xlu1 %v5553_v49, %s5222_s13  ;;  %v6016_v45 = vpop.permute.xlu1 %838 }
 0x116   : > { %8204 = vst [vmem:[#allocation67_spill] sm:$0xff] %v6016_v45 }
 0x117   : > { %v6018_v46 = vpop.permute.xlu0 %844  ;;  %1088 = vrot.lane.b32.xlu0 %v5565_v52, %s5222_s13 }
 0x118   : > { %8205 = vst [vmem:[#allocation68_spill] sm:$0xff] %v6018_v46  ;;  %v601_v46 = vld [vmem:[#allocation2 + $0x3a] sm:$0xff] }
 0x119   : > { %1082 = vrot.lane.b32.xlu1 %v5561_v51, %s5222_s13  ;;  %v6024_v47 = vpop.permute.xlu1 %842 }
 0x11a   : > { %8206 = vst [vmem:[#allocation69_spill] sm:$0xff] %v6024_v47  ;;  %v570_v47 = vld [vmem:[#allocation2 + $0x49] sm:$0xff] }
 0x11b   : > { %v6026_v48 = vpop.permute.xlu0 %848  ;;  %1092 = vrot.lane.b32.xlu0 %v5573_v54, %s5222_s13 }
 0x11c   : > { %8207 = vst [vmem:[#allocation70_spill] sm:$0xff] %v6026_v48  ;;  %v8235_v48 = vld [vmem:[#allocation14_spill] sm:$0xff] }
 0x11d   : > { %1086 = vrot.lane.b32.xlu1 %v5569_v53, %s5222_s13  ;;  %v6032_v49 = vpop.permute.xlu1 %846 }
 0x11e   : > { %8208 = vst [vmem:[#allocation71_spill] sm:$0xff] %v6032_v49 }
 0x11f   : > { %v6034_v50 = vpop.permute.xlu0 %852  ;;  %1096 = vrot.lane.b32.xlu0 %v5581_v56, %s5222_s13  ;;  %v501_v56 = vld [vmem:[#allocation2 + $0x181] sm:$0xff] }
 0x120   : > { %8209 = vst [vmem:[#allocation72_spill] sm:$0xff] %v6034_v50 }
 0x121   : > { %1090 = vrot.lane.b32.xlu1 %v5577_v55, %s5222_s13  ;;  %v6040_v51 = vpop.permute.xlu1 %850 }
 0x122   : > { %8210 = vst [vmem:[#allocation73_spill] sm:$0xff] %v6040_v51 }
 0x123   : > { %v6042_v52 = vpop.permute.xlu0 %920  ;;  %1100 = vrot.lane.b32.xlu0 %v5591_v59, %s5222_s13 }
 0x125   : > { %1094 = vrot.lane.b32.xlu1 %v5585_v57, %s5222_s13  ;;  %v6048_v53 = vpop.permute.xlu1 %854 }
 0x126   : > { %8211 = vst [vmem:[#allocation74_spill] sm:$0xff] %v6048_v53 }
 0x127   : > { %v6050_v54 = vpop.permute.xlu0 %924  ;;  %1104 = vrot.lane.b32.xlu0 %v5599_v61, %s5222_s13 }
 0x129   : > { %1098 = vrot.lane.b32.xlu1 %v5595_v60, %s5222_s13  ;;  %v6056_v55 = vpop.permute.xlu1 %922  ;;  %v502_v60 = vld [vmem:[#allocation2 + $0x189] sm:$0xff] }
 0x12b   : > { %v6058_v50 = vpop.permute.xlu0 %928  ;;  %1108 = vrot.lane.b32.xlu0 %v501_v56, %s5222_s13 }
 0x12d   : > { %1102 = vrot.lane.b32.xlu1 %v5605_v63, %s5222_s13  ;;  %v6063_v57 = vpop.permute.xlu1 %926 }
 0x12f   : > { %v6065_v59 = vpop.permute.xlu0 %932  ;;  %1176 = vrot.lane.b32.xlu0 %v5614_v3, %s5223_s14 }
 0x131   : > { %1106 = vrot.lane.b32.xlu1 %v5611_v2, %s5222_s13  ;;  %v6071_v61 = vpop.permute.xlu1 %930 }
 0x133   : > { %v6073_v53 = vpop.permute.xlu0 %936  ;;  %1180 = vrot.lane.b32.xlu0 %v5620_v5, %s5223_s14 }
 0x135   : > { %1110 = vrot.lane.b32.xlu1 %v502_v60, %s5222_s13  ;;  %v6078_v63 = vpop.permute.xlu1 %934 }
 0x137   : > { %v6080_v56 = vpop.permute.xlu0 %940  ;;  %1184 = vrot.lane.b32.xlu0 %v5627_v7, %s5223_s14 }
 0x139   : > { %1178 = vrot.lane.b32.xlu1 %v5623_v6, %s5223_s14  ;;  %v6086_v2 = vpop.permute.xlu1 %938 }
 0x13b   : > { %v6088_v3 = vpop.permute.xlu0 %944  ;;  %1188 = vrot.lane.b32.xlu0 %v5635_v9, %s5223_s14 }
 0x13d   : > { %1182 = vrot.lane.b32.xlu1 %v5631_v8, %s5223_s14  ;;  %v6094_v5 = vpop.permute.xlu1 %942 }
 0x13f   : > { %v6096_v60 = vpop.permute.xlu0 %948  ;;  %1192 = vrot.lane.b32.xlu0 %v5643_v11, %s5223_s14 }
 0x140   : > { %8212 = vst [vmem:[#allocation75_spill] sm:$0xff] %v6096_v60 }
 0x141   : > { %1186 = vrot.lane.b32.xlu1 %v5639_v10, %s5223_s14  ;;  %v6102_v6 = vpop.permute.xlu1 %946 }
 0x142   : > { %8213 = vst [vmem:[#allocation76_spill] sm:$0xff] %v6102_v6 }
 0x143   : > { %v6104_v7 = vpop.permute.xlu0 %952  ;;  %1196 = vrot.lane.b32.xlu0 %v5651_v13, %s5223_s14 }
 0x144   : > { %8214 = vst [vmem:[#allocation77_spill] sm:$0xff] %v6104_v7 }
 0x145   : > { %1190 = vrot.lane.b32.xlu1 %v5647_v12, %s5223_s14  ;;  %v6110_v8 = vpop.permute.xlu1 %950 }
 0x146   : > { %8215 = vst [vmem:[#allocation78_spill] sm:$0xff] %v6110_v8  ;;  %v582_v8 = vld [vmem:[#allocation2 + $0xd9] sm:$0xff] }
 0x147   : > { %v6112_v9 = vpop.permute.xlu0 %956  ;;  %1200 = vrot.lane.b32.xlu0 %v5659_v15, %s5223_s14 }
 0x148   : > { %8216 = vst [vmem:[#allocation79_spill] sm:$0xff] %v6112_v9 }
 0x149   : > { %1194 = vrot.lane.b32.xlu1 %v5655_v14, %s5223_s14  ;;  %v6118_v10 = vpop.permute.xlu1 %954 }
 0x14a   : > { %8217 = vst [vmem:[#allocation80_spill] sm:$0xff] %v6118_v10  ;;  %v580_v10 = vld [vmem:[#allocation2 + $0xc1] sm:$0xff] }
 0x14b   : > { %v6120_v11 = vpop.permute.xlu0 %960  ;;  %1204 = vrot.lane.b32.xlu0 %v5667_v17, %s5223_s14 }
 0x14c   : > { %8218 = vst [vmem:[#allocation81_spill] sm:$0xff] %v6120_v11  ;;  %v573_v11 = vld [vmem:[#allocation2 + $0x69] sm:$0xff] }
 0x14d   : > { %1198 = vrot.lane.b32.xlu1 %v5663_v16, %s5223_s14  ;;  %v6126_v12 = vpop.permute.xlu1 %958 }
 0x14e   : > { %8219 = vst [vmem:[#allocation82_spill] sm:$0xff] %v6126_v12 }
 0x14f   : > { %v6128_v13 = vpop.permute.xlu0 %964  ;;  %1208 = vrot.lane.b32.xlu0 %v5675_v19, %s5223_s14 }
 0x150   : > { %8220 = vst [vmem:[#allocation83_spill] sm:$0xff] %v6128_v13 }
 0x151   : > { %1202 = vrot.lane.b32.xlu1 %v5671_v18, %s5223_s14  ;;  %v6134_v14 = vpop.permute.xlu1 %962 }
 0x152   : > { %8221 = vst [vmem:[#allocation84_spill] sm:$0xff] %v6134_v14 }
 0x153   : > { %v6136_v15 = vpop.permute.xlu0 %968  ;;  %1212 = vrot.lane.b32.xlu0 %v5683_v21, %s5223_s14 }
 0x154   : > { %8222 = vst [vmem:[#allocation85_spill] sm:$0xff] %v6136_v15 }
 0x155   : > { %1206 = vrot.lane.b32.xlu1 %v5679_v20, %s5223_s14  ;;  %v6142_v16 = vpop.permute.xlu1 %966 }
 0x156   : > { %8223 = vst [vmem:[#allocation86_spill] sm:$0xff] %v6142_v16  ;;  %v571_v16 = vld [vmem:[#allocation2 + $0x51] sm:$0xff] }
 0x157   : > { %v6144_v17 = vpop.permute.xlu0 %972  ;;  %1216 = vrot.lane.b32.xlu0 %v5691_v23, %s5223_s14 }
 0x158   : > { %8224 = vst [vmem:[#allocation87_spill] sm:$0xff] %v6144_v17  ;;  %v569_v17 = vld [vmem:[#allocation2 + $0x39] sm:$0xff] }
 0x159   : > { %1210 = vrot.lane.b32.xlu1 %v5687_v22, %s5223_s14  ;;  %v6150_v18 = vpop.permute.xlu1 %970  ;;  %v1923_v22 = vld [vmem:[%s8113_s1 + $0x20] sm:$0xf] }
 0x15a   : > { %8225 = vst [vmem:[#allocation88_spill] sm:$0xff] %v6150_v18  ;;  %4423 = vmatprep.subr.msk.mxu0 %vm2028_vm3, %v1923_v22 }
 0x15b   : > { %v6152_v19 = vpop.permute.xlu0 %976  ;;  %1220 = vrot.lane.b32.xlu0 %v5699_v28, %s5223_s14  ;;  %4424 = vmatpush3.msk.msra.mxu0 %vm2028_vm3, %v1923_v22  ;;  %v1920_v22 = vld [vmem:[%s8113_s1 + $0x8] sm:$0xff] }
 0x15c   : > { %8226 = vst [vmem:[#allocation89_spill] sm:$0xff] %v6152_v19 }
 0x15d   : > { %1214 = vrot.lane.b32.xlu1 %v5695_v24, %s5223_s14  ;;  %v6158_v20 = vpop.permute.xlu1 %974  ;;  %v1922_v24 = vld [vmem:[%s8113_s1 + $0x18] sm:$0xff] }
 0x15e   : > { %8227 = vst [vmem:[#allocation90_spill] sm:$0xff] %v6158_v20  ;;  %4425 = vmatprep.subr.mxu0 %v1922_v24  ;;  %v600_v20 = vld [vmem:[#allocation2 + $0x32] sm:$0xff] }
 0x15f   : > { %v6160_v21 = vpop.permute.xlu0 %980  ;;  %1224 = vrot.lane.b32.xlu0 %v5707_v33, %s5223_s14  ;;  %4426 = vmatpush3.msra.mxu0 %v1922_v24  ;;  %v8231_v33 = vld [vmem:[#allocation9_spill] sm:$0xff]  ;;  %v1919_v24 = vld [vmem:[%s8113_s1] sm:$0xff] }
 0x160   : > { %8228 = vst [vmem:[#allocation91_spill] sm:$0xff] %v6160_v21  ;;  %v1921_v21 = vld [vmem:[%s8113_s1 + $0x10] sm:$0xff] }
 0x161   : > { %1218 = vrot.lane.b32.xlu1 %v5703_v29, %s5223_s14  ;;  %v8230_v29 = vld [vmem:[#allocation8_spill] sm:$0xff]  ;;  %4427 = vmatprep.subr.mxu0 %v1921_v21 }
 0x162   : > { %4428 = vmatpush3.msra.mxu0 %v1921_v21 }
 0x163   : > { %v6169_v23 = vpop.permute.xlu1 %978  ;;  %v6174_v28 = vpop.permute.xlu0 %1048  ;;  %1228 = vrot.lane.b32.xlu0 %v8231_v33, %s5223_s14  ;;  %4429 = vmatprep.subr.mxu0 %v1920_v22  ;;  %v8234_v33 = vld [vmem:[#allocation20_spill] sm:$0xff] }
 0x164   : > { %8229 = vst [vmem:[#allocation92_spill] sm:$0xff] %v6169_v23  ;;  %4430 = vmatpush3.msra.mxu0 %v1920_v22 }
 0x165   : > { %1222 = vrot.lane.b32.xlu1 %v8230_v29, %s5223_s14  ;;  %v8233_v29 = vld [vmem:[#allocation11_spill] sm:$0xff]  ;;  %4431 = vmatprep.subr.mxu0 %v1919_v24 }
 0x166   : > { %4432 = vmatpush3.msra.mxu0 %v1919_v24 }
 0x167   : > { %v6183_v23 = vpop.permute.xlu1 %982  ;;  %v6188_v51 = vpop.permute.xlu0 %1052  ;;  %1304 = vrot.lane.b32.xlu0 %v8234_v33, %s5224_s9  ;;  %v8237_v33 = vld [vmem:[#allocation26_spill] sm:$0xff] }
 0x168   : > { %8232 = vst [vmem:[#allocation8_spill] sm:$0xff] %v6183_v23  ;;  %v568_v23 = vld [vmem:[#allocation2 + $0x31] sm:$0xff] }
 0x169   : > { %1226 = vrot.lane.b32.xlu1 %v8233_v29, %s5223_s14  ;;  %v8236_v29 = vmov 0.0  }
 0x16a   : > { %3912 = vmatprep.subr.mxu0 %v8236_v29 }
 0x16b   : > { %v6197_v21 = vpop.permute.xlu1 %1050  ;;  %v6199_v19 = vpop.permute.xlu0 %1056  ;;  %1432 = vrot.lane.b32.xlu0 %v568_v23, %s5225_s10  ;;  %v8238_v23 = vld [vmem:[#allocation24_spill] sm:$0xff] }
 0x16d   : > { %1230 = vrot.lane.b32.xlu1 %v8235_v48, %s5223_s14 }
 0x16f   : > { %v6205_v22 = vpop.permute.xlu1 %1054  ;;  %v6207_v49 = vpop.permute.xlu0 %1060  ;;  %1560 = vrot.lane.b32.xlu0 %v600_v20, %s5226_s11 }
 0x171   : > { %1306 = vrot.lane.b32.xlu1 %v8237_v33, %s5224_s9  ;;  %v602_v33 = vld [vmem:[#allocation2 + $0x4a] sm:$0xff] }
 0x173   : > { %v6212_v24 = vpop.permute.xlu1 %1058  ;;  %v6214_v48 = vpop.permute.xlu0 %1064  ;;  %1308 = vrot.lane.b32.xlu0 %v8238_v23, %s5224_s9 }
 0x175   : > { %1434 = vrot.lane.b32.xlu1 %v569_v17, %s5225_s10  ;;  %v8239_v17 = vld [vmem:[#allocation30_spill] sm:$0xff] }
 0x177   : > { %v6219_v18 = vpop.permute.xlu1 %1062  ;;  %v6221_v15 = vpop.permute.xlu0 %1068  ;;  %1436 = vrot.lane.b32.xlu0 %v570_v47, %s5225_s10  ;;  %v8241_v47 = vld [vmem:[#allocation28_spill] sm:$0xff] }
 0x179   : > { %1562 = vrot.lane.b32.xlu1 %v601_v46, %s5226_s11  ;;  %v603_v46 = vld [vmem:[#allocation2 + $0x52] sm:$0xff] }
 0x17b   : > { %v6225_v20 = vpop.permute.xlu1 %1066  ;;  %v6227_v44 = vpop.permute.xlu0 %1072  ;;  %1564 = vrot.lane.b32.xlu0 %v602_v33, %s5226_s11 }
 0x17d   : > { %1310 = vrot.lane.b32.xlu1 %v8239_v17, %s5224_s9  ;;  %v604_v17 = vld [vmem:[#allocation2 + $0x62] sm:$0xff] }
 0x17f   : > { %v6232_v23 = vpop.permute.xlu1 %1070  ;;  %v6234_v45 = vpop.permute.xlu0 %1076  ;;  %1312 = vrot.lane.b32.xlu0 %v8241_v47, %s5224_s9 }
 0x180   : > { %8240 = vst [vmem:[#allocation9_spill] sm:$0xff] %v6234_v45  ;;  %v614_v45 = vld [vmem:[#allocation2 + $0xda] sm:$0xff] }
 0x181   : > { %1438 = vrot.lane.b32.xlu1 %v571_v16, %s5225_s10  ;;  %v8246_v16 = vld [vmem:[#allocation34_spill] sm:$0xff] }
 0x183   : > { %v6239_v13 = vpop.permute.xlu1 %1074  ;;  %v6241_v14 = vpop.permute.xlu0 %1080  ;;  %1440 = vrot.lane.b32.xlu0 %v572_v42, %s5225_s10  ;;  %v8249_v42 = vld [vmem:[#allocation32_spill] sm:$0xff] }
 0x184   : > { %8242 = vst [vmem:[#allocation11_spill] sm:$0xff] %v6239_v13  ;;  %8243 = vst [vmem:[#allocation20_spill] sm:$0xff] %v6241_v14  ;;  %v612_v14 = vld [vmem:[#allocation2 + $0xc2] sm:$0xff] }
 0x185   : > { %1566 = vrot.lane.b32.xlu1 %v603_v46, %s5226_s11  ;;  %v605_v46 = vld [vmem:[#allocation2 + $0x6a] sm:$0xff] }
 0x187   : > { %v6245_v33 = vpop.permute.xlu1 %1078  ;;  %v6247_v43 = vpop.permute.xlu0 %1084  ;;  %1568 = vrot.lane.b32.xlu0 %v604_v17, %s5226_s11 }
 0x188   : > { %8244 = vst [vmem:[#allocation14_spill] sm:$0xff] %v6245_v33  ;;  %8245 = vst [vmem:[#allocation26_spill] sm:$0xff] %v6247_v43 }
 0x189   : > { %1314 = vrot.lane.b32.xlu1 %v8246_v16, %s5224_s9  ;;  %v606_v16 = vld [vmem:[#allocation2 + $0x7a] sm:$0xff] }
 0x18b   : > { %v6252_v47 = vpop.permute.xlu1 %1082  ;;  %v6254_v40 = vpop.permute.xlu0 %1088  ;;  %1316 = vrot.lane.b32.xlu0 %v8249_v42, %s5224_s9 }
 0x18c   : > { %8247 = vst [vmem:[#allocation24_spill] sm:$0xff] %v6252_v47  ;;  %8248 = vst [vmem:[#allocation30_spill] sm:$0xff] %v6254_v40  ;;  %v575_v40 = vld [vmem:[#allocation2 + $0x81] sm:$0xff] }
 0x18d   : > { %1442 = vrot.lane.b32.xlu1 %v573_v11, %s5225_s10  ;;  %v8254_v11 = vld [vmem:[#allocation37_spill] sm:$0xff] }
 0x18f   : > { %v6259_v12 = vpop.permute.xlu1 %1086  ;;  %v6261_v43 = vpop.permute.xlu0 %1092  ;;  %1444 = vrot.lane.b32.xlu0 %v574_v41, %s5225_s10 }
 0x190   : > { %8250 = vst [vmem:[#allocation28_spill] sm:$0xff] %v6259_v12  ;;  %8251 = vst [vmem:[#allocation34_spill] sm:$0xff] %v6261_v43  ;;  %v544_v12 = vld [vmem:[#allocation2 + $0x90] sm:$0xff] }
 0x191   : > { %1570 = vrot.lane.b32.xlu1 %v605_v46, %s5226_s11  ;;  %v607_v46 = vld [vmem:[#allocation2 + $0x82] sm:$0xff]  ;;  %v576_v43 = vld [vmem:[#allocation2 + $0x91] sm:$0xff] }
 0x193   : > { %v6265_v17 = vpop.permute.xlu1 %1090  ;;  %v6267_v9 = vpop.permute.xlu0 %1096  ;;  %1572 = vrot.lane.b32.xlu0 %v606_v16, %s5226_s11 }
 0x194   : > { %8252 = vst [vmem:[#allocation32_spill] sm:$0xff] %v6265_v17  ;;  %8253 = vst [vmem:[#allocation93_spill] sm:$0xff] %v6267_v9 }
 0x195   : > { %1318 = vrot.lane.b32.xlu1 %v8254_v11, %s5224_s9  ;;  %v608_v11 = vld [vmem:[#allocation2 + $0x92] sm:$0xff] }
 0x197   : > { %v6272_v42 = vpop.permute.xlu1 %1094  ;;  %v6274_v32 = vpop.permute.xlu0 %1100  ;;  %1320 = vrot.lane.b32.xlu0 %v544_v12, %s5224_s9 }
 0x198   : > { %8255 = vst [vmem:[#allocation37_spill] sm:$0xff] %v6272_v42  ;;  %8256 = vst [vmem:[#allocation94_spill] sm:$0xff] %v6274_v32  ;;  %v8261_v32 = vld [vmem:[#allocation40_spill] sm:$0xff] }
 0x199   : > { %1446 = vrot.lane.b32.xlu1 %v575_v40, %s5225_s10  ;;  %v577_v40 = vld [vmem:[#allocation2 + $0x99] sm:$0xff] }
 0x19b   : > { %v6278_v41 = vpop.permute.xlu1 %1098  ;;  %v6280_v9 = vpop.permute.xlu0 %1104  ;;  %1448 = vrot.lane.b32.xlu0 %v576_v43, %s5225_s10 }
 0x19c   : > { %8257 = vst [vmem:[#allocation95_spill] sm:$0xff] %v6278_v41  ;;  %8258 = vst [vmem:[#allocation96_spill] sm:$0xff] %v6280_v9  ;;  %v546_v41 = vld [vmem:[#allocation2 + $0xa8] sm:$0xff] }
 0x19d   : > { %1574 = vrot.lane.b32.xlu1 %v607_v46, %s5226_s11  ;;  %v609_v46 = vld [vmem:[#allocation2 + $0x9a] sm:$0xff]  ;;  %v578_v9 = vld [vmem:[#allocation2 + $0xa9] sm:$0xff] }
 0x19f   : > { %v6284_v16 = vpop.permute.xlu1 %1102  ;;  %v6286_v42 = vpop.permute.xlu0 %1108  ;;  %1576 = vrot.lane.b32.xlu0 %v608_v11, %s5226_s11 }
 0x1a0   : > { %8259 = vst [vmem:[#allocation97_spill] sm:$0xff] %v6284_v16  ;;  %8260 = vst [vmem:[#allocation98_spill] sm:$0xff] %v6286_v42 }
 0x1a1   : > { %1322 = vrot.lane.b32.xlu1 %v8261_v32, %s5224_s9  ;;  %v547_v32 = vld [vmem:[#allocation2 + $0xb0] sm:$0xff] }
 0x1a3   : > { %v6291_v12 = vpop.permute.xlu1 %1106  ;;  %v6293_v17 = vpop.permute.xlu0 %1176  ;;  %1324 = vrot.lane.b32.xlu0 %v546_v41, %s5224_s9 }
 0x1a4   : > { %8262 = vst [vmem:[#allocation40_spill] sm:$0xff] %v6291_v12  ;;  %v610_v12 = vld [vmem:[#allocation2 + $0xaa] sm:$0xff] }
 0x1a5   : > { %1450 = vrot.lane.b32.xlu1 %v577_v40, %s5225_s10  ;;  %v579_v40 = vld [vmem:[#allocation2 + $0xb1] sm:$0xff] }
 0x1a7   : > { %v6297_v43 = vpop.permute.xlu1 %1110  ;;  %v6299_v42 = vpop.permute.xlu0 %1180  ;;  %1452 = vrot.lane.b32.xlu0 %v578_v9, %s5225_s10 }
 0x1a8   : > { %8263 = vst [vmem:[#allocation99_spill] sm:$0xff] %v6297_v43  ;;  %v548_v43 = vld [vmem:[#allocation2 + $0xc0] sm:$0xff] }
 0x1a9   : > { %1578 = vrot.lane.b32.xlu1 %v609_v46, %s5226_s11  ;;  %v611_v46 = vld [vmem:[#allocation2 + $0xb2] sm:$0xff] }
 0x1ab   : > { %v6303_v11 = vpop.permute.xlu1 %1178  ;;  %v6305_v16 = vpop.permute.xlu0 %1184  ;;  %1580 = vrot.lane.b32.xlu0 %v610_v12, %s5226_s11 }
 0x1ad   : > { %1326 = vrot.lane.b32.xlu1 %v547_v32, %s5224_s9  ;;  %v549_v32 = vld [vmem:[#allocation2 + $0xc8] sm:$0xff] }
 0x1af   : > { %v6309_v41 = vpop.permute.xlu1 %1182  ;;  %v6311_v47 = vpop.permute.xlu0 %1188  ;;  %1328 = vrot.lane.b32.xlu0 %v548_v43, %s5224_s9 }
 0x1b1   : > { %1454 = vrot.lane.b32.xlu1 %v579_v40, %s5225_s10  ;;  %v581_v40 = vld [vmem:[#allocation2 + $0xc9] sm:$0xff] }
 0x1b3   : > { %v6315_v9 = vpop.permute.xlu1 %1186  ;;  %v6317_v38 = vpop.permute.xlu0 %1192  ;;  %1456 = vrot.lane.b32.xlu0 %v580_v10, %s5225_s10 }
 0x1b5   : > { %1582 = vrot.lane.b32.xlu1 %v611_v46, %s5226_s11  ;;  %v613_v46 = vld [vmem:[#allocation2 + $0xca] sm:$0xff] }
 0x1b7   : > { %v6321_v12 = vpop.permute.xlu1 %1190  ;;  %v6323_v7 = vpop.permute.xlu0 %1196  ;;  %1584 = vrot.lane.b32.xlu0 %v612_v14, %s5226_s11 }
 0x1b9   : > { %1330 = vrot.lane.b32.xlu1 %v549_v32, %s5224_s9  ;;  %v551_v32 = vld [vmem:[#allocation2 + $0xe0] sm:$0xff] }
 0x1bb   : > { %v6327_v43 = vpop.permute.xlu1 %1194  ;;  %v6329_v33 = vpop.permute.xlu0 %1200  ;;  %1332 = vrot.lane.b32.xlu0 %v550_v30, %s5224_s9 }
 0x1bd   : > { %1458 = vrot.lane.b32.xlu1 %v581_v40, %s5225_s10  ;;  %v583_v40 = vld [vmem:[#allocation2 + $0xe1] sm:$0xff] }
 0x1bf   : > { %v6333_v10 = vpop.permute.xlu1 %1198  ;;  %v6335_v31 = vpop.permute.xlu0 %1204  ;;  %1460 = vrot.lane.b32.xlu0 %v582_v8, %s5225_s10 }
 0x1c0   : > { %8264 = vst [vmem:[#allocation100_spill] sm:$0xff] %v6335_v31  ;;  %v584_v31 = vld [vmem:[#allocation2 + $0xf1] sm:$0xff] }
 0x1c1   : > { %1586 = vrot.lane.b32.xlu1 %v613_v46, %s5226_s11  ;;  %v615_v46 = vld [vmem:[#allocation2 + $0xe2] sm:$0xff] }
 0x1c3   : > { %v6339_v14 = vpop.permute.xlu1 %1202  ;;  %v6341_v60 = vpop.permute.xlu0 %1208  ;;  %1588 = vrot.lane.b32.xlu0 %v614_v45, %s5226_s11 }
 0x1c4   : > { %8265 = vst [vmem:[#allocation101_spill] sm:$0xff] %v6339_v14  ;;  %8266 = vst [vmem:[#allocation102_spill] sm:$0xff] %v6341_v60  ;;  %v616_v60 = vld [vmem:[#allocation2 + $0xf2] sm:$0xff] }
 0x1c5   : > { %1334 = vrot.lane.b32.xlu1 %v551_v32, %s5224_s9  ;;  %v553_v32 = vld [vmem:[#allocation2 + $0xf8] sm:$0xff] }
 0x1c7   : > { %v6345_v30 = vpop.permute.xlu1 %1206  ;;  %v6347_v29 = vpop.permute.xlu0 %1212  ;;  %1336 = vrot.lane.b32.xlu0 %v552_v37, %s5224_s9 }
 0x1c8   : > { %8267 = vst [vmem:[#allocation103_spill] sm:$0xff] %v6345_v30  ;;  %8268 = vst [vmem:[#allocation104_spill] sm:$0xff] %v6347_v29  ;;  %v554_v29 = vld [vmem:[#allocation2 + $0x108] sm:$0xff] }
 0x1c9   : > { %1462 = vrot.lane.b32.xlu1 %v583_v40, %s5225_s10  ;;  %v585_v40 = vld [vmem:[#allocation2 + $0xf9] sm:$0xff] }
 0x1cb   : > { %v6351_v8 = vpop.permute.xlu1 %1210  ;;  %v6353_v14 = vpop.permute.xlu0 %1216  ;;  %1464 = vrot.lane.b32.xlu0 %v584_v31, %s5225_s10 }
 0x1cc   : > { %8269 = vst [vmem:[#allocation105_spill] sm:$0xff] %v6351_v8  ;;  %8270 = vst [vmem:[#allocation106_spill] sm:$0xff] %v6353_v14  ;;  %v586_v14 = vld [vmem:[#allocation2 + $0x109] sm:$0xff] }
 0x1cd   : > { %1590 = vrot.lane.b32.xlu1 %v615_v46, %s5226_s11  ;;  %v617_v46 = vld [vmem:[#allocation2 + $0xfa] sm:$0xff] }
 0x1cf   : > { %v6357_v45 = vpop.permute.xlu1 %1214  ;;  %v6359_v30 = vpop.permute.xlu0 %1220  ;;  %1592 = vrot.lane.b32.xlu0 %v616_v60, %s5226_s11 }
 0x1d0   : > { %8271 = vst [vmem:[#allocation107_spill] sm:$0xff] %v6357_v45  ;;  %8272 = vst [vmem:[#allocation108_spill] sm:$0xff] %v6359_v30  ;;  %v343_v30 = vld [vmem:[#allocation2] sm:$0xff] }
 0x1d1   : > { %1338 = vrot.lane.b32.xlu1 %v553_v32, %s5224_s9  ;;  %v555_v32 = vld [vmem:[#allocation2 + $0x110] sm:$0xff] }
 0x1d3   : > { %v6363_v37 = vpop.permute.xlu1 %1218  ;;  %v6365_v8 = vpop.permute.xlu0 %1224  ;;  %1340 = vrot.lane.b32.xlu0 %v554_v29, %s5224_s9  ;;  %v587_v29 = vld [vmem:[#allocation2 + $0x111] sm:$0xff] }
 0x1d4   : > { %8273 = vst [vmem:[#allocation109_spill] sm:$0xff] %v6363_v37  ;;  %8274 = vst [vmem:[#allocation110_spill] sm:$0xff] %v6365_v8  ;;  %v618_v37 = vld [vmem:[#allocation2 + $0x10a] sm:$0xff] }
 0x1d5   : > { %1466 = vrot.lane.b32.xlu1 %v585_v40, %s5225_s10  ;;  %v8278_v40 = vld [vmem:[#allocation7_spill] sm:$0xff] }
 0x1d7   : > { %v6369_v31 = vpop.permute.xlu1 %1222  ;;  %v6371_v45 = vpop.permute.xlu0 %1228  ;;  %1468 = vrot.lane.b32.xlu0 %v586_v14, %s5225_s10 }
 0x1d8   : > { %8275 = vst [vmem:[#allocation111_spill] sm:$0xff] %v6369_v31  ;;  %8276 = vst [vmem:[#allocation112_spill] sm:$0xff] %v6371_v45  ;;  %v1656_v31 = vsel %vm222_vm0, %v343_v30, %v8278_v40 }
 0x1d9   : > { %1594 = vrot.lane.b32.xlu1 %v617_v46, %s5226_s11  ;;  %v8280_v46 = vld [vmem:[#allocation53_spill] sm:$0xff] }
 0x1da   : > { %v1689_v14 = vsel %vm1688_vm4, %v1656_v31, %v8280_v46 }
 0x1db   : > { %v6375_v60 = vpop.permute.xlu1 %1226  ;;  %v1305_v8 = vpop.permute.xlu0 %1304  ;;  %1596 = vrot.lane.b32.xlu0 %v618_v37, %s5226_s11  ;;  %v1722_v13 = vsel %vm1721_vm5, %v1689_v14, %v6042_v52  ;;  %v619_v37 = vld [vmem:[#allocation2 + $0x112] sm:$0xff]  ;;  %v588_v52 = vld [vmem:[#allocation2 + $0x121] sm:$0xff] }
 0x1dc   : > { %8277 = vst [vmem:[#allocation113_spill] sm:$0xff] %v6375_v60  ;;  %v556_v60 = vld [vmem:[#allocation2 + $0x120] sm:$0xff]  ;;  %v1755_v30 = vsel %vm1754_vm2, %v1722_v13, %v6174_v28 }
 0x1dd   : > { %1342 = vrot.lane.b32.xlu1 %v555_v32, %s5224_s9  ;;  %v344_v32 = vld [vmem:[#allocation2 + $0x8] sm:$0xff]  ;;  %v1788_v40 = vsel %vm1787_vm6, %v1755_v30, %v6293_v17  ;;  %v8281_v14 = vld [vmem:[#allocation10_spill] sm:$0xff] }
 0x1de   : > { %v1821_v46 = vsel %vm1820_vm7, %v1788_v40, %v1305_v8  ;;  %v557_v17 = vld [vmem:[#allocation2 + $0x128] sm:$0xff] }
 0x1df   : > { %v6381_v45 = vpop.permute.xlu1 %1230  ;;  %v1433_v6 = vpop.permute.xlu0 %1432  ;;  %1344 = vrot.lane.b32.xlu0 %v556_v60, %s5224_s9 }
 0x1e0   : > { %8279 = vst [vmem:[#allocation7_spill] sm:$0xff] %v6381_v45  ;;  %v1854_v45 = vsel %vm1853_vm8, %v1821_v46, %v1433_v6 }
 0x1e1   : > { %1470 = vrot.lane.b32.xlu1 %v587_v29, %s5225_s10  ;;  %v1657_v29 = vsel %vm222_vm0, %v344_v32, %v8281_v14  ;;  %v620_v32 = vld [vmem:[#allocation2 + $0x122] sm:$0xff] }
 0x1e2   : > { %v1690_v13 = vsel %vm1688_vm4, %v1657_v29, %v5932_v0  ;;  %v558_v29 = vld [vmem:[#allocation2 + $0x138] sm:$0xff] }
 0x1e3   : > { %v1307_v31 = vpop.permute.xlu1 %1306  ;;  %v1561_v27 = vpop.permute.xlu0 %1560  ;;  %v1723_v60 = vsel %vm1721_vm5, %v1690_v13, %v6056_v55  ;;  %1472 = vrot.lane.b32.xlu0 %v588_v52, %s5225_s10  ;;  %v8283_v55 = vld [vmem:[#allocation17_spill] sm:$0xff] }
 0x1e4   : > { %v1887_v28 = vsel %vm1886_vm9, %v1854_v45, %v1561_v27  ;;  %v1756_v6 = vsel %vm1754_vm2, %v1723_v60, %v6197_v21  ;;  %v589_v27 = vld [vmem:[#allocation2 + $0x129] sm:$0xff] }
 0x1e5   : > { %1598 = vrot.lane.b32.xlu1 %v619_v37, %s5226_s11  ;;  %4433 = vmatprep.mubr.msk.f32.mxu0 %vm1931_vm10, %v1887_v28  ;;  %v1789_v30 = vsel %vm1787_vm6, %v1756_v6, %v6303_v11  ;;  %v8282_v45 = vld [vmem:[#allocation12_spill] sm:$0xff]  ;;  %v8284_v21 = vld [vmem:[#allocation55_spill] sm:$0xff] }
 0x1e6   : > { %v1822_v0 = vsel %vm1820_vm7, %v1789_v30, %v1307_v31  ;;  %v1658_v40 = vsel %vm222_vm0, %v8283_v55, %v8282_v45  ;;  %v8285_v30 = vld [vmem:[#allocation15_spill] sm:$0xff] }
 0x1e7   : > { %v1435_v8 = vpop.permute.xlu1 %1434  ;;  %v1309_v37 = vpop.permute.xlu0 %1308  ;;  %1600 = vrot.lane.b32.xlu0 %v620_v32, %s5226_s11  ;;  %v1691_v14 = vsel %vm1688_vm4, %v1658_v40, %v8284_v21  ;;  %v590_v32 = vld [vmem:[#allocation2 + $0x139] sm:$0xff] }
 0x1e8   : > { %v1855_v46 = vsel %vm1853_vm8, %v1822_v0, %v1435_v8  ;;  %v1724_v13 = vsel %vm1721_vm5, %v1691_v14, %v6050_v54  ;;  %v8286_v54 = vld [vmem:[#allocation22_spill] sm:$0xff] }
 0x1e9   : > { %1346 = vrot.lane.b32.xlu1 %v557_v17, %s5224_s9  ;;  %v1757_v28 = vsel %vm1754_vm2, %v1724_v13, %v6188_v51  ;;  %v621_v17 = vld [vmem:[#allocation2 + $0x12a] sm:$0xff]  ;;  %v1659_v0 = vsel %vm222_vm0, %v8286_v54, %v8285_v30  ;;  %v559_v55 = vld [vmem:[#allocation2 + $0x140] sm:$0xff] }
 0x1ea   : > { %v1790_v60 = vsel %vm1787_vm6, %v1757_v28, %v6299_v42  ;;  %v1692_v51 = vsel %vm1688_vm4, %v1659_v0, %v5938_v34  ;;  %v592_v0 = vld [vmem:[#allocation2 + $0x151] sm:$0xff] }
 0x1eb   : > { %v1563_v52 = vpop.permute.xlu1 %1562  ;;  %v1437_v31 = vpop.permute.xlu0 %1436  ;;  %1348 = vrot.lane.b32.xlu0 %v558_v29, %s5224_s9  ;;  %v1823_v6 = vsel %vm1820_vm7, %v1790_v60, %v1309_v37  ;;  %v1725_v40 = vsel %vm1721_vm5, %v1692_v51, %v6063_v57  ;;  %v5115_v29 = vld [vmem:[#allocation2 + $0x30] sm:$0xff] }
 0x1ec   : > { %v1888_v11 = vsel %vm1886_vm9, %v1855_v46, %v1563_v52  ;;  %v1758_v46 = vsel %vm1754_vm2, %v1725_v40, %v6205_v22  ;;  %v622_v52 = vld [vmem:[#allocation2 + $0x13a] sm:$0xff]  ;;  %v8287_v57 = vld [vmem:[#allocation13_spill] sm:$0xff] }
 0x1ed   : > { %1474 = vrot.lane.b32.xlu1 %v589_v27, %s5225_s10  ;;  %4434 = vmatmul.mubr.msk.f32.vlgmr.msra.gmra.mxu0 %vm1931_vm10, %v1888_v11  ;;  %v1856_v27 = vsel %vm1853_vm8, %v1823_v6, %v1437_v31  ;;  %v1791_v21 = vsel %vm1787_vm6, %v1758_v46, %v6309_v41  ;;  %v591_v11 = vld [vmem:[#allocation2 + $0x141] sm:$0xff]  ;;  %v1660_v13 = vsel %vm222_vm0, %v5115_v29, %v8287_v57 }
 0x1ee   : > { %v1693_v22 = vsel %vm1688_vm4, %v1660_v13, %v5934_v58 }
 0x1ef   : > { %v1311_v8 = vpop.permute.xlu1 %1310  ;;  %v1565_v45 = vpop.permute.xlu0 %1564  ;;  %1476 = vrot.lane.b32.xlu0 %v590_v32, %s5225_s10  ;;  %v1726_v60 = vsel %vm1721_vm5, %v1693_v22, %v6058_v50  ;;  %v623_v32 = vld [vmem:[#allocation2 + $0x142] sm:$0xff]  ;;  %v8288_v50 = vld [vmem:[#allocation18_spill] sm:$0xff] }
 0x1f0   : > { %v1889_v42 = vsel %vm1886_vm9, %v1856_v27, %v1565_v45  ;;  %v1824_v34 = vsel %vm1820_vm7, %v1791_v21, %v1311_v8  ;;  %v1759_v6 = vsel %vm1754_vm2, %v1726_v60, %v6199_v19  ;;  %v5116_v27 = vld [vmem:[#allocation2 + $0x38] sm:$0xff] }
 0x1f1   : > { %1602 = vrot.lane.b32.xlu1 %v621_v17, %s5226_s11  ;;  %4436 = vmatprep.mubr.msk.f32.mxu0 %vm1931_vm10, %v1889_v42  ;;  %v560_v17 = vld [vmem:[#allocation2 + $0x150] sm:$0xff]  ;;  %v1792_v30 = vsel %vm1787_vm6, %v1759_v6, %v6305_v16  ;;  %v1661_v45 = vsel %vm222_vm0, %v5116_v27, %v8288_v50 }
 0x1f2   : > { %v1694_v19 = vsel %vm1688_vm4, %v1661_v45, %v5945_v4  ;;  %v594_v6 = vld [vmem:[#allocation2 + $0x169] sm:$0xff] }
 0x1f3   : > { %v1439_v37 = vpop.permute.xlu1 %1438  ;;  %v1313_v14 = vpop.permute.xlu0 %1312  ;;  %1604 = vrot.lane.b32.xlu0 %v622_v52, %s5226_s11  ;;  %v1727_v40 = vsel %vm1721_vm5, %v1694_v19, %v6071_v61  ;;  %v624_v52 = vld [vmem:[#allocation2 + $0x152] sm:$0xff]  ;;  %v8289_v61 = vld [vmem:[#allocation16_spill] sm:$0xff] }
 0x1f4   : > { %v1857_v31 = vsel %vm1853_vm8, %v1824_v34, %v1439_v37  ;;  %v1825_v54 = vsel %vm1820_vm7, %v1792_v30, %v1313_v14  ;;  %v1760_v46 = vsel %vm1754_vm2, %v1727_v40, %v6212_v24  ;;  %v593_v34 = vld [vmem:[#allocation2 + $0x159] sm:$0xff] }
 0x1f5   : > { %1350 = vrot.lane.b32.xlu1 %v559_v55, %s5224_s9  ;;  %v561_v55 = vld [vmem:[#allocation2 + $0x158] sm:$0xff]  ;;  %v1793_v21 = vsel %vm1787_vm6, %v1760_v46, %v6315_v9 }
 0x1f7   : > { %v1567_v28 = vpop.permute.xlu1 %1566  ;;  %v1441_v8 = vpop.permute.xlu0 %1440  ;;  %1352 = vrot.lane.b32.xlu0 %v560_v17, %s5224_s9  ;;  %v625_v17 = vld [vmem:[#allocation2 + $0x15a] sm:$0xff] }
 0x1f8   : > { %v1890_v41 = vsel %vm1886_vm9, %v1857_v31, %v1567_v28  ;;  %v1858_v51 = vsel %vm1853_vm8, %v1825_v54, %v1441_v8  ;;  %v562_v31 = vld [vmem:[#allocation2 + $0x168] sm:$0xff] }
 0x1f9   : > { %1478 = vrot.lane.b32.xlu1 %v591_v11, %s5225_s10  ;;  %4437 = vmatmul.mubr.msk.f32.gmra.mxu0 %vm1931_vm10, %v1890_v41  ;;  %v5117_v11 = vld [vmem:[#allocation2 + $0x48] sm:$0xff] }
 0x1fa   : > { %v1662_v29 = vsel %vm222_vm0, %v5117_v11, %v8289_v61  ;;  %v564_v61 = vld [vmem:[#allocation2 + $0x180] sm:$0xff] }
 0x1fb   : > { %v1315_v58 = vpop.permute.xlu1 %1314  ;;  %v1569_v42 = vpop.permute.xlu0 %1568  ;;  %1480 = vrot.lane.b32.xlu0 %v592_v0, %s5225_s10  ;;  %v1695_v24 = vsel %vm1688_vm4, %v1662_v29, %v5940_v36  ;;  %v563_v0 = vld [vmem:[#allocation2 + $0x170] sm:$0xff]  ;;  %v5120_v29 = vld [vmem:[#allocation2 + $0x68] sm:$0xff] }
 0x1fc   : > { %v1891_v16 = vsel %vm1886_vm9, %v1858_v51, %v1569_v42  ;;  %v1826_v4 = vsel %vm1820_vm7, %v1793_v21, %v1315_v58  ;;  %v1728_v28 = vsel %vm1721_vm5, %v1695_v24, %v6065_v59  ;;  %v8290_v59 = vld [vmem:[#allocation21_spill] sm:$0xff]  ;;  %v626_v51 = vld [vmem:[#allocation2 + $0x16a] sm:$0xff] }
 0x1fd   : > { %1606 = vrot.lane.b32.xlu1 %v623_v32, %s5226_s11  ;;  %4439 = vmatprep.mubr.msk.f32.mxu0 %vm1931_vm10, %v1891_v16  ;;  %v1761_v41 = vsel %vm1754_vm2, %v1728_v28, %v6207_v49  ;;  %v5118_v32 = vld [vmem:[#allocation2 + $0x50] sm:$0xff] }
 0x1fe   : > { %v1794_v60 = vsel %vm1787_vm6, %v1761_v41, %v6311_v47  ;;  %v1663_v30 = vsel %vm222_vm0, %v5118_v32, %v8290_v59  ;;  %v595_v16 = vld [vmem:[#allocation2 + $0x171] sm:$0xff]  ;;  %v628_v59 = vld [vmem:[#allocation2 + $0x182] sm:$0xff] }
 0x1ff   : > { %v1443_v37 = vpop.permute.xlu1 %1442  ;;  %v1317_v14 = vpop.permute.xlu0 %1316  ;;  %1608 = vrot.lane.b32.xlu0 %v624_v52, %s5226_s11  ;;  %v1696_v49 = vsel %vm1688_vm4, %v1663_v30, %v5952_v1 }
 0x200   : > { %v1859_v57 = vsel %vm1853_vm8, %v1826_v4, %v1443_v37  ;;  %v1827_v8 = vsel %vm1820_vm7, %v1794_v60, %v1317_v14  ;;  %v1729_v27 = vsel %vm1721_vm5, %v1696_v49, %v6078_v63  ;;  %v8291_v63 = vld [vmem:[#allocation19_spill] sm:$0xff]  ;;  %v627_v4 = vld [vmem:[#allocation2 + $0x172] sm:$0xff] }
 0x201   : > { %1354 = vrot.lane.b32.xlu1 %v561_v55, %s5224_s9  ;;  %v1762_v45 = vsel %vm1754_vm2, %v1729_v27, %v6219_v18  ;;  %v5119_v55 = vld [vmem:[#allocation2 + $0x60] sm:$0xff]  ;;  %v565_v60 = vld [vmem:[#allocation2 + $0x188] sm:$0xff] }
 0x202   : > { %v1795_v42 = vsel %vm1787_vm6, %v1762_v45, %v6321_v12  ;;  %v1664_v40 = vsel %vm222_vm0, %v5119_v55, %v8291_v63  ;;  %v597_v49 = vld [vmem:[#allocation2 + $0x189] sm:$0xff]  ;;  %v5122_v27 = vld [vmem:[#allocation2 + $0x80] sm:$0xff]  ;;  %v566_v55 = vld [vmem:[#allocation2 + $0x198] sm:$0xff] }
 0x203   : > { %v1571_v13 = vpop.permute.xlu1 %1570  ;;  %v1445_v22 = vpop.permute.xlu0 %1444  ;;  %1356 = vrot.lane.b32.xlu0 %v562_v31, %s5224_s9  ;;  %v1697_v18 = vsel %vm1688_vm4, %v1664_v40, %v5947_v62 }
 0x204   : > { %v1892_v9 = vsel %vm1886_vm9, %v1859_v57, %v1571_v13  ;;  %v1860_v58 = vsel %vm1853_vm8, %v1827_v8, %v1445_v22  ;;  %v1730_v52 = vsel %vm1721_vm5, %v1697_v18, %v6073_v53  ;;  %v8292_v53 = vld [vmem:[#allocation25_spill] sm:$0xff]  ;;  %v596_v22 = vld [vmem:[#allocation2 + $0x181] sm:$0xff] }
 0x205   : > { %1482 = vrot.lane.b32.xlu1 %v593_v34, %s5225_s10  ;;  %4440 = vmatmul.mubr.msk.f32.gmra.mxu0 %vm1931_vm10, %v1892_v9  ;;  %v1763_v14 = vsel %vm1754_vm2, %v1730_v52, %v6214_v48  ;;  %v1665_v57 = vsel %vm222_vm0, %v5120_v29, %v8292_v53  ;;  %v5124_v29 = vld [vmem:[#allocation2 + $0x98] sm:$0xff] }
 0x206   : > { %v1796_v34 = vsel %vm1787_vm6, %v1763_v14, %v6317_v38  ;;  %v1698_v48 = vsel %vm1688_vm4, %v1665_v57, %v5960_v25 }
 0x207   : > { %v1319_v36 = vpop.permute.xlu1 %1318  ;;  %v1573_v54 = vpop.permute.xlu0 %1572  ;;  %1484 = vrot.lane.b32.xlu0 %v594_v6, %s5225_s10  ;;  %v1731_v9 = vsel %vm1721_vm5, %v1698_v48, %v6086_v2  ;;  %v8293_v2 = vld [vmem:[#allocation23_spill] sm:$0xff] }
 0x208   : > { %v1893_v47 = vsel %vm1886_vm9, %v1860_v58, %v1573_v54  ;;  %v1828_v1 = vsel %vm1820_vm7, %v1795_v42, %v1319_v36  ;;  %v1764_v28 = vsel %vm1754_vm2, %v1731_v9, %v6225_v20  ;;  %v5121_v36 = vld [vmem:[#allocation2 + $0x78] sm:$0xff]  ;;  %v599_v48 = vld [vmem:[#allocation2 + $0x1a1] sm:$0xff] }
 0x209   : > { %1610 = vrot.lane.b32.xlu1 %v625_v17, %s5226_s11  ;;  %4442 = vmatprep.mubr.msk.f32.mxu0 %vm1931_vm10, %v1893_v47  ;;  %v1797_v41 = vsel %vm1787_vm6, %v1764_v28, %v6327_v43  ;;  %v1666_v8 = vsel %vm222_vm0, %v5121_v36, %v8293_v2  ;;  %v8299_v28 = vld [vmem:[#allocation11_spill] sm:$0xff] }
 0x20a   : > { %v1699_v20 = vsel %vm1688_vm4, %v1666_v8, %v5954_v39  ;;  %v631_v2 = vld [vmem:[#allocation2 + $0x1a2] sm:$0xff] }
 0x20b   : > { %v1447_v50 = vpop.permute.xlu1 %1446  ;;  %v1321_v19 = vpop.permute.xlu0 %1320  ;;  %1612 = vrot.lane.b32.xlu0 %v626_v51, %s5226_s11  ;;  %v1732_v30 = vsel %vm1721_vm5, %v1699_v20, %v6080_v56  ;;  %v5125_v8 = vld [vmem:[#allocation2 + $0xa8] sm:$0xff] }
 0x20c   : > { %v1861_v37 = vsel %vm1853_vm8, %v1828_v1, %v1447_v50  ;;  %v1829_v11 = vsel %vm1820_vm7, %v1796_v34, %v1321_v19  ;;  %v1765_v54 = vsel %vm1754_vm2, %v1732_v30, %v6221_v15  ;;  %v8294_v50 = vld [vmem:[#allocation29_spill] sm:$0xff]  ;;  %v567_v34 = vld [vmem:[#allocation2 + $0x1a0] sm:$0xff] }
 0x20d   : > { %1358 = vrot.lane.b32.xlu1 %v563_v0, %s5224_s9  ;;  %v1798_v47 = vsel %vm1787_vm6, %v1765_v54, %v6323_v7  ;;  %v1667_v56 = vsel %vm222_vm0, %v5122_v27, %v8294_v50  ;;  %v629_v7 = vld [vmem:[#allocation2 + $0x18a] sm:$0xff]  ;;  %v8304_v54 = vld [vmem:[#allocation75_spill] sm:$0xff] }
 0x20e   : > { %v1700_v15 = vsel %vm1688_vm4, %v1667_v56, %v5968_v26  ;;  %v8306_v27 = vld [vmem:[#allocation100_spill] sm:$0xff] }
 0x20f   : > { %v1575_v46 = vpop.permute.xlu1 %1574  ;;  %v1449_v21 = vpop.permute.xlu0 %1448  ;;  %1232 = vrot.lane.b32.xlu0 %v626_v51, %s5223_s14  ;;  %v1733_v19 = vsel %vm1721_vm5, %v1700_v15, %v6094_v5  ;;  %v8307_v15 = vld [vmem:[#allocation36_spill] sm:$0xff] }
 0x210   : > { %v1894_v12 = vsel %vm1886_vm9, %v1861_v37, %v1575_v46  ;;  %v1862_v13 = vsel %vm1853_vm8, %v1829_v11, %v1449_v21  ;;  %v5123_v37 = vld [vmem:[#allocation2 + $0x90] sm:$0xff]  ;;  %v8295_v46 = vld [vmem:[#allocation27_spill] sm:$0xff] }
 0x211   : > { %1486 = vrot.lane.b32.xlu1 %v595_v16, %s5225_s10  ;;  %4443 = vmatmul.mubr.msk.f32.gmra.mxu0 %vm1931_vm10, %v1894_v12  ;;  %v1766_v16 = vsel %vm1754_vm2, %v1733_v19, %v6232_v23  ;;  %v1668_v5 = vsel %vm222_vm0, %v5123_v37, %v8295_v46  ;;  %v8310_v37 = vld [vmem:[#allocation14_spill] sm:$0xff] }
 0x212   : > { %v1799_v63 = vsel %vm1787_vm6, %v1766_v16, %v6333_v10  ;;  %v1701_v23 = vsel %vm1688_vm4, %v1668_v5, %v5962_v35  ;;  %v598_v10 = vld [vmem:[#allocation2 + $0x199] sm:$0xff]  ;;  %v8311_v5 = vld [vmem:[#allocation103_spill] sm:$0xff] }
 0x213   : > { %v1323_v62 = vpop.permute.xlu1 %1322  ;;  %v1577_v24 = vpop.permute.xlu0 %1576  ;;  %1360 = vrot.lane.b32.xlu0 %v564_v61, %s5224_s9  ;;  %v1734_v21 = vsel %vm1721_vm5, %v1701_v23, %v6088_v3  ;;  %v630_v61 = vld [vmem:[#allocation2 + $0x19a] sm:$0xff]  ;;  %v8296_v3 = vld [vmem:[#allocation33_spill] sm:$0xff] }
 0x214   : > { %v1895_v38 = vsel %vm1886_vm9, %v1862_v13, %v1577_v24  ;;  %v1830_v25 = vsel %vm1820_vm7, %v1797_v41, %v1323_v62  ;;  %v1669_v53 = vsel %vm222_vm0, %v5124_v29, %v8296_v3  ;;  %v8300_v41 = vld [vmem:[#allocation101_spill] sm:$0xff]  ;;  %v8315_v3 = vld [vmem:[#allocation20_spill] sm:$0xff] }
 0x215   : > { %1614 = vrot.lane.b32.xlu1 %v627_v4, %s5226_s11  ;;  %4445 = vmatprep.mubr.msk.f32.mxu0 %vm1931_vm10, %v1895_v38  ;;  %v8298_v38 = vld [vmem:[#allocation76_spill] sm:$0xff] }
 0x217   : > { %v1451_v31 = vpop.permute.xlu1 %1450  ;;  %v1325_v17 = vpop.permute.xlu0 %1324  ;;  %1488 = vrot.lane.b32.xlu0 %v596_v22, %s5225_s10 }
 0x218   : > { %v1863_v6 = vsel %vm1853_vm8, %v1830_v25, %v1451_v31  ;;  %v1831_v0 = vsel %vm1820_vm7, %v1798_v47, %v1325_v17 }
 0x219   : > { %1234 = vrot.lane.b32.xlu1 %v627_v4, %s5223_s14  ;;  %v1767_v4 = vsel %vm1754_vm2, %v1734_v21, %v6227_v44  ;;  %v8297_v44 = vld [vmem:[#allocation57_spill] sm:$0xff] }
 0x21a   : > { %v1800_v62 = vsel %vm1787_vm6, %v1767_v4, %v6329_v33  ;;  %v1702_v24 = vsel %vm1688_vm4, %v1669_v53, %v8297_v44 }
 0x21b   : > { %v1579_v32 = vpop.permute.xlu1 %1578  ;;  %v1453_v58 = vpop.permute.xlu0 %1452  ;;  %1616 = vrot.lane.b32.xlu0 %v628_v59, %s5226_s11  ;;  %v1735_v9 = vsel %vm1721_vm5, %v1702_v24, %v8298_v38  ;;  %v2409_v24 = vld [vmem:[#allocation3 + $0x1] sm:$0xff] }
 0x21c   : > { %v1896_v43 = vsel %vm1886_vm9, %v1863_v6, %v1579_v32  ;;  %v1864_v45 = vsel %vm1853_vm8, %v1831_v0, %v1453_v58  ;;  %v1768_v22 = vsel %vm1754_vm2, %v1735_v9, %v8299_v28  ;;  %v8302_v6 = vld [vmem:[#allocation31_spill] sm:$0xff] }
 0x21d   : > { %1362 = vrot.lane.b32.xlu1 %v565_v60, %s5224_s9  ;;  %4446 = vmatmul.mubr.msk.f32.gmra.mxu0 %vm1931_vm10, %v1896_v43  ;;  %v1801_v17 = vsel %vm1787_vm6, %v1768_v22, %v8300_v41  ;;  %v8301_v60 = vmov 0.0   ;;  %v1670_v32 = vsel %vm222_vm0, %v5125_v8, %v8302_v6  ;;  %v5128_v9 = vld [vmem:[#allocation2 + $0xc8] sm:$0xff] }
 0x21e   : > { %2295 = vst.msk [vmem:[#allocation3 + $0x28] sm:$0x3] %vm2291_vm11, %v8301_v60  ;;  %2292 = vst.msk [vmem:[#allocation3 + $0x10] sm:$0x3] %vm2291_vm11, %v8301_v60 }
 0x21f   : > { %v1327_v39 = vpop.permute.xlu1 %1326  ;;  %v1581_v51 = vpop.permute.xlu0 %1580  ;;  %1236 = vrot.lane.b32.xlu0 %v628_v59, %s5223_s14  ;;  %2298 = vst.msk [vmem:[#allocation3 + $0x40] sm:$0x3] %vm2291_vm11, %v8301_v60  ;;  %2301 = vst.msk [vmem:[#allocation3 + $0x58] sm:$0x3] %vm2291_vm11, %v8301_v60  ;;  %v8303_v59 = vld [vmem:[#allocation56_spill] sm:$0xff] }
 0x220   : > { %v1897_v42 = vsel %vm1886_vm9, %v1864_v45, %v1581_v51  ;;  %v1832_v26 = vsel %vm1820_vm7, %v1799_v63, %v1327_v39  ;;  %2304 = vst.msk [vmem:[#allocation3 + $0x70] sm:$0x3] %vm2291_vm11, %v8301_v60  ;;  %2307 = vst.msk [vmem:[#allocation3 + $0x88] sm:$0x3] %vm2291_vm11, %v8301_v60  ;;  %v1703_v30 = vsel %vm1688_vm4, %v1670_v32, %v8303_v59  ;;  %v8305_v39 = vld [vmem:[#allocation9_spill] sm:$0xff]  ;;  %v8309_v63 = vld [vmem:[#allocation78_spill] sm:$0xff] }
 0x221   : > { %1490 = vrot.lane.b32.xlu1 %v597_v49, %s5225_s10  ;;  %4448 = vmatprep.mubr.msk.f32.mxu0 %vm1931_vm10, %v1897_v42  ;;  %2310 = vst.msk [vmem:[#allocation3 + $0xa0] sm:$0x3] %vm2291_vm11, %v8301_v60  ;;  %2313 = vst.msk [vmem:[#allocation3 + $0xb8] sm:$0x3] %vm2291_vm11, %v8301_v60  ;;  %v1736_v49 = vsel %vm1721_vm5, %v1703_v30, %v8304_v54  ;;  %v5126_v51 = vld [vmem:[#allocation2 + $0xb0] sm:$0xff]  ;;  %v5129_v54 = vld [vmem:[#allocation2 + $0xd8] sm:$0xff] }
 0x222   : > { %2316 = vst.msk [vmem:[#allocation3 + $0xd0] sm:$0x3] %vm2291_vm11, %v8301_v60  ;;  %2319 = vst.msk [vmem:[#allocation3 + $0xe8] sm:$0x3] %vm2291_vm11, %v8301_v60  ;;  %v1769_v0 = vsel %vm1754_vm2, %v1736_v49, %v8305_v39  ;;  %v1671_v42 = vsel %vm222_vm0, %v5126_v51, %v8307_v15  ;;  %v8320_v32 = vld [vmem:[#allocation24_spill] sm:$0xff]  ;;  %v8322_v49 = vld [vmem:[#allocation38_spill] sm:$0xff] }
 0x223   : > { %v1455_v1 = vpop.permute.xlu1 %1454  ;;  %v1329_v40 = vpop.permute.xlu0 %1328  ;;  %1364 = vrot.lane.b32.xlu0 %v566_v55, %s5224_s9  ;;  %2322 = vst.msk [vmem:[#allocation3 + $0x100] sm:$0x3] %vm2291_vm11, %v8301_v60  ;;  %2325 = vst.msk [vmem:[#allocation3 + $0x118] sm:$0x3] %vm2291_vm11, %v8301_v60  ;;  %v1802_v50 = vsel %vm1787_vm6, %v1769_v0, %v8306_v27  ;;  %v8323_v27 = vld [vmem:[#allocation60_spill] sm:$0xff] }
 0x224   : > { %v1865_v18 = vsel %vm1853_vm8, %v1832_v26, %v1455_v1  ;;  %v1833_v11 = vsel %vm1820_vm7, %v1800_v62, %v1329_v40  ;;  %2328 = vst.msk [vmem:[#allocation3 + $0x130] sm:$0x3] %vm2291_vm11, %v8301_v60  ;;  %2331 = vst.msk [vmem:[#allocation3 + $0x148] sm:$0x3] %vm2291_vm11, %v8301_v60  ;;  %v8308_v1 = vld [vmem:[#allocation59_spill] sm:$0xff] }
 0x225   : > { %1618 = vrot.lane.b32.xlu1 %v629_v7, %s5226_s11  ;;  %2334 = vst.msk [vmem:[#allocation3 + $0x160] sm:$0x3] %vm2291_vm11, %v8301_v60  ;;  %2337 = vst.msk [vmem:[#allocation3 + $0x178] sm:$0x3] %vm2291_vm11, %v8301_v60  ;;  %v1704_v16 = vsel %vm1688_vm4, %v1671_v42, %v8308_v1  ;;  %v8325_v42 = vld [vmem:[#allocation26_spill] sm:$0xff] }
 0x226   : > { %2340 = vst.msk [vmem:[#allocation3 + $0x190] sm:$0x3] %vm2291_vm11, %v8301_v60  ;;  %2343 = vst.msk [vmem:[#allocation3 + $0x1a8] sm:$0x3] %vm2291_vm11, %v8301_v60  ;;  %v1737_v40 = vsel %vm1721_vm5, %v1704_v16, %v8309_v63  ;;  %v5130_v63 = vld [vmem:[#allocation2 + $0xe0] sm:$0xff] }
 0x227   : > { %v1583_v12 = vpop.permute.xlu1 %1582  ;;  %v1457_v14 = vpop.permute.xlu0 %1456  ;;  %1492 = vrot.lane.b32.xlu0 %v598_v10, %s5225_s10  ;;  %v1770_v46 = vsel %vm1754_vm2, %v1737_v40, %v8310_v37  ;;  %v8312_v10 = vld [vmem:[#allocation35_spill] sm:$0xff]  ;;  %v8327_v40 = vld [vmem:[#allocation42_spill] sm:$0xff] }
 0x228   : > { %v1898_v52 = vsel %vm1886_vm9, %v1865_v18, %v1583_v12  ;;  %v1866_v57 = vsel %vm1853_vm8, %v1833_v11, %v1457_v14  ;;  %v1803_v18 = vsel %vm1787_vm6, %v1770_v46, %v8311_v5  ;;  %v8314_v11 = vld [vmem:[#allocation77_spill] sm:$0xff]  ;;  %v8328_v5 = vld [vmem:[#allocation63_spill] sm:$0xff] }
 0x229   : > { %1238 = vrot.lane.b32.xlu1 %v629_v7, %s5223_s14  ;;  %4449 = vmatmul.mubr.msk.f32.gmra.mxu0 %vm1931_vm10, %v1898_v52  ;;  %v5127_v52 = vld [vmem:[#allocation2 + $0xc0] sm:$0xff]  ;;  %s4382_s14 = sshll.u32 %s5284_s22, 4 }
 0x22a   : > { %v1672_v21 = vsel %vm222_vm0, %v5127_v52, %v8312_v10  ;;  %s4252_s25 = scalar_lea.hbm %s8117_s5, %s4382_s14 }
 0x22b   : > { %v1331_v35 = vpop.permute.xlu1 %1330  ;;  %v1585_v13 = vpop.permute.xlu0 %1584  ;;  %1620 = vrot.lane.b32.xlu0 %v630_v61, %s5226_s11 }
 0x22c   : > { %v1899_v33 = vsel %vm1886_vm9, %v1866_v57, %v1585_v13  ;;  %v1834_v36 = vsel %vm1820_vm7, %v1801_v17, %v1331_v35  ;;  %v8316_v57 = vld [vmem:[#allocation102_spill] sm:$0xff]  ;;  %v8318_v17 = vld [vmem:[#allocation61_spill] sm:$0xff] }
 0x22d   : > { %1366 = vrot.lane.b32.xlu1 %v567_v34, %s5224_s9  ;;  %4451 = vmatprep.mubr.msk.f32.mxu0 %vm1931_vm10, %v1899_v33  ;;  %v8313_v34 = vld [vmem:[#allocation58_spill] sm:$0xff] }
 0x22e   : > { %v1705_v62 = vsel %vm1688_vm4, %v1672_v21, %v8313_v34  ;;  %v2410_v33 = vld [vmem:[#allocation3 + $0x9] sm:$0xff]  ;;  %v8330_v21 = vld [vmem:[#allocation28_spill] sm:$0xff] }
 0x22f   : > { %v1459_v31 = vpop.permute.xlu1 %1458  ;;  %v1333_v25 = vpop.permute.xlu0 %1332  ;;  %v1738_v61 = vsel %vm1721_vm5, %v1705_v62, %v8314_v11  ;;  %v4570_v38 = vpack.i.bf16 %v2410_v33, %v2409_v24  ;;  %v5131_v11 = vld [vmem:[#allocation2 + $0xf0] sm:$0xff] }
 0x230   : > { %v1867_v20 = vsel %vm1853_vm8, %v1834_v36, %v1459_v31  ;;  %v1835_v45 = vsel %vm1820_vm7, %v1802_v50, %v1333_v25  ;;  %v1771_v53 = vsel %vm1754_vm2, %v1738_v61, %v8315_v3  ;;  %v8317_v31 = vld [vmem:[#allocation39_spill] sm:$0xff]  ;;  %v8332_v61 = vld [vmem:[#allocation41_spill] sm:$0xff] }
 0x231   : > { %1494 = vrot.lane.b32.xlu1 %v599_v48, %s5225_s10  ;;  %v1804_v13 = vsel %vm1787_vm6, %v1771_v53, %v8316_v57  ;;  %v1673_v28 = vsel %vm222_vm0, %v5128_v9, %v8317_v31  ;;  %4571 = vrot.lane.b32.xlu0 %v4570_v38, %s5222_s13  ;;  %v8333_v57 = vld [vmem:[#allocation62_spill] sm:$0xff]  ;;  %v8334_v24 = vld [vmem:[#allocation81_spill] sm:$0xff] }
 0x232   : > { %v1706_v25 = vsel %vm1688_vm4, %v1673_v28, %v8318_v17  ;;  %v8335_v38 = vld [vmem:[#allocation30_spill] sm:$0xff] }
 0x233   : > { %v1587_v43 = vpop.permute.xlu1 %1586  ;;  %v1461_v47 = vpop.permute.xlu0 %1460  ;;  %v8336_v31 = vld [vmem:[#allocation106_spill] sm:$0xff] }
 0x234   : > { %v1900_v58 = vsel %vm1886_vm9, %v1867_v20, %v1587_v43  ;;  %v1868_v7 = vsel %vm1853_vm8, %v1835_v45, %v1461_v47  ;;  %v8321_v43 = vld [vmem:[#allocation105_spill] sm:$0xff]  ;;  %v1674_v47 = vsel %vm222_vm0, %v5129_v54, %v8322_v49  ;;  %v8324_v45 = vld [vmem:[#allocation79_spill] sm:$0xff] }
 0x235   : > { %1622 = vrot.lane.b32.xlu1 %v631_v2, %s5226_s11  ;;  %4452 = vmatmul.mubr.msk.f32.gmra.mxu0 %vm1931_vm10, %v1900_v58  ;;  %v8319_v2 = vld [vmem:[#allocation80_spill] sm:$0xff]  ;;  %v1707_v50 = vsel %vm1688_vm4, %v1674_v47, %v8323_v27  ;;  %v5132_v17 = vld [vmem:[#allocation2 + $0xf8] sm:$0xff] }
 0x236   : > { %v1739_v8 = vsel %vm1721_vm5, %v1706_v25, %v8319_v2  ;;  %v1740_v51 = vsel %vm1721_vm5, %v1707_v50, %v8324_v45  ;;  %v8337_v25 = vld [vmem:[#allocation44_spill] sm:$0xff]  ;;  %v8341_v49 = vld [vmem:[#allocation109_spill] sm:$0xff]  ;;  %v8342_v50 = vld [vmem:[#allocation43_spill] sm:$0xff] }
 0x237   : > { %v1335_v56 = vpop.permute.xlu1 %1334  ;;  %v1589_v19 = vpop.permute.xlu0 %1588  ;;  %v1772_v20 = vsel %vm1754_vm2, %v1739_v8, %v8320_v32  ;;  %v5133_v27 = vld [vmem:[#allocation2 + $0x108] sm:$0xff] }
 0x238   : > { %v1901_v55 = vsel %vm1886_vm9, %v1868_v7, %v1589_v19  ;;  %v1836_v23 = vsel %vm1820_vm7, %v1803_v18, %v1335_v56  ;;  %v1805_v59 = vsel %vm1787_vm6, %v1772_v20, %v8321_v43  ;;  %v1773_v7 = vsel %vm1754_vm2, %v1740_v51, %v8325_v42  ;;  %v8326_v19 = vld [vmem:[#allocation104_spill] sm:$0xff] }
 0x239   : > { %4454 = vmatprep.mubr.msk.f32.mxu0 %vm1931_vm10, %v1901_v55  ;;  %v1806_v1 = vsel %vm1787_vm6, %v1773_v7, %v8326_v19  ;;  %v8339_v43 = vld [vmem:[#allocation84_spill] sm:$0xff]  ;;  %v8344_v19 = vld [vmem:[#allocation83_spill] sm:$0xff] }
 0x23b   : > { %v1463_v26 = vpop.permute.xlu1 %1462  ;;  %v1337_v12 = vpop.permute.xlu0 %1336 }
 0x23c   : > { %v1869_v14 = vsel %vm1853_vm8, %v1836_v23, %v1463_v26  ;;  %v1837_v48 = vsel %vm1820_vm7, %v1804_v13, %v1337_v12  ;;  %v1675_v26 = vsel %vm222_vm0, %v5130_v63, %v8327_v40  ;;  %v8329_v23 = vld [vmem:[#allocation82_spill] sm:$0xff]  ;;  %v8346_v40 = vld [vmem:[#allocation108_spill] sm:$0xff] }
 0x23d   : > { %v1708_v18 = vsel %vm1688_vm4, %v1675_v26, %v8328_v5  ;;  %v5134_v5 = vld [vmem:[#allocation2 + $0x110] sm:$0xff] }
 0x23e   : > { %v1741_v52 = vsel %vm1721_vm5, %v1708_v18, %v8329_v23  ;;  %v8347_v18 = vld [vmem:[#allocation46_spill] sm:$0xff] }
 0x23f   : > { %v1591_v4 = vpop.permute.xlu1 %1590  ;;  %v1465_v29 = vpop.permute.xlu0 %1464 }
 0x240   : > { %v1902_v35 = vsel %vm1886_vm9, %v1869_v14, %v1591_v4  ;;  %v1870_v22 = vsel %vm1853_vm8, %v1837_v48, %v1465_v29  ;;  %v1774_v14 = vsel %vm1754_vm2, %v1741_v52, %v8330_v21  ;;  %v8331_v4 = vld [vmem:[#allocation107_spill] sm:$0xff]  ;;  %v1676_v29 = vsel %vm222_vm0, %v5131_v11, %v8332_v61 }
 0x241   : > { %4455 = vmatmul.mubr.msk.f32.gmra.mxu0 %vm1931_vm10, %v1902_v35  ;;  %v1807_v34 = vsel %vm1787_vm6, %v1774_v14, %v8331_v4  ;;  %v1709_v13 = vsel %vm1688_vm4, %v1676_v29, %v8333_v57  ;;  %v8349_v4 = vld [vmem:[#allocation86_spill] sm:$0xff]  ;;  %v8351_v61 = vld [vmem:[#allocation111_spill] sm:$0xff] }
 0x242   : > { %v1742_v33 = vsel %vm1721_vm5, %v1709_v13, %v8334_v24  ;;  %v5135_v57 = vld [vmem:[#allocation2 + $0x120] sm:$0xff]  ;;  %v8352_v13 = vld [vmem:[#allocation45_spill] sm:$0xff] }
 0x243   : > { %v1339_v44 = vpop.permute.xlu1 %1338  ;;  %v1593_v41 = vpop.permute.xlu0 %1592  ;;  %v1775_v9 = vsel %vm1754_vm2, %v1742_v33, %v8335_v38 }
 0x244   : > { %v1903_v36 = vsel %vm1886_vm9, %v1870_v22, %v1593_v41  ;;  %v1838_v58 = vsel %vm1820_vm7, %v1805_v59, %v1339_v44  ;;  %v1808_v28 = vsel %vm1787_vm6, %v1775_v9, %v8336_v31  ;;  %v8354_v31 = vld [vmem:[#allocation85_spill] sm:$0xff] }
 0x245   : > { %4457 = vmatprep.mubr.msk.f32.mxu0 %vm1931_vm10, %v1903_v36  ;;  %v1677_v36 = vsel %vm222_vm0, %v5132_v17, %v8337_v25  ;;  %v8356_v25 = vld [vmem:[#allocation110_spill] sm:$0xff] }
 0x247   : > { %v1467_v6 = vpop.permute.xlu1 %1466  ;;  %v1341_v30 = vpop.permute.xlu0 %1340 }
 0x248   : > { %v1871_v39 = vsel %vm1853_vm8, %v1838_v58, %v1467_v6  ;;  %v1839_v55 = vsel %vm1820_vm7, %v1806_v1, %v1341_v30  ;;  %v8338_v6 = vld [vmem:[#allocation65_spill] sm:$0xff]  ;;  %v8340_v58 = vld [vmem:[#allocation32_spill] sm:$0xff] }
 0x249   : > { %v1710_v32 = vsel %vm1688_vm4, %v1677_v36, %v8338_v6  ;;  %v5136_v6 = vld [vmem:[#allocation2 + $0x128] sm:$0xff] }
 0x24a   : > { %v1743_v59 = vsel %vm1721_vm5, %v1710_v32, %v8339_v43  ;;  %v8357_v32 = vld [vmem:[#allocation48_spill] sm:$0xff] }
 0x24b   : > { %v1595_v0 = vpop.permute.xlu1 %1594  ;;  %v1469_v15 = vpop.permute.xlu0 %1468  ;;  %v1776_v54 = vsel %vm1754_vm2, %v1743_v59, %v8340_v58 }
 0x24c   : > { %v1904_v56 = vsel %vm1886_vm9, %v1871_v39, %v1595_v0  ;;  %v1872_v37 = vsel %vm1853_vm8, %v1839_v55, %v1469_v15  ;;  %v1809_v47 = vsel %vm1787_vm6, %v1776_v54, %v8341_v49  ;;  %v8343_v15 = vld [vmem:[#allocation64_spill] sm:$0xff]  ;;  %v8345_v55 = vld [vmem:[#allocation34_spill] sm:$0xff] }
 0x24d   : > { %4458 = vmatmul.mubr.msk.f32.gmra.mxu0 %vm1931_vm10, %v1904_v56  ;;  %v1678_v56 = vsel %vm222_vm0, %v5133_v27, %v8342_v50  ;;  %v8359_v49 = vld [vmem:[#allocation88_spill] sm:$0xff]  ;;  %v8361_v50 = vld [vmem:[#allocation113_spill] sm:$0xff] }
 0x24e   : > { %v1711_v42 = vsel %vm1688_vm4, %v1678_v56, %v8343_v15  ;;  %v5137_v15 = vld [vmem:[#allocation2 + $0x138] sm:$0xff] }
 0x24f   : > { %v1343_v16 = vpop.permute.xlu1 %1342  ;;  %v1597_v46 = vpop.permute.xlu0 %1596  ;;  %v1744_v1 = vsel %vm1721_vm5, %v1711_v42, %v8344_v19  ;;  %v8362_v42 = vld [vmem:[#allocation47_spill] sm:$0xff] }
 0x250   : > { %v1905_v12 = vsel %vm1886_vm9, %v1872_v37, %v1597_v46  ;;  %v1840_v35 = vsel %vm1820_vm7, %v1807_v34, %v1343_v16  ;;  %v1777_v63 = vsel %vm1754_vm2, %v1744_v1, %v8345_v55 }
 0x251   : > { %4460 = vmatprep.mubr.msk.f32.mxu0 %vm1931_vm10, %v1905_v12  ;;  %v1810_v26 = vsel %vm1787_vm6, %v1777_v63, %v8346_v40  ;;  %v1679_v12 = vsel %vm222_vm0, %v5134_v5, %v8347_v18  ;;  %v8364_v40 = vld [vmem:[#allocation87_spill] sm:$0xff]  ;;  %v8366_v18 = vld [vmem:[#allocation112_spill] sm:$0xff] }
 0x253   : > { %v1471_v10 = vpop.permute.xlu1 %1470  ;;  %v1345_v62 = vpop.permute.xlu0 %1344 }
 0x254   : > { %v1873_v3 = vsel %vm1853_vm8, %v1840_v35, %v1471_v10  ;;  %v1841_v41 = vsel %vm1820_vm7, %v1808_v28, %v1345_v62  ;;  %v8348_v10 = vld [vmem:[#allocation67_spill] sm:$0xff]  ;;  %v8350_v35 = vld [vmem:[#allocation37_spill] sm:$0xff] }
 0x255   : > { %v1712_v21 = vsel %vm1688_vm4, %v1679_v12, %v8348_v10  ;;  %v5138_v10 = vld [vmem:[#allocation2 + $0x140] sm:$0xff] }
 0x256   : > { %v1745_v34 = vsel %vm1721_vm5, %v1712_v21, %v8349_v4  ;;  %v8367_v21 = vld [vmem:[#allocation50_spill] sm:$0xff] }
 0x257   : > { %v1599_v53 = vpop.permute.xlu1 %1598  ;;  %v1473_v48 = vpop.permute.xlu0 %1472  ;;  %v1778_v11 = vsel %vm1754_vm2, %v1745_v34, %v8350_v35 }
 0x258   : > { %v1906_v44 = vsel %vm1886_vm9, %v1873_v3, %v1599_v53  ;;  %v1874_v2 = vsel %vm1853_vm8, %v1841_v41, %v1473_v48  ;;  %v1811_v29 = vsel %vm1787_vm6, %v1778_v11, %v8351_v61  ;;  %v8353_v48 = vld [vmem:[#allocation66_spill] sm:$0xff]  ;;  %v8355_v41 = vld [vmem:[#allocation93_spill] sm:$0xff] }
 0x259   : > { %4461 = vmatmul.mubr.msk.f32.gmra.mxu0 %vm1931_vm10, %v1906_v44  ;;  %v1680_v44 = vsel %vm222_vm0, %v5135_v57, %v8352_v13  ;;  %v8369_v61 = vld [vmem:[#allocation90_spill] sm:$0xff]  ;;  %v8371_v13 = vld [vmem:[#allocation7_spill] sm:$0xff] }
 0x25a   : > { %v1713_v38 = vsel %vm1688_vm4, %v1680_v44, %v8353_v48 }
 0x25b   : > { %v1347_v22 = vpop.permute.xlu1 %1346  ;;  %v1601_v8 = vpop.permute.xlu0 %1600  ;;  %v1746_v28 = vsel %vm1721_vm5, %v1713_v38, %v8354_v31 }
 0x25c   : > { %v1907_v20 = vsel %vm1886_vm9, %v1874_v2, %v1601_v8  ;;  %v1842_v0 = vsel %vm1820_vm7, %v1809_v47, %v1347_v22  ;;  %v1779_v17 = vsel %vm1754_vm2, %v1746_v28, %v8355_v41  ;;  %v5139_v28 = vld [vmem:[#allocation2 + $0x150] sm:$0xff] }
 0x25d   : > { %4463 = vmatprep.mubr.msk.f32.mxu0 %vm1931_vm10, %v1907_v20  ;;  %v1812_v36 = vsel %vm1787_vm6, %v1779_v17, %v8356_v25  ;;  %v1681_v20 = vsel %vm222_vm0, %v5136_v6, %v8357_v32  ;;  %v8373_v25 = vld [vmem:[#allocation70_spill] sm:$0xff]  ;;  %v8375_v32 = vld [vmem:[#allocation96_spill] sm:$0xff] }
 0x25f   : > { %v1475_v30 = vpop.permute.xlu1 %1474  ;;  %v1349_v39 = vpop.permute.xlu0 %1348 }
 0x260   : > { %v1875_v45 = vsel %vm1853_vm8, %v1842_v0, %v1475_v30  ;;  %v1843_v46 = vsel %vm1820_vm7, %v1810_v26, %v1349_v39  ;;  %v8358_v30 = vld [vmem:[#allocation69_spill] sm:$0xff]  ;;  %v8360_v0 = vld [vmem:[#allocation95_spill] sm:$0xff] }
 0x261   : > { %v1714_v58 = vsel %vm1688_vm4, %v1681_v20, %v8358_v30 }
 0x262   : > { %v1747_v47 = vsel %vm1721_vm5, %v1714_v58, %v8359_v49  ;;  %v5140_v58 = vld [vmem:[#allocation2 + $0x158] sm:$0xff] }
 0x263   : > { %v1603_v51 = vpop.permute.xlu1 %1602  ;;  %v1477_v16 = vpop.permute.xlu0 %1476  ;;  %v1780_v27 = vsel %vm1754_vm2, %v1747_v47, %v8360_v0  ;;  %v8377_v0 = vld [vmem:[#allocation73_spill] sm:$0xff] }
 0x264   : > { %v1908_v7 = vsel %vm1886_vm9, %v1875_v45, %v1603_v51  ;;  %v1876_v23 = vsel %vm1853_vm8, %v1843_v46, %v1477_v16  ;;  %v1813_v56 = vsel %vm1787_vm6, %v1780_v27, %v8361_v50  ;;  %v8363_v16 = vld [vmem:[#allocation68_spill] sm:$0xff]  ;;  %v8365_v46 = vld [vmem:[#allocation94_spill] sm:$0xff] }
 0x265   : > { %4464 = vmatmul.mubr.msk.f32.gmra.mxu0 %vm1931_vm10, %v1908_v7  ;;  %v1682_v7 = vsel %vm222_vm0, %v5137_v15, %v8362_v42  ;;  %v8379_v15 = vld [vmem:[#allocation40_spill] sm:$0xff] }
 0x266   : > { %v1715_v55 = vsel %vm1688_vm4, %v1682_v7, %v8363_v16 }
 0x267   : > { %v1351_v37 = vpop.permute.xlu1 %1350  ;;  %v1605_v52 = vpop.permute.xlu0 %1604  ;;  %v1748_v26 = vsel %vm1721_vm5, %v1715_v55, %v8364_v40 }
 0x268   : > { %v1909_v14 = vsel %vm1886_vm9, %v1876_v23, %v1605_v52  ;;  %v1844_v53 = vsel %vm1820_vm7, %v1811_v29, %v1351_v37  ;;  %v1781_v5 = vsel %vm1754_vm2, %v1748_v26, %v8365_v46  ;;  %v5141_v26 = vld [vmem:[#allocation2 + $0x168] sm:$0xff] }
 0x269   : > { %4466 = vmatprep.mubr.msk.f32.mxu0 %vm1931_vm10, %v1909_v14  ;;  %v1814_v12 = vsel %vm1787_vm6, %v1781_v5, %v8366_v18  ;;  %v1683_v14 = vsel %vm222_vm0, %v5138_v10, %v8367_v21  ;;  %v8381_v18 = vld [vmem:[#allocation72_spill] sm:$0xff]  ;;  %v8383_v21 = vld [vmem:[#allocation98_spill] sm:$0xff] }
 0x26b   : > { %v1479_v62 = vpop.permute.xlu1 %1478  ;;  %v1353_v3 = vpop.permute.xlu0 %1352 }
 0x26c   : > { %v1877_v24 = vsel %vm1853_vm8, %v1844_v53, %v1479_v62  ;;  %v1845_v8 = vsel %vm1820_vm7, %v1812_v36, %v1353_v3  ;;  %v8368_v62 = vld [vmem:[#allocation71_spill] sm:$0xff]  ;;  %v8370_v53 = vld [vmem:[#allocation97_spill] sm:$0xff] }
 0x26d   : > { %v1716_v35 = vsel %vm1688_vm4, %v1683_v14, %v8368_v62 }
 0x26e   : > { %v1749_v29 = vsel %vm1721_vm5, %v1716_v35, %v8369_v61  ;;  %v5142_v35 = vld [vmem:[#allocation2 + $0x170] sm:$0xff] }
 0x26f   : > { %v1607_v33 = vpop.permute.xlu1 %1606  ;;  %v1481_v22 = vpop.permute.xlu0 %1480  ;;  %v1782_v57 = vsel %vm1754_vm2, %v1749_v29, %v8370_v53  ;;  %v8385_v53 = vld [vmem:[#allocation74_spill] sm:$0xff] }
 0x270   : > { %v1910_v9 = vsel %vm1886_vm9, %v1877_v24, %v1607_v33  ;;  %v1878_v43 = vsel %vm1853_vm8, %v1845_v8, %v1481_v22  ;;  %v1815_v44 = vsel %vm1787_vm6, %v1782_v57, %v8371_v13  ;;  %v8372_v22 = vld [vmem:[#allocation49_spill] sm:$0xff] }
 0x271   : > { %4467 = vmatmul.mubr.msk.f32.gmra.mxu0 %vm1931_vm10, %v1910_v9  ;;  %v1684_v41 = vsel %vm222_vm0, %v5139_v28, %v8372_v22 }
 0x272   : > { %v1717_v36 = vsel %vm1688_vm4, %v1684_v41, %v8373_v25 }
 0x273   : > { %v1355_v2 = vpop.permute.xlu1 %1354  ;;  %v1609_v59 = vpop.permute.xlu0 %1608 }
 0x274   : > { %v1911_v54 = vsel %vm1886_vm9, %v1878_v43, %v1609_v59  ;;  %v1846_v51 = vsel %vm1820_vm7, %v1813_v56, %v1355_v2  ;;  %v8374_v2 = vld [vmem:[#allocation89_spill] sm:$0xff]  ;;  %v8378_v56 = vld [vmem:[#allocation92_spill] sm:$0xff] }
 0x275   : > { %4469 = vmatprep.mubr.msk.f32.mxu0 %vm1931_vm10, %v1911_v54  ;;  %v1750_v8 = vsel %vm1721_vm5, %v1717_v36, %v8374_v2  ;;  %v8376_v54 = vld [vmem:[#allocation52_spill] sm:$0xff] }
 0x276   : > { %v1783_v20 = vsel %vm1754_vm2, %v1750_v8, %v8375_v32  ;;  %v1685_v49 = vsel %vm222_vm0, %v5140_v58, %v8376_v54 }
 0x277   : > { %v1483_v39 = vpop.permute.xlu1 %1482  ;;  %v1357_v45 = vpop.permute.xlu0 %1356  ;;  %v1718_v27 = vsel %vm1688_vm4, %v1685_v49, %v8377_v0 }
 0x278   : > { %v1879_v19 = vsel %vm1853_vm8, %v1846_v51, %v1483_v39  ;;  %v1847_v52 = vsel %vm1820_vm7, %v1814_v12, %v1357_v45  ;;  %v1751_v45 = vsel %vm1721_vm5, %v1718_v27, %v8378_v56 }
 0x279   : > { %v1784_v42 = vsel %vm1754_vm2, %v1751_v45, %v8379_v15 }
 0x27b   : > { %v1611_v1 = vpop.permute.xlu1 %1610  ;;  %v1485_v37 = vpop.permute.xlu0 %1484 }
 0x27c   : > { %v1912_v63 = vsel %vm1886_vm9, %v1879_v19, %v1611_v1  ;;  %v1880_v4 = vsel %vm1853_vm8, %v1847_v52, %v1485_v37  ;;  %v8380_v37 = vld [vmem:[#allocation51_spill] sm:$0xff] }
 0x27d   : > { %4470 = vmatmul.mubr.msk.f32.gmra.mxu0 %vm1931_vm10, %v1912_v63  ;;  %v1686_v46 = vsel %vm222_vm0, %v5141_v26, %v8380_v37 }
 0x27e   : > { %v1719_v12 = vsel %vm1688_vm4, %v1686_v46, %v8381_v18 }
 0x27f   : > { %v1359_v23 = vpop.permute.xlu1 %1358  ;;  %v1613_v34 = vpop.permute.xlu0 %1612 }
 0x280   : > { %v1913_v11 = vsel %vm1886_vm9, %v1880_v4, %v1613_v34  ;;  %v1848_v33 = vsel %vm1820_vm7, %v1815_v44, %v1359_v23  ;;  %v8382_v23 = vld [vmem:[#allocation91_spill] sm:$0xff]  ;;  %v8386_v44 = vld [vmem:[#allocation8_spill] sm:$0xff] }
 0x281   : > { %4472 = vmatprep.mubr.msk.f32.mxu0 %vm1931_vm10, %v1913_v11  ;;  %v1752_v52 = vsel %vm1721_vm5, %v1719_v12, %v8382_v23  ;;  %v8384_v11 = vld [vmem:[#allocation54_spill] sm:$0xff] }
 0x282   : > { %v1785_v14 = vsel %vm1754_vm2, %v1752_v52, %v8383_v21  ;;  %v1687_v61 = vsel %vm222_vm0, %v5142_v35, %v8384_v11  ;;  %vm3758_vm0 = vcmask 916480  }
 0x283   : > { %v1487_v3 = vpop.permute.xlu1 %1486  ;;  %v1233_v24 = vpop.permute.xlu0 %1232  ;;  %v1720_v57 = vsel %vm1688_vm4, %v1687_v61, %v8385_v53 }
 0x284   : > { %v1881_v48 = vsel %vm1853_vm8, %v1848_v33, %v1487_v3  ;;  %v1816_v43 = vsel %vm1787_vm6, %v1783_v20, %v1233_v24  ;;  %v1753_v24 = vsel %vm1721_vm5, %v1720_v57, %v8386_v44 }
 0x287   : > { %v1615_v38 = vpop.permute.xlu1 %1614  ;;  %v1361_v31 = vpop.permute.xlu0 %1360 }
 0x288   : > { %v1914_v9 = vsel %vm1886_vm9, %v1881_v48, %v1615_v38  ;;  %v1849_v30 = vsel %vm1820_vm7, %v1816_v43, %v1361_v31  ;;  %v8387_v48 = vld [vmem:[#allocation99_spill] sm:$0xff] }
 0x289   : > { %4473 = vmatmul.mubr.msk.f32.gmra.mxu0 %vm1931_vm10, %v1914_v9  ;;  %v1786_v38 = vsel %vm1754_vm2, %v1753_v24, %v8387_v48 }
 0x28b   : > { %v1235_v17 = vpop.permute.xlu1 %1234  ;;  %v1489_v6 = vpop.permute.xlu0 %1488 }
 0x28c   : > { %v1882_v47 = vsel %vm1853_vm8, %v1849_v30, %v1489_v6  ;;  %v1817_v7 = vsel %vm1787_vm6, %v1784_v42, %v1235_v17  ;;  %v6909_v17 = vld [vmem:[%s8114_s2] ss:$0 sm:$0xff] }
 0x28f   : > { %v1363_v59 = vpop.permute.xlu1 %1362  ;;  %v1617_v39 = vpop.permute.xlu0 %1616 }
 0x290   : > { %v1915_v50 = vsel %vm1886_vm9, %v1882_v47, %v1617_v39  ;;  %v1850_v1 = vsel %vm1820_vm7, %v1817_v7, %v1363_v59 }
 0x291   : > { %4475 = vmatprep.mubr.msk.f32.mxu0 %vm1931_vm10, %v1915_v50 }
 0x293   : > { %v1491_v51 = vpop.permute.xlu1 %1490  ;;  %v1237_v19 = vpop.permute.xlu0 %1236 }
 0x294   : > { %v1883_v16 = vsel %vm1853_vm8, %v1850_v1, %v1491_v51  ;;  %v1818_v4 = vsel %vm1787_vm6, %v1785_v14, %v1237_v19 }
 0x297   : > { %v1619_v55 = vpop.permute.xlu1 %1618  ;;  %v1365_v40 = vpop.permute.xlu0 %1364 }
 0x298   : > { %v1916_v63 = vsel %vm1886_vm9, %v1883_v16, %v1619_v55  ;;  %v1851_v62 = vsel %vm1820_vm7, %v1818_v4, %v1365_v40 }
 0x299   : > { %4476 = vmatmul.mubr.msk.f32.gmra.mxu0 %vm1931_vm10, %v1916_v63 }
 0x29b   : > { %v1239_v5 = vpop.permute.xlu1 %1238  ;;  %v1493_v10 = vpop.permute.xlu0 %1492 }
 0x29c   : > { %v1884_v29 = vsel %vm1853_vm8, %v1851_v62, %v1493_v10  ;;  %v1819_v9 = vsel %vm1787_vm6, %v1786_v38, %v1239_v5 }
 0x29f   : > { %v1367_v34 = vpop.permute.xlu1 %1366  ;;  %v1621_v3 = vpop.permute.xlu0 %1620 }
 0x2a0   : > { %v1917_v13 = vsel %vm1886_vm9, %v1884_v29, %v1621_v3  ;;  %v1852_v31 = vsel %vm1820_vm7, %v1819_v9, %v1367_v34 }
 0x2a1   : > { %4478 = vmatprep.mubr.msk.f32.mxu0 %vm1931_vm10, %v1917_v13 }
 0x2a3   : > { %v1495_v33 = vpop.permute.xlu1 %1494 }
 0x2a4   : > { %v1885_v28 = vsel %vm1853_vm8, %v1852_v31, %v1495_v33 }
 0x2a7   : > { %v1623_v22 = vpop.permute.xlu1 %1622 }
 0x2a8   : > { %v1918_v41 = vsel %vm1886_vm9, %v1885_v28, %v1623_v22 }
 0x2a9   : > { %4479 = vmatmul.mubr.msk.f32.gmra.mxu0 %vm1931_vm10, %v1918_v41 }
 0x2ad   : > { %v4435_v25 = vpop.f32.mrf.mxu0 }
 0x2ae   : > { %v2104_v36 = vadd.f32 %v4435_v25, %v6909_v17 }
 0x2af   : > { %v2098_v2 = vpop.f32.mrf.mxu0 }
 0x2b0   : > { %v2258_v8 = vmax.f32 %v2104_v36, 0.0  ;;  %v2099_v6 = vadd.f32 %v6909_v17, %v2098_v2 }
 0x2b2   : > { %2346 = vst.msk [vmem:[#allocation3 + $0x21] sm:$0xff] %vm1754_vm2, %v2258_v8  ;;  %v2257_v32 = vmax.f32 %v2099_v6, 0.0 }
 0x2b4   : > { %2345 = vst.msk [vmem:[#allocation3 + $0x19] sm:$0xff] %vm1754_vm2, %v2257_v32 }
 0x2b9   : > { %v4438_v20 = vpop.f32.mrf.mxu0  ;;  %v6918_v58 = vld [vmem:[#allocation3 + $0x21] sm:$0xff] }
 0x2ba   : > { %v2114_v43 = vadd.f32 %v4438_v20, %v6909_v17 }
 0x2bb   : > { %v2108_v59 = vpop.f32.mrf.mxu0  ;;  %v6916_v30 = vld [vmem:[#allocation3 + $0x19] sm:$0xff] }
 0x2bc   : > { %v2260_v54 = vmax.f32 %v2114_v43, 0.0  ;;  %v2109_v49 = vadd.f32 %v6909_v17, %v2108_v59  ;;  %v4575_v47 = vpack.i.bf16 %v6918_v58, %v6916_v30 }
 0x2be   : > { %2348 = vst.msk [vmem:[#allocation3 + $0x39] sm:$0xff] %vm1754_vm2, %v2260_v54  ;;  %v2259_v39 = vmax.f32 %v2109_v49, 0.0  ;;  %4576 = vrot.lane.b32.xlu1 %v4575_v47, %s5222_s13 }
 0x2c0   : > { %2347 = vst.msk [vmem:[#allocation3 + $0x31] sm:$0xff] %vm1754_vm2, %v2259_v39 }
 0x2c5   : > { %v4441_v0 = vpop.f32.mrf.mxu0  ;;  %v6931_v51 = vld [vmem:[#allocation3 + $0x39] sm:$0xff] }
 0x2c6   : > { %v2124_v27 = vadd.f32 %v4441_v0, %v6909_v17 }
 0x2c7   : > { %v2118_v50 = vpop.f32.mrf.mxu0  ;;  %v6927_v56 = vld [vmem:[#allocation3 + $0x32] sm:$0xff] }
 0x2c8   : > { %v6929_v45 = vld [vmem:[#allocation3 + $0x31] sm:$0xff]  ;;  %v2262_v15 = vmax.f32 %v2124_v27, 0.0  ;;  %v2119_v42 = vadd.f32 %v6909_v17, %v2118_v50  ;;  %4350 = vmatprep.mubr.msk.f32.mxu0 %vm1754_vm2, %v6927_v56 }
 0x2c9   : > { %v4580_v7 = vpack.i.bf16 %v6931_v51, %v6929_v45 }
 0x2ca   : > { %2350 = vst.msk [vmem:[#allocation3 + $0x51] sm:$0xff] %vm1754_vm2, %v2262_v15  ;;  %v2261_v19 = vmax.f32 %v2119_v42, 0.0 }
 0x2cb   : > { %4581 = vrot.lane.b32.xlu0 %v4580_v7, %s5222_s13 }
 0x2cc   : > { %2349 = vst.msk [vmem:[#allocation3 + $0x49] sm:$0xff] %vm1754_vm2, %v2261_v19 }
 0x2d1   : > { %v4444_v1 = vpop.f32.mrf.mxu0  ;;  %v6944_v40 = vld [vmem:[#allocation3 + $0x51] sm:$0xff] }
 0x2d2   : > { %v2134_v16 = vadd.f32 %v4444_v1, %v6909_v17 }
 0x2d3   : > { %v2128_v55 = vpop.f32.mrf.mxu0  ;;  %v6942_v63 = vld [vmem:[#allocation3 + $0x49] sm:$0xff] }
 0x2d4   : > { %v2264_v26 = vmax.f32 %v2134_v16, 0.0  ;;  %v2129_v37 = vadd.f32 %v6909_v17, %v2128_v55  ;;  %v4585_v46 = vpack.i.bf16 %v6944_v40, %v6942_v63 }
 0x2d6   : > { %2352 = vst.msk [vmem:[#allocation3 + $0x69] sm:$0xff] %vm1754_vm2, %v2264_v26  ;;  %v2263_v5 = vmax.f32 %v2129_v37, 0.0  ;;  %4586 = vrot.lane.b32.xlu1 %v4585_v46, %s5222_s13 }
 0x2d8   : > { %2351 = vst.msk [vmem:[#allocation3 + $0x61] sm:$0xff] %vm1754_vm2, %v2263_v5 }
 0x2dd   : > { %v4447_v18 = vpop.f32.mrf.mxu0  ;;  %v6955_v10 = vld [vmem:[#allocation3 + $0x69] sm:$0xff] }
 0x2de   : > { %v2144_v12 = vadd.f32 %v4447_v18, %v6909_v17 }
 0x2df   : > { %v2138_v23 = vpop.f32.mrf.mxu0  ;;  %v6953_v52 = vld [vmem:[#allocation3 + $0x61] sm:$0xff] }
 0x2e0   : > { %v2266_v21 = vmax.f32 %v2144_v12, 0.0  ;;  %v2139_v14 = vadd.f32 %v6909_v17, %v2138_v23  ;;  %v4590_v4 = vpack.i.bf16 %v6955_v10, %v6953_v52 }
 0x2e2   : > { %2354 = vst.msk [vmem:[#allocation3 + $0x81] sm:$0xff] %vm1754_vm2, %v2266_v21  ;;  %v2265_v34 = vmax.f32 %v2139_v14, 0.0  ;;  %4591 = vrot.lane.b32.xlu0 %v4590_v4, %s5222_s13 }
 0x2e4   : > { %2353 = vst.msk [vmem:[#allocation3 + $0x79] sm:$0xff] %vm1754_vm2, %v2265_v34 }
 0x2e9   : > { %v4450_v62 = vpop.f32.mrf.mxu0  ;;  %v6966_v29 = vld [vmem:[#allocation3 + $0x81] sm:$0xff] }
 0x2ea   : > { %v2154_v35 = vadd.f32 %v4450_v62, %v6909_v17 }
 0x2eb   : > { %v2148_v11 = vpop.f32.mrf.mxu0  ;;  %v6964_v61 = vld [vmem:[#allocation3 + $0x79] sm:$0xff] }
 0x2ec   : > { %v2268_v3 = vmax.f32 %v2154_v35, 0.0  ;;  %v2149_v53 = vadd.f32 %v6909_v17, %v2148_v11  ;;  %v4595_v57 = vpack.i.bf16 %v6966_v29, %v6964_v61 }
 0x2ee   : > { %2356 = vst.msk [vmem:[#allocation3 + $0x99] sm:$0xff] %vm1754_vm2, %v2268_v3  ;;  %v2267_v13 = vmax.f32 %v2149_v53, 0.0  ;;  %4596 = vrot.lane.b32.xlu1 %v4595_v57, %s5222_s13 }
 0x2f0   : > { %2355 = vst.msk [vmem:[#allocation3 + $0x91] sm:$0xff] %vm1754_vm2, %v2267_v13 }
 0x2f5   : > { %v4453_v44 = vpop.f32.mrf.mxu0  ;;  %v6974_v24 = vld [vmem:[#allocation3 + $0x99] sm:$0xff] }
 0x2f6   : > { %v2164_v33 = vadd.f32 %v4453_v44, %v6909_v17  ;;  %v4685_v48 = vpack.i.bf16 %v6974_v24, %v6916_v30  ;;  %v3807_v30 = vld [vmem:[%s8115_s3 + $0x80] sm:$0xff] }
 0x2f7   : > { %v2158_v38 = vpop.f32.mrf.mxu0  ;;  %v6979_v9 = vld [vmem:[#allocation3 + $0x91] sm:$0xff] }
 0x2f8   : > { %v2270_v31 = vmax.f32 %v2164_v33, 0.0  ;;  %v2159_v28 = vadd.f32 %v6909_v17, %v2158_v38  ;;  %v4600_v22 = vpack.i.bf16 %v6974_v24, %v6979_v9 }
 0x2fa   : > { %2358 = vst.msk [vmem:[#allocation3 + $0xb1] sm:$0xff] %vm1754_vm2, %v2270_v31  ;;  %v2269_v41 = vmax.f32 %v2159_v28, 0.0  ;;  %4601 = vrot.lane.b32.xlu0 %v4600_v22, %s5222_s13 }
 0x2fc   : > { %2357 = vst.msk [vmem:[#allocation3 + $0xa9] sm:$0xff] %vm1754_vm2, %v2269_v41 }
 0x301   : > { %v4456_v25 = vpop.f32.mrf.mxu0  ;;  %v6987_v36 = vld [vmem:[#allocation3 + $0xb2] sm:$0xff] }
 0x302   : > { %v2424_v2 = vld [vmem:[#allocation3 + $0xb1] sm:$0xff]  ;;  %v2174_v8 = vadd.f32 %v4456_v25, %v6909_v17  ;;  %4361 = vmatprep.mubr.msk.f32.mxu1 %vm1754_vm2, %v6987_v36  ;;  %v4745_v32 = vpack.i.bf16 %v6987_v36, %v6927_v56 }
 0x303   : > { %v6993_v6 = vpack.i.bf16 %v2424_v2, %v6929_v45  ;;  %v2168_v20 = vpop.f32.mrf.mxu0  ;;  %v6997_v43 = vld [vmem:[#allocation3 + $0xa9] sm:$0xff] }
 0x304   : > { %v2272_v59 = vmax.f32 %v2174_v8, 0.0  ;;  %v2169_v54 = vadd.f32 %v6909_v17, %v2168_v20  ;;  %v4605_v49 = vpack.i.bf16 %v2424_v2, %v6997_v43 }
 0x306   : > { %2360 = vst.msk [vmem:[#allocation3 + $0xc9] sm:$0xff] %vm1754_vm2, %v2272_v59  ;;  %v2271_v47 = vmax.f32 %v2169_v54, 0.0  ;;  %4606 = vrot.lane.b32.xlu1 %v4605_v49, %s5222_s13 }
 0x308   : > { %2359 = vst.msk [vmem:[#allocation3 + $0xc1] sm:$0xff] %vm1754_vm2, %v2271_v47 }
 0x30d   : > { %v4459_v39 = vpop.f32.mrf.mxu0  ;;  %v2426_v0 = vld [vmem:[#allocation3 + $0xc9] sm:$0xff] }
 0x30e   : > { %v2184_v27 = vadd.f32 %v4459_v39, %v6909_v17  ;;  %v7006_v50 = vpack.i.bf16 %v2426_v0, %v6942_v63 }
 0x30f   : > { %v2178_v45 = vpop.f32.mrf.mxu0  ;;  %v7008_v15 = vld [vmem:[#allocation3 + $0xc1] sm:$0xff] }
 0x310   : > { %v2274_v42 = vmax.f32 %v2184_v27, 0.0  ;;  %v2179_v7 = vadd.f32 %v6909_v17, %v2178_v45  ;;  %v4610_v19 = vpack.i.bf16 %v2426_v0, %v7008_v15  ;;  %v7225_v24 = vld [vmem:[#allocation3 + $0xc8] sm:$0xff] }
 0x312   : > { %2362 = vst.msk [vmem:[#allocation3 + $0xe1] sm:$0xff] %vm1754_vm2, %v2274_v42  ;;  %v2273_v1 = vmax.f32 %v2179_v7, 0.0  ;;  %4611 = vrot.lane.b32.xlu0 %v4610_v19, %s5222_s13 }
 0x314   : > { %2361 = vst.msk [vmem:[#allocation3 + $0xd9] sm:$0xff] %vm1754_vm2, %v2273_v1 }
 0x319   : > { %v4462_v16 = vpop.f32.mrf.mxu0  ;;  %v2428_v55 = vld [vmem:[#allocation3 + $0xe1] sm:$0xff] }
 0x31a   : > { %v2194_v63 = vadd.f32 %v4462_v16, %v6909_v17  ;;  %v7017_v26 = vpack.i.bf16 %v2428_v55, %v6953_v52 }
 0x31b   : > { %v2188_v37 = vpop.f32.mrf.mxu0  ;;  %v7019_v46 = vld [vmem:[#allocation3 + $0xd9] sm:$0xff] }
 0x31c   : > { %v2276_v5 = vmax.f32 %v2194_v63, 0.0  ;;  %v2189_v18 = vadd.f32 %v6909_v17, %v2188_v37  ;;  %v4615_v12 = vpack.i.bf16 %v2428_v55, %v7019_v46  ;;  %v3806_v55 = vld [vmem:[%s8115_s3 + $0x78] sm:$0xff] }
 0x31d   : > { %v2441_v63 = vld [vmem:[#allocation3 + $0x2] sm:$0xff]  ;;  %3913 = vmatpush1.msra.mxu0 %v3806_v55  ;;  %4499 = vmatpush1.msra.mxu1 %v3806_v55 }
 0x31e   : > { %2364 = vst.msk [vmem:[#allocation3 + $0xf9] sm:$0xff] %vm1754_vm2, %v2276_v5  ;;  %v2275_v23 = vmax.f32 %v2189_v18, 0.0  ;;  %4616 = vrot.lane.b32.xlu1 %v4615_v12, %s5222_s13  ;;  %v2442_v18 = vld [vmem:[#allocation3 + $0xa] sm:$0xff]  ;;  %3914 = vmatprep.subr.mxu0 %v8301_v60 }
 0x31f   : > { %4482 = vmatprep.subr.mxu1 %v8301_v60 }
 0x320   : > { %2363 = vst.msk [vmem:[#allocation3 + $0xf1] sm:$0xff] %vm1754_vm2, %v2275_v23  ;;  %v3805_v23 = vld [vmem:[%s8115_s3 + $0x70] sm:$0xff] }
 0x321   : > { %3915 = vmatpush1.msra.mxu0 %v3805_v23  ;;  %4500 = vmatpush1.msra.mxu1 %v3805_v23  ;;  %v7145_v23 = vld [vmem:[#allocation3 + $0xa8] sm:$0xff] }
 0x322   : > { %3916 = vmatprep.subr.mxu0 %v8301_v60  ;;  %4483 = vmatprep.subr.mxu1 %v8301_v60 }
 0x325   : > { %v4465_v21 = vpop.f32.mrf.mxu0  ;;  %v2430_v14 = vld [vmem:[#allocation3 + $0xf9] sm:$0xff] }
 0x326   : > { %v2204_v52 = vadd.f32 %v4465_v21, %v6909_v17  ;;  %v7028_v4 = vpack.i.bf16 %v2430_v14, %v6964_v61 }
 0x327   : > { %v2198_v34 = vpop.f32.mrf.mxu0  ;;  %v7030_v62 = vld [vmem:[#allocation3 + $0xf1] sm:$0xff] }
 0x328   : > { %v2278_v35 = vmax.f32 %v2204_v52, 0.0  ;;  %v2199_v11 = vadd.f32 %v6909_v17, %v2198_v34  ;;  %v4620_v3 = vpack.i.bf16 %v2430_v14, %v7030_v62  ;;  %v3804_v14 = vld [vmem:[%s8115_s3 + $0x68] sm:$0xff]  ;;  %v4650_v34 = vpack.i.bf16 %v2442_v18, %v2441_v63 }
 0x329   : > { %3917 = vmatpush1.msra.mxu0 %v3804_v14  ;;  %4501 = vmatpush1.msra.mxu1 %v3804_v14  ;;  %v3796_v18 = vld [vmem:[%s8115_s3 + $0x28] sm:$0xff]  ;;  %v7155_v14 = vld [vmem:[#allocation3 + $0x20] sm:$0xff] }
 0x32a   : > { %2366 = vst.msk [vmem:[#allocation3 + $0x111] sm:$0xff] %vm1754_vm2, %v2278_v35  ;;  %v2277_v53 = vmax.f32 %v2199_v11, 0.0  ;;  %4621 = vrot.lane.b32.xlu0 %v4620_v3, %s5222_s13  ;;  %v3803_v11 = vld [vmem:[%s8115_s3 + $0x60] sm:$0xff]  ;;  %3918 = vmatprep.subr.mxu0 %v8301_v60 }
 0x32b   : > { %4484 = vmatprep.subr.mxu1 %v8301_v60  ;;  %3919 = vmatpush1.msra.mxu0 %v3803_v11 }
 0x32c   : > { %2365 = vst.msk [vmem:[#allocation3 + $0x109] sm:$0xff] %vm1754_vm2, %v2277_v53  ;;  %4502 = vmatpush1.msra.mxu1 %v3803_v11  ;;  %3920 = vmatprep.subr.mxu0 %v8301_v60  ;;  %v7166_v11 = vld [vmem:[#allocation3 + $0x7a] sm:$0xff] }
 0x32d   : > { %4485 = vmatprep.subr.mxu1 %v8301_v60 }
 0x331   : > { %v4468_v57 = vpop.f32.mrf.mxu0  ;;  %v2432_v13 = vld [vmem:[#allocation3 + $0x111] sm:$0xff] }
 0x332   : > { %v2214_v61 = vadd.f32 %v4468_v57, %v6909_v17  ;;  %v7039_v44 = vpack.i.bf16 %v2432_v13, %v6979_v9  ;;  %v3802_v57 = vld [vmem:[%s8115_s3 + $0x58] sm:$0xff] }
 0x333   : > { %v2208_v33 = vpop.f32.mrf.mxu0  ;;  %v7041_v38 = vld [vmem:[#allocation3 + $0x109] sm:$0xff]  ;;  %3921 = vmatpush1.msra.mxu0 %v3802_v57  ;;  %4503 = vmatpush1.msra.mxu1 %v3802_v57 }
 0x334   : > { %v2280_v31 = vmax.f32 %v2214_v61, 0.0  ;;  %v2209_v28 = vadd.f32 %v6909_v17, %v2208_v33  ;;  %v4625_v22 = vpack.i.bf16 %v2432_v13, %v7041_v38  ;;  %v7090_v61 = vld [vmem:[#allocation3 + $0x3a] sm:$0xff]  ;;  %3922 = vmatprep.subr.mxu0 %v8301_v60  ;;  %4486 = vmatprep.subr.mxu1 %v8301_v60  ;;  %v7175_v57 = vld [vmem:[#allocation3 + $0x82] sm:$0xff] }
 0x335   : > { %v3801_v33 = vld [vmem:[%s8115_s3 + $0x50] sm:$0xff] }
 0x336   : > { %2368 = vst.msk [vmem:[#allocation3 + $0x129] sm:$0xff] %vm1754_vm2, %v2280_v31  ;;  %v2279_v41 = vmax.f32 %v2209_v28, 0.0  ;;  %4626 = vrot.lane.b32.xlu1 %v4625_v22, %s5222_s13  ;;  %v4660_v31 = vpack.i.bf16 %v7090_v61, %v6927_v56  ;;  %v7100_v28 = vld [vmem:[#allocation3 + $0x62] sm:$0xff]  ;;  %v3800_v22 = vld [vmem:[%s8115_s3 + $0x48] sm:$0xff]  ;;  %3923 = vmatpush1.msra.mxu0 %v3801_v33 }
 0x337   : > { %4504 = vmatpush1.msra.mxu1 %v3801_v33  ;;  %3924 = vmatprep.subr.mxu0 %v8301_v60 }
 0x338   : > { %2367 = vst.msk [vmem:[#allocation3 + $0x121] sm:$0xff] %vm1754_vm2, %v2279_v41  ;;  %v7108_v41 = vld [vmem:[#allocation3 + $0x6a] sm:$0xff]  ;;  %4487 = vmatprep.subr.mxu1 %v8301_v60  ;;  %3925 = vmatpush1.msra.mxu0 %v3800_v22 }
 0x339   : > { %4505 = vmatpush1.msra.mxu1 %v3800_v22  ;;  %3926 = vmatprep.subr.mxu0 %v8301_v60  ;;  %v7185_v22 = vld [vmem:[#allocation3 + $0xaa] sm:$0xff] }
 0x33a   : > { %4488 = vmatprep.subr.mxu1 %v8301_v60 }
 0x33d   : > { %v4471_v25 = vpop.f32.mrf.mxu0  ;;  %v2434_v20 = vld [vmem:[#allocation3 + $0x129] sm:$0xff] }
 0x33e   : > { %v2224_v2 = vadd.f32 %v4471_v25, %v6909_v17  ;;  %v4670_v25 = vpack.i.bf16 %v7108_v41, %v7100_v28 }
 0x33f   : > { %v2218_v9 = vpop.f32.mrf.mxu0  ;;  %v7049_v8 = vld [vmem:[#allocation3 + $0x121] sm:$0xff] }
 0x340   : > { %v2282_v59 = vmax.f32 %v2224_v2, 0.0  ;;  %v2219_v54 = vadd.f32 %v6909_v17, %v2218_v9  ;;  %v7053_v49 = vpack.i.bf16 %v2434_v20, %v7049_v8  ;;  %v3799_v2 = vld [vmem:[%s8115_s3 + $0x40] sm:$0xff]  ;;  %v7117_v9 = vld [vmem:[#allocation3 + $0x98] sm:$0xff]  ;;  %v3798_v20 = vld [vmem:[%s8115_s3 + $0x38] sm:$0xff] }
 0x341   : > { %3927 = vmatpush1.msra.mxu0 %v3799_v2  ;;  %4506 = vmatpush1.msra.mxu1 %v3799_v2 }
 0x342   : > { %2370 = vst.msk [vmem:[#allocation3 + $0x141] sm:$0xff] %vm1754_vm2, %v2282_v59  ;;  %v2281_v47 = vmax.f32 %v2219_v54, 0.0  ;;  %4631 = vrot.lane.b32.xlu0 %v7053_v49, %s5222_s13  ;;  %v7125_v59 = vld [vmem:[#allocation3 + $0x18] sm:$0xff]  ;;  %3928 = vmatprep.subr.mxu0 %v8301_v60 }
 0x343   : > { %4489 = vmatprep.subr.mxu1 %v8301_v60  ;;  %3929 = vmatpush1.msra.mxu0 %v3798_v20 }
 0x344   : > { %2369 = vst.msk [vmem:[#allocation3 + $0x139] sm:$0xff] %vm1754_vm2, %v2281_v47  ;;  %4507 = vmatpush1.msra.mxu1 %v3798_v20  ;;  %3930 = vmatprep.subr.mxu0 %v8301_v60  ;;  %v7197_v20 = vld [vmem:[#allocation3 + $0xb0] sm:$0xff] }
 0x345   : > { %4490 = vmatprep.subr.mxu1 %v8301_v60 }
 0x349   : > { %v4474_v39 = vpop.f32.mrf.mxu0  ;;  %v2436_v42 = vld [vmem:[#allocation3 + $0x141] sm:$0xff] }
 0x34a   : > { %v2234_v0 = vadd.f32 %v4474_v39, %v6909_v17 }
 0x34b   : > { %v2228_v27 = vpop.f32.mrf.mxu0  ;;  %v2435_v45 = vld [vmem:[#allocation3 + $0x139] sm:$0xff] }
 0x34c   : > { %v2284_v7 = vmax.f32 %v2234_v0, 0.0  ;;  %v2229_v19 = vadd.f32 %v6909_v17, %v2228_v27  ;;  %v4635_v1 = vpack.i.bf16 %v2436_v42, %v2435_v45  ;;  %v4680_v0 = vpack.i.bf16 %v7117_v9, %v7125_v59  ;;  %v2443_v45 = vld [vmem:[#allocation3 + $0x1a] sm:$0xff] }
 0x34d   : > { %v2548_v42 = vld [vmem:[#allocation3 + $0x9a] sm:$0xff] }
 0x34e   : > { %2372 = vst.msk [vmem:[#allocation3 + $0x159] sm:$0xff] %vm1754_vm2, %v2284_v7  ;;  %v2283_v16 = vmax.f32 %v2229_v19, 0.0  ;;  %4636 = vrot.lane.b32.xlu1 %v4635_v1, %s5222_s13  ;;  %v3797_v7 = vld [vmem:[%s8115_s3 + $0x30] sm:$0xff] }
 0x34f   : > { %3931 = vmatpush1.msra.mxu0 %v3797_v7  ;;  %4508 = vmatpush1.msra.mxu1 %v3797_v7 }
 0x350   : > { %2371 = vst.msk [vmem:[#allocation3 + $0x151] sm:$0xff] %vm1754_vm2, %v2283_v16  ;;  %v2444_v16 = vld [vmem:[#allocation3 + $0x22] sm:$0xff]  ;;  %3932 = vmatprep.subr.mxu0 %v8301_v60  ;;  %4491 = vmatprep.subr.mxu1 %v8301_v60 }
 0x351   : > { %3933 = vmatpush1.msra.mxu0 %v3796_v18  ;;  %4509 = vmatpush1.msra.mxu1 %v3796_v18  ;;  %v4720_v2 = vpack.i.bf16 %v7185_v22, %v2444_v16 }
 0x352   : > { %3934 = vmatprep.subr.mxu0 %v8301_v60  ;;  %4492 = vmatprep.subr.mxu1 %v8301_v60 }
 0x355   : > { %v2438_v5 = vld [vmem:[#allocation3 + $0x159] sm:$0xff] }
 0x357   : > { %v2437_v37 = vld [vmem:[#allocation3 + $0x151] sm:$0xff] }
 0x358   : > { %v4640_v12 = vpack.i.bf16 %v2438_v5, %v2437_v37  ;;  %v4655_v37 = vpack.i.bf16 %v2444_v16, %v2443_v45  ;;  %v4690_v5 = vpack.i.bf16 %v2548_v42, %v2443_v45 }
 0x359   : > { %v4477_v21 = vpop.f32.mrf.mxu0 }
 0x35a   : > { %v2244_v52 = vadd.f32 %v4477_v21, %v6909_v17  ;;  %4641 = vrot.lane.b32.xlu0 %v4640_v12, %s5222_s13  ;;  %v7143_v12 = vld [vmem:[#allocation3 + $0x4a] sm:$0xff] }
 0x35b   : > { %v2238_v35 = vpop.f32.mrf.mxu0 }
 0x35c   : > { %v2286_v3 = vmax.f32 %v2244_v52, 0.0  ;;  %v2239_v53 = vadd.f32 %v6909_v17, %v2238_v35  ;;  %v7157_v52 = vld [vmem:[#allocation3 + $0x52] sm:$0xff]  ;;  %v4700_v35 = vpack.i.bf16 %v7145_v23, %v7155_v14 }
 0x35e   : > { %2374 = vst.msk [vmem:[#allocation3 + $0x171] sm:$0xff] %vm1754_vm2, %v2286_v3  ;;  %v2285_v13 = vmax.f32 %v2239_v53, 0.0  ;;  %4651 = vrot.lane.b32.xlu0 %v4650_v34, %s5226_s11  ;;  %v4665_v34 = vpack.i.bf16 %v7157_v52, %v7143_v12  ;;  %v7168_v3 = vld [vmem:[#allocation3 + $0x92] sm:$0xff]  ;;  %v3794_v53 = vld [vmem:[%s8115_s3 + $0x18] sm:$0xff] }
 0x35f   : > { %v4710_v33 = vpack.i.bf16 %v2548_v42, %v7168_v3  ;;  %v7241_v42 = vld [vmem:[#allocation3 + $0x38] sm:$0xff] }
 0x360   : > { %2373 = vst.msk [vmem:[#allocation3 + $0x169] sm:$0xff] %vm1754_vm2, %v2285_v13  ;;  %v4675_v13 = vpack.i.bf16 %v7175_v57, %v7166_v11 }
 0x362   : > { %4661 = vrot.lane.b32.xlu0 %v4660_v31, %s5226_s11  ;;  %v3793_v31 = vld [vmem:[%s8115_s3 + $0x10] sm:$0xff] }
 0x365   : > { %v2440_v47 = vld [vmem:[#allocation3 + $0x171] sm:$0xff] }
 0x366   : > { %4671 = vrot.lane.b32.xlu0 %v4670_v25, %s5226_s11  ;;  %v3792_v25 = vld [vmem:[%s8115_s3 + $0x8] sm:$0xff] }
 0x367   : > { %v2439_v54 = vld [vmem:[#allocation3 + $0x169] sm:$0xff] }
 0x368   : > { %v4645_v39 = vpack.i.bf16 %v2440_v47, %v2439_v54  ;;  %v3791_v54 = vld [vmem:[%s8115_s3] sm:$0xff] }
 0x369   : > { %v4480_v27 = vpop.f32.mrf.mxu0  ;;  %v7207_v47 = vld [vmem:[#allocation3 + $0x30] sm:$0xff] }
 0x36a   : > { %v2254_v19 = vadd.f32 %v4480_v27, %v6909_v17  ;;  %4646 = vrot.lane.b32.xlu1 %v4645_v39, %s5222_s13  ;;  %4681 = vrot.lane.b32.xlu0 %v4680_v0, %s5227_s30  ;;  %s5228_s13 = smov 80   ;;  %v4695_v39 = vpack.i.bf16 %v7197_v20, %v7207_v47  ;;  %v3808_v0 = vld [vmem:[%s8115_s3 + $0x88] sm:$0xff]  ;;  %v4715_v27 = vpack.i.bf16 %v6997_v43, %v6918_v58  ;;  %v7254_v43 = vld [vmem:[#allocation3 + $0x50] sm:$0xff] }
 0x36b   : > { %v2248_v1 = vpop.f32.mrf.mxu0  ;;  %v4735_v58 = vpack.i.bf16 %v7008_v15, %v6931_v51  ;;  %v4790_v51 = vpack.i.bf16 %v7019_v46, %v6944_v40  ;;  %v7265_v15 = vld [vmem:[#allocation3 + $0xca] sm:$0xff]  ;;  %v2396_v46 = vld [vmem:[#allocation3 + $0xe0] sm:$0xff] }
 0x36c   : > { %v2288_v55 = vmax.f32 %v2254_v19, 0.0  ;;  %v2249_v63 = vadd.f32 %v6909_v17, %v2248_v1  ;;  %v3795_v17 = vld [vmem:[%s8115_s3 + $0x20] sm:$0xff]  ;;  %v4765_v1 = vpack.i.bf16 %v6987_v36, %v7185_v22  ;;  %v4800_v16 = vpack.i.bf16 %v7265_v15, %v7143_v12  ;;  %v7283_v36 = vld [vmem:[#allocation3 + $0xda] sm:$0xff] }
 0x36d   : > { %3935 = vmatpush1.msra.mxu0 %v3795_v17  ;;  %4510 = vmatpush1.msra.mxu1 %v3795_v17  ;;  %v2397_v12 = vld [vmem:[#allocation3 + $0xf0] sm:$0xff] }
 0x36e   : > { %2376 = vst.msk [vmem:[#allocation3 + $0x189] sm:$0xff] %vm1754_vm2, %v2288_v55  ;;  %v2287_v21 = vmax.f32 %v2249_v63, 0.0  ;;  %4656 = vrot.lane.b32.xlu1 %v4655_v37, %s5226_s11  ;;  %4691 = vrot.lane.b32.xlu0 %v4690_v5, %s5228_s13  ;;  %v7273_v55 = vld [vmem:[#allocation3 + $0xc2] sm:$0xff]  ;;  %v2398_v37 = vld [vmem:[#allocation3 + $0xf8] sm:$0xff]  ;;  %v7297_v5 = vpop.permute.xlu0 %4571 }
 0x36f   : > { %3936 = vmatprep.subr.mxu0 %v8301_v60  ;;  %4493 = vmatprep.subr.mxu1 %v8301_v60  ;;  %v4775_v56 = vpack.i.bf16 %v7273_v55, %v7090_v61  ;;  %v4820_v40 = vpack.i.bf16 %v7265_v15, %v7273_v55  ;;  %v7292_v61 = vld [vmem:[#allocation3 + $0x60] sm:$0xff] }
 0x370   : > { %2375 = vst.msk [vmem:[#allocation3 + $0x181] sm:$0xff] %vm1754_vm2, %v2287_v21  ;;  %3937 = vmatpush1.msra.mxu0 %v3794_v53  ;;  %4511 = vmatpush1.msra.mxu1 %v3794_v53  ;;  %v4805_v63 = vpack.i.bf16 %v2396_v46, %v7292_v61  ;;  %v7308_v21 = vld [vmem:[#allocation3 + $0x68] sm:$0xff] }
 0x371   : > { %3938 = vmatprep.subr.mxu0 %v8301_v60  ;;  %4494 = vmatprep.subr.mxu1 %v8301_v60  ;;  %v7318_v53 = vld [vmem:[#allocation3 + $0xe2] sm:$0xff] }
 0x372   : > { %4666 = vrot.lane.b32.xlu1 %v4665_v34, %s5226_s11  ;;  %4701 = vrot.lane.b32.xlu0 %v4700_v35, %s5227_s30  ;;  %v7310_v17 = vpop.permute.xlu0 %4581  ;;  %v4845_v34 = vpack.i.bf16 %v7030_v62, %v6955_v10  ;;  %v2399_v35 = vld [vmem:[#allocation3 + $0x108] sm:$0xff]  ;;  %v7331_v10 = vpop.permute.xlu1 %4576 }
 0x373   : > { %3939 = vmatpush1.msra.mxu0 %v3793_v31  ;;  %4512 = vmatpush1.msra.mxu1 %v3793_v31  ;;  %v4855_v31 = vpack.i.bf16 %v7318_v53, %v7100_v28 }
 0x374   : > { %3940 = vmatprep.subr.mxu0 %v8301_v60  ;;  %4495 = vmatprep.subr.mxu1 %v8301_v60 }
 0x375   : > { %3941 = vmatpush1.msra.mxu0 %v3792_v25  ;;  %4513 = vmatpush1.msra.mxu1 %v3792_v25  ;;  %v4900_v25 = vpack.i.bf16 %v7041_v38, %v6966_v29 }
 0x376   : > { %4676 = vrot.lane.b32.xlu1 %v4675_v13, %s5226_s11  ;;  %4711 = vrot.lane.b32.xlu0 %v4710_v33, %s5226_s11  ;;  %v7322_v13 = vld [vmem:[#allocation3 + $0x80] sm:$0xff] }
 0x377   : > { %3942 = vmatprep.subr.mxu0 %v8301_v60  ;;  %4496 = vmatprep.subr.mxu1 %v8301_v60  ;;  %v4890_v22 = vpack.i.bf16 %v2399_v35, %v7322_v13  ;;  %v7391_v35 = vld [vmem:[#allocation3 + $0x128] sm:$0xff] }
 0x378   : > { %3943 = vmatpush1.msra.mxu0 %v3791_v54  ;;  %4514 = vmatpush1.msra.mxu1 %v3791_v54  ;;  %v7339_v54 = vpop.permute.xlu1 %4586 }
 0x379   : > { %3972 = vmatprep.subr.mxu0 %v8301_v60  ;;  %4497 = vmatprep.subr.mxu1 %v8301_v60 }
 0x37a   : > { %4686 = vrot.lane.b32.xlu1 %v4685_v48, %s5229_s26  ;;  %4721 = vrot.lane.b32.xlu0 %v4720_v2, %s5228_s13  ;;  %v7231_v48 = vld [vmem:[#allocation3 + $0x48] sm:$0xff]  ;;  %v2556_v2 = vld [vmem:[#allocation3 + $0xfa] sm:$0xff] }
 0x37b   : > { %3973 = vmatpush2.msra.mxu0 %v3808_v0  ;;  %4515 = vmatpush2.msra.mxu1 %v3808_v0  ;;  %v4750_v45 = vpack.i.bf16 %v7225_v24, %v7231_v48  ;;  %v4910_v0 = vpack.i.bf16 %v2556_v2, %v7166_v11 }
 0x37c   : > { %3974 = vmatprep.subr.mxu0 %v8301_v60  ;;  %4498 = vmatprep.subr.mxu1 %v8301_v60  ;;  %v7237_v60 = vld [vmem:[#allocation3 + $0xc0] sm:$0xff]  ;;  %v7350_v29 = vpop.permute.xlu1 %4596 }
 0x37d   : > { %3975 = vmatpush2.msra.mxu0 %v3807_v30  ;;  %4516 = vmatpush2.msra.mxu1 %v3807_v30  ;;  %v4725_v7 = vpack.i.bf16 %v7237_v60, %v7241_v42  ;;  %v7346_v30 = vld [vmem:[#allocation3 + $0xf2] sm:$0xff] }
 0x37e   : > { %4696 = vrot.lane.b32.xlu1 %v4695_v39, %s5230_s8  ;;  %4731 = vrot.lane.b32.xlu0 %v4695_v39, %s5227_s30  ;;  %v4875_v39 = vpack.i.bf16 %v7318_v53, %v7283_v36 }
 0x382   : > { %4706 = vrot.lane.b32.xlu1 %v6993_v6, %s5231_s12  ;;  %4741 = vrot.lane.b32.xlu0 %v6993_v6, %s5229_s26  ;;  %v7250_v6 = vld [vmem:[#allocation3 + $0xd8] sm:$0xff] }
 0x383   : > { %v4780_v19 = vpack.i.bf16 %v7250_v6, %v7254_v43 }
 0x386   : > { %4716 = vrot.lane.b32.xlu1 %v4715_v27, %s5229_s26  ;;  %4751 = vrot.lane.b32.xlu0 %v4750_v45, %s5230_s8 }
 0x38a   : > { %4726 = vrot.lane.b32.xlu1 %v4725_v7, %s5230_s8  ;;  %4761 = vrot.lane.b32.xlu0 %v7006_v50, %s5231_s12 }
 0x38e   : > { %4736 = vrot.lane.b32.xlu1 %v4735_v58, %s5231_s12  ;;  %4771 = vrot.lane.b32.xlu0 %v4735_v58, %s5229_s26  ;;  %v4930_v58 = vpack.i.bf16 %v2556_v2, %v7346_v30 }
 0x392   : > { %4746 = vrot.lane.b32.xlu1 %v4745_v32, %s5228_s13  ;;  %4781 = vrot.lane.b32.xlu0 %v4780_v19, %s5230_s8  ;;  %v4830_v32 = vpack.i.bf16 %v7283_v36, %v7157_v52  ;;  %v4835_v52 = vpack.i.bf16 %v2397_v12, %v7308_v21 }
 0x396   : > { %4756 = vrot.lane.b32.xlu1 %v4725_v7, %s5227_s30  ;;  %4791 = vrot.lane.b32.xlu0 %v4790_v51, %s5231_s12  ;;  %v7358_v7 = vpop.permute.xlu1 %4606 }
 0x39a   : > { %4766 = vrot.lane.b32.xlu1 %v4765_v1, %s5226_s11  ;;  %4801 = vrot.lane.b32.xlu0 %v4800_v16, %s5228_s13  ;;  %v2400_v16 = vld [vmem:[#allocation3 + $0x110] sm:$0xff] }
 0x39e   : > { %4776 = vrot.lane.b32.xlu1 %v4775_v56, %s5228_s13  ;;  %4811 = vrot.lane.b32.xlu0 %v4780_v19, %s5227_s30  ;;  %v2557_v19 = vld [vmem:[#allocation3 + $0x10a] sm:$0xff]  ;;  %v4584_v56 = vunpack.i.h.bf16 %v7310_v17 }
 0x3a2   : > { %4786 = vrot.lane.b32.xlu1 %v4750_v45, %s5227_s30  ;;  %4821 = vrot.lane.b32.xlu0 %v4820_v40, %s5226_s11  ;;  %v4885_v45 = vpack.i.bf16 %v7346_v30, %v7108_v41  ;;  %v4940_v41 = vpack.i.bf16 %v2557_v19, %v7175_v57  ;;  %v7374_v40 = vld [vmem:[#allocation3 + $0x90] sm:$0xff]  ;;  %v3567_v57 = vsel %vm1754_vm2, %v7241_v42, %v4584_v56 }
 0x3a6   : > { %4796 = vrot.lane.b32.xlu1 %v7006_v50, %s5229_s26  ;;  %4831 = vrot.lane.b32.xlu0 %v4830_v32, %s5228_s13  ;;  %v7303_v50 = vld [vmem:[#allocation3 + $0x78] sm:$0xff] }
 0x3a7   : > { %v4860_v18 = vpack.i.bf16 %v2398_v37, %v7303_v50 }
 0x3aa   : > { %4806 = vrot.lane.b32.xlu1 %v4805_v63, %s5230_s8  ;;  %4841 = vrot.lane.b32.xlu0 %v4805_v63, %s5227_s30  ;;  %v4915_v63 = vpack.i.bf16 %v2400_v16, %v7374_v40 }
 0x3ae   : > { %4816 = vrot.lane.b32.xlu1 %v7017_v26, %s5231_s12  ;;  %4851 = vrot.lane.b32.xlu0 %v7017_v26, %s5229_s26  ;;  %v4592_v26 = vpop.permute.xlu0 %4591 }
 0x3af   : > { %v4593_v12 = vunpack.i.l.bf16 %v4592_v26 }
 0x3b1   : > { %v3570_v42 = vsel %vm1754_vm2, %v7292_v61, %v4593_v12  ;;  %v4970_v61 = vpack.i.bf16 %v7391_v35, %v7145_v23 }
 0x3b2   : > { %4826 = vrot.lane.b32.xlu1 %v4790_v51, %s5229_s26  ;;  %4861 = vrot.lane.b32.xlu0 %v4860_v18, %s5230_s8  ;;  %v7324_v33 = vpop.permute.xlu0 %4601  ;;  %v7365_v51 = vpop.permute.xlu1 %4616 }
 0x3b6   : > { %4836 = vrot.lane.b32.xlu1 %v4835_v52, %s5230_s8  ;;  %4871 = vrot.lane.b32.xlu0 %v7028_v4, %s5231_s12  ;;  %v7333_v62 = vpop.permute.xlu0 %4611  ;;  %v7376_v32 = vpop.permute.xlu1 %4626 }
 0x3b7   : > { %8390 = vst [vmem:[#allocation12_spill] sm:$0xff] %v7376_v32 }
 0x3ba   : > { %4846 = vrot.lane.b32.xlu1 %v4845_v34, %s5231_s12  ;;  %4881 = vrot.lane.b32.xlu0 %v4845_v34, %s5229_s26  ;;  %v7341_v28 = vpop.permute.xlu0 %4621 }
 0x3be   : > { %4856 = vrot.lane.b32.xlu1 %v4855_v31, %s5228_s13  ;;  %4891 = vrot.lane.b32.xlu0 %v4890_v22, %s5230_s8  ;;  %v7352_v27 = vpop.permute.xlu0 %4631 }
 0x3bf   : > { %8388 = vst [vmem:[#allocation53_spill] sm:$0xff] %v7352_v27  ;;  %v2406_v27 = vld [vmem:[#allocation3 + $0x158] sm:$0xff] }
 0x3c2   : > { %4866 = vrot.lane.b32.xlu1 %v4835_v52, %s5227_s30  ;;  %4901 = vrot.lane.b32.xlu0 %v4900_v25, %s5231_s12  ;;  %v7389_v52 = vpop.permute.xlu1 %4636 }
 0x3c3   : > { %8391 = vst [vmem:[#allocation17_spill] sm:$0xff] %v7389_v52 }
 0x3c6   : > { %4876 = vrot.lane.b32.xlu1 %v4875_v39, %s5226_s11  ;;  %4911 = vrot.lane.b32.xlu0 %v4910_v0, %s5228_s13  ;;  %v2514_v39 = vld [vmem:[#allocation3 + $0x81] sm:$0xff] }
 0x3ca   : > { %4886 = vrot.lane.b32.xlu1 %v4885_v45, %s5228_s13  ;;  %4921 = vrot.lane.b32.xlu0 %v4890_v22, %s5227_s30 }
 0x3cc   : > { %v7360_v11 = vpop.permute.xlu0 %4641 }
 0x3cd   : > { %8389 = vst [vmem:[#allocation10_spill] sm:$0xff] %v7360_v11  ;;  %v2530_v11 = vld [vmem:[#allocation3 + $0x141] sm:$0xff] }
 0x3ce   : > { %4896 = vrot.lane.b32.xlu1 %v4860_v18, %s5227_s30  ;;  %4931 = vrot.lane.b32.xlu0 %v4930_v58, %s5226_s11  ;;  %v4594_v18 = vunpack.i.h.bf16 %v4592_v26  ;;  %v7414_v58 = vld [vmem:[#allocation3 + $0x120] sm:$0xff] }
 0x3cf   : > { %v4945_v56 = vpack.i.bf16 %v7414_v58, %v7117_v9 }
 0x3d0   : > { %v7367_v1 = vpop.permute.xlu0 %4651  ;;  %v3571_v25 = vsel %vm1754_vm2, %v7308_v21, %v4594_v18  ;;  %v4935_v21 = vpack.i.bf16 %v7041_v38, %v2514_v39  ;;  %v4598_v39 = vunpack.i.l.bf16 %v7350_v29 }
 0x3d2   : > { %4906 = vrot.lane.b32.xlu1 %v7028_v4, %s5229_s26  ;;  %4941 = vrot.lane.b32.xlu0 %v4940_v41, %s5228_s13 }
 0x3d4   : > { %v7378_v46 = vpop.permute.xlu0 %4661 }
 0x3d5   : > { %v4664_v37 = vunpack.i.h.bf16 %v7378_v46 }
 0x3d6   : > { %4916 = vrot.lane.b32.xlu1 %v4915_v63, %s5230_s8  ;;  %4951 = vrot.lane.b32.xlu0 %v4915_v63, %s5227_s30  ;;  %v4589_v63 = vunpack.i.h.bf16 %v7339_v54 }
 0x3d7   : > { %v7387_v4 = vsel %vm1886_vm9, %v3567_v57, %v4664_v37  ;;  %v4588_v37 = vunpack.i.l.bf16 %v7339_v54  ;;  %v2611_v57 = vld [vmem:[#allocation3 + $0x99] sm:$0xff] }
 0x3d8   : > { %v4672_v34 = vpop.permute.xlu0 %4671  ;;  %v3569_v54 = vsel %vm1754_vm2, %v7254_v43, %v4589_v63 }
 0x3d9   : > { %v4674_v31 = vunpack.i.h.bf16 %v4672_v34  ;;  %v4673_v22 = vunpack.i.l.bf16 %v4672_v34  ;;  %v4955_v34 = vpack.i.bf16 %v7049_v8, %v2611_v57  ;;  %v7455_v57 = vld [vmem:[#allocation3 + $0x122] sm:$0xff] }
 0x3da   : > { %4926 = vrot.lane.b32.xlu1 %v7039_v44, %s5231_s12  ;;  %4961 = vrot.lane.b32.xlu0 %v7039_v44, %s5229_s26  ;;  %v7418_v44 = vld [vmem:[#allocation3 + $0x112] sm:$0xff] }
 0x3db   : > { %v7402_v26 = vsel %vm1886_vm9, %v3570_v42, %v4673_v22  ;;  %v7405_v2 = vsel %vm1886_vm9, %v3571_v25, %v4674_v31  ;;  %v4980_v38 = vpack.i.bf16 %v7418_v44, %v2557_v19  ;;  %v2403_v31 = vld [vmem:[#allocation3 + $0x138] sm:$0xff]  ;;  %v2404_v22 = vld [vmem:[#allocation3 + $0x140] sm:$0xff]  ;;  %v3568_v19 = vsel %vm1754_vm2, %v7231_v48, %v4588_v37  ;;  %v2623_v37 = vld [vmem:[#allocation3 + $0x129] sm:$0xff] }
 0x3dc   : > { %v7407_v0 = vpop.permute.xlu1 %4646  ;;  %v7409_v45 = vpop.permute.xlu0 %4681  ;;  %v4965_v48 = vpack.i.bf16 %v7418_v44, %v7168_v3  ;;  %v7452_v43 = vpack.i.bf16 %v2404_v22, %v2403_v31  ;;  %v2612_v31 = vld [vmem:[#allocation3 + $0xa9] sm:$0xff]  ;;  %v2377_v22 = vld [vmem:[#allocation3] sm:$0xff] }
 0x3dd   : > { %8392 = vst [vmem:[#allocation55_spill] sm:$0xff] %v7407_v0 }
 0x3de   : > { %4936 = vrot.lane.b32.xlu1 %v4935_v21, %s5229_s26  ;;  %4971 = vrot.lane.b32.xlu0 %v4970_v61, %s5230_s8 }
 0x3e0   : > { %v7420_v41 = vpop.permute.xlu1 %4656  ;;  %v7422_v16 = vpop.permute.xlu0 %4691 }
 0x3e2   : > { %4946 = vrot.lane.b32.xlu1 %v4945_v56, %s5230_s8  ;;  %4981 = vrot.lane.b32.xlu0 %v4980_v38, %s5226_s11  ;;  %v4599_v38 = vunpack.i.h.bf16 %v7350_v29  ;;  %v7466_v29 = vld [vmem:[#allocation3 + $0x12a] sm:$0xff] }
 0x3e4   : > { %v4667_v18 = vpop.permute.xlu1 %4666  ;;  %v7431_v12 = vpop.permute.xlu0 %4701 }
 0x3e5   : > { %v4669_v25 = vunpack.i.h.bf16 %v4667_v18  ;;  %v4668_v42 = vunpack.i.l.bf16 %v4667_v18 }
 0x3e6   : > { %4956 = vrot.lane.b32.xlu1 %v4955_v34, %s5231_s12  ;;  %4991 = vrot.lane.b32.xlu0 %v7053_v49, %s5229_s26  ;;  %v3572_v49 = vsel %vm1754_vm2, %v7303_v50, %v4598_v39  ;;  %v4573_v34 = vunpack.i.l.bf16 %v7297_v5  ;;  %v4975_v50 = vpack.i.bf16 %v2623_v37, %v2612_v31  ;;  %v3573_v39 = vsel %vm1754_vm2, %v7322_v13, %v4599_v38 }
 0x3e7   : > { %v7443_v21 = vsel %vm1886_vm9, %v3568_v19, %v4668_v42  ;;  %v7446_v8 = vsel %vm1886_vm9, %v3569_v54, %v4669_v25  ;;  %v4653_v25 = vunpack.i.l.bf16 %v7367_v1  ;;  %v5010_v54 = vpack.i.bf16 %v7466_v29, %v7455_v57 }
 0x3e8   : > { %v4677_v61 = vpop.permute.xlu1 %4676  ;;  %v7448_v56 = vpop.permute.xlu0 %4711  ;;  %v3562_v37 = vsel %vm1754_vm2, %v2377_v22, %v4573_v34  ;;  %v4684_v31 = vunpack.i.h.bf16 %v7409_v45 }
 0x3e9   : > { %v4678_v63 = vunpack.i.l.bf16 %v4677_v61  ;;  %v4679_v18 = vunpack.i.h.bf16 %v4677_v61  ;;  %v4683_v61 = vunpack.i.l.bf16 %v7409_v45  ;;  %v3594_v13 = vsel %vm1886_vm9, %v3562_v37, %v4653_v25 }
 0x3ea   : > { %4966 = vrot.lane.b32.xlu1 %v4965_v48, %s5228_s13  ;;  %5001 = vrot.lane.b32.xlu0 %v7452_v43, %s5230_s8  ;;  %v2529_v48 = vld [vmem:[#allocation3 + $0x139] sm:$0xff] }
 0x3eb   : > { %v7464_v3 = vsel %vm1886_vm9, %v3572_v49, %v4678_v63  ;;  %v3605_v63 = vsel %vm1886_vm9, %v3573_v39, %v4679_v18  ;;  %v4985_v18 = vpack.i.bf16 %v7391_v35, %v7414_v58  ;;  %v5020_v39 = vpack.i.bf16 %v2530_v11, %v2529_v48 }
 0x3ec   : > { %v4687_v42 = vpop.permute.xlu1 %4686  ;;  %v7469_v19 = vpop.permute.xlu0 %4721  ;;  %v3638_v32 = vsel %vm3626_vm12, %v3605_v63, %v4684_v31  ;;  %v4694_v35 = vunpack.i.h.bf16 %v7422_v16  ;;  %v4693_v11 = vunpack.i.l.bf16 %v7422_v16  ;;  %v4603_v58 = vunpack.i.l.bf16 %v7324_v33  ;;  %v7501_v31 = vld [vmem:[#allocation3 + $0x13a] sm:$0xff] }
 0x3ed   : > { %v4689_v49 = vunpack.i.h.bf16 %v4687_v42  ;;  %v4688_v0 = vunpack.i.l.bf16 %v4687_v42  ;;  %v2405_v42 = vld [vmem:[#allocation3 + $0x150] sm:$0xff] }
 0x3ee   : > { %4976 = vrot.lane.b32.xlu1 %v4975_v50, %s5231_s12  ;;  %5011 = vrot.lane.b32.xlu0 %v5010_v54, %s5226_s11  ;;  %v3627_v50 = vsel %vm3626_vm12, %v3594_v13, %v4683_v61  ;;  %v7497_v63 = vpack.i.bf16 %v2406_v27, %v2405_v42  ;;  %v4713_v13 = vunpack.i.l.bf16 %v7448_v56 }
 0x3ef   : > { %v3660_v45 = vsel %vm3659_vm13, %v3627_v50, %v4688_v0  ;;  %v3671_v34 = vsel %vm3659_vm13, %v3638_v32, %v4689_v49  ;;  %v7512_v50 = vld [vmem:[#allocation3 + $0x142] sm:$0xff] }
 0x3f0   : > { %v4697_v38 = vpop.permute.xlu1 %4696  ;;  %v7482_v52 = vpop.permute.xlu0 %4731  ;;  %v3693_v32 = vsel %vm3692_vm14, %v3660_v45, %v4693_v11  ;;  %v3704_v37 = vsel %vm3692_vm14, %v3671_v34, %v4694_v35  ;;  %v2378_v45 = vld [vmem:[#allocation3 + $0x8] sm:$0xff]  ;;  %v4654_v34 = vunpack.i.h.bf16 %v7367_v1  ;;  %v4703_v11 = vunpack.i.l.bf16 %v7431_v12  ;;  %v2531_v1 = vld [vmem:[#allocation3 + $0x151] sm:$0xff] }
 0x3f1   : > { %v4699_v22 = vunpack.i.h.bf16 %v4697_v38  ;;  %v4698_v25 = vunpack.i.l.bf16 %v4697_v38  ;;  %v4574_v38 = vunpack.i.h.bf16 %v7297_v5  ;;  %v3574_v5 = vsel %vm1754_vm2, %v7374_v40, %v4603_v58  ;;  %v2532_v58 = vld [vmem:[#allocation3 + $0x159] sm:$0xff] }
 0x3f2   : > { %4986 = vrot.lane.b32.xlu1 %v4985_v18, %s5227_s30  ;;  %5021 = vrot.lane.b32.xlu0 %v5020_v39, %s5229_s26  ;;  %v4704_v40 = vunpack.i.h.bf16 %v7431_v12 }
 0x3f3   : > { %v3726_v16 = vsel %vm3725_vm15, %v3693_v32, %v4698_v25  ;;  %v3737_v27 = vsel %vm3725_vm15, %v3704_v37, %v4699_v22  ;;  %v5040_v22 = vpack.i.bf16 %v7512_v50, %v7501_v31 }
 0x3f4   : > { %v4707_v61 = vpop.permute.xlu1 %4706  ;;  %v7495_v48 = vpop.permute.xlu0 %4741 }
 0x3f5   : > { %v4709_v0 = vunpack.i.h.bf16 %v4707_v61  ;;  %v4708_v49 = vunpack.i.l.bf16 %v4707_v61  ;;  %v3606_v61 = vsel %vm1886_vm9, %v3574_v5, %v4713_v13  ;;  %v4578_v13 = vunpack.i.l.bf16 %v7331_v10 }
 0x3f6   : > { %4996 = vrot.lane.b32.xlu1 %v5010_v54, %s5228_s13  ;;  %5031 = vrot.lane.b32.xlu0 %v7497_v63, %s5230_s8  ;;  %v2635_v54 = vld [vmem:[#allocation3 + $0x3a] sm:$0xff]  ;;  %v4724_v5 = vunpack.i.h.bf16 %v7469_v19 }
 0x3f7   : > { %v3759_v18 = vsel %vm3758_vm0, %v3726_v16, %v4708_v49  ;;  %v3770_v42 = vsel %vm3758_vm0, %v3737_v27, %v4709_v0  ;;  %v3563_v49 = vsel %vm1754_vm2, %v2378_v45, %v4574_v38  ;;  %v2407_v16 = vld [vmem:[#allocation3 + $0x168] sm:$0xff]  ;;  %v2408_v27 = vld [vmem:[#allocation3 + $0x170] sm:$0xff] }
 0x3f8   : > { %v4717_v35 = vpop.permute.xlu1 %4716  ;;  %v7515_v25 = vpop.permute.xlu0 %4751  ;;  %3977 = vmatmul.mubr.f32.vlgmr.msra.gmra.mxu0 %v3759_v18  ;;  %4032 = vmatmul.mubr.f32.vlgmr.msra.gmra.mxu1 %v3770_v42  ;;  %v3595_v37 = vsel %vm1886_vm9, %v3563_v49, %v4654_v34  ;;  %v5050_v42 = vpack.i.bf16 %v2532_v58, %v2531_v1  ;;  %v4604_v34 = vunpack.i.h.bf16 %v7324_v33  ;;  %v4723_v1 = vunpack.i.l.bf16 %v7469_v19  ;;  %v7554_v19 = vld [vmem:[#allocation3 + $0x152] sm:$0xff] }
 0x3f9   : > { %4351 = vmatprep.mubr.msk.f32.mxu0 %vm1754_vm2, %v2635_v54  ;;  %4362 = vmatprep.mubr.msk.f32.mxu1 %vm1754_vm2, %v7273_v55  ;;  %v4719_v32 = vunpack.i.h.bf16 %v4717_v35  ;;  %v4718_v0 = vunpack.i.l.bf16 %v4717_v35  ;;  %v3628_v35 = vsel %vm3626_vm12, %v3595_v37, %v4703_v11  ;;  %v7544_v11 = vpack.i.bf16 %v2408_v27, %v2407_v16 }
 0x3fa   : > { %5006 = vrot.lane.b32.xlu1 %v5020_v39, %s5231_s12  ;;  %5041 = vrot.lane.b32.xlu0 %v5040_v22, %s5226_s11  ;;  %v3639_v39 = vsel %vm3626_vm12, %v3606_v61, %v4704_v40  ;;  %v4658_v61 = vunpack.i.l.bf16 %v7420_v41  ;;  %v4733_v49 = vunpack.i.l.bf16 %v7482_v52  ;;  %v4744_v16 = vunpack.i.h.bf16 %v7495_v48 }
 0x3fb   : > { %v3661_v54 = vsel %vm3659_vm13, %v3628_v35, %v4718_v0  ;;  %v3672_v38 = vsel %vm3659_vm13, %v3639_v39, %v4719_v32  ;;  %v4714_v0 = vunpack.i.h.bf16 %v7448_v56  ;;  %v4734_v32 = vunpack.i.h.bf16 %v7482_v52 }
 0x3fc   : > { %v4727_v18 = vpop.permute.xlu1 %4726  ;;  %v7531_v55 = vpop.permute.xlu0 %4761  ;;  %v3694_v33 = vsel %vm3692_vm14, %v3661_v54, %v4723_v1  ;;  %v4743_v27 = vunpack.i.l.bf16 %v7495_v48  ;;  %v3564_v35 = vsel %vm1754_vm2, %v7125_v59, %v4578_v13  ;;  %v3575_v39 = vsel %vm1754_vm2, %v7117_v9, %v4604_v34  ;;  %v7569_v48 = vld [vmem:[#allocation3 + $0x15a] sm:$0xff]  ;;  %v2533_v9 = vld [vmem:[#allocation3 + $0x169] sm:$0xff] }
 0x3fd   : > { %v4729_v12 = vunpack.i.h.bf16 %v4727_v18  ;;  %v4728_v45 = vunpack.i.l.bf16 %v4727_v18  ;;  %v3705_v18 = vsel %vm3692_vm14, %v3672_v38, %v4724_v5  ;;  %v3607_v5 = vsel %vm1886_vm9, %v3575_v39, %v4714_v0  ;;  %v2598_v39 = vld [vmem:[#allocation3 + $0x180] sm:$0xff] }
 0x3fe   : > { %5016 = vrot.lane.b32.xlu1 %v7452_v43, %s5227_s30  ;;  %5051 = vrot.lane.b32.xlu0 %v5050_v42, %s5229_s26  ;;  %v5070_v59 = vpack.i.bf16 %v7569_v48, %v7554_v19  ;;  %v3640_v34 = vsel %vm3626_vm12, %v3607_v5, %v4734_v32  ;;  %v2534_v32 = vld [vmem:[#allocation3 + $0x171] sm:$0xff] }
 0x3ff   : > { %v3727_v52 = vsel %vm3725_vm15, %v3694_v33, %v4728_v45  ;;  %v3738_v56 = vsel %vm3725_vm15, %v3705_v18, %v4729_v12  ;;  %v2636_v12 = vld [vmem:[#allocation3 + $0x4a] sm:$0xff]  ;;  %v3673_v0 = vsel %vm3659_vm13, %v3640_v34, %v4744_v16  ;;  %v4753_v33 = vunpack.i.l.bf16 %v7515_v25 }
 0x400   : > { %v4737_v40 = vpop.permute.xlu1 %4736  ;;  %v7550_v43 = vpop.permute.xlu0 %4771  ;;  %v7614_v34 = vld [vmem:[#allocation3 + $0x16a] sm:$0xff] }
 0x401   : > { %v4739_v58 = vunpack.i.h.bf16 %v4737_v40  ;;  %v4738_v37 = vunpack.i.l.bf16 %v4737_v40 }
 0x402   : > { %5026 = vrot.lane.b32.xlu1 %v5040_v22, %s5228_s13  ;;  %5061 = vrot.lane.b32.xlu0 %v7544_v11, %s5230_s8  ;;  %v3596_v22 = vsel %vm1886_vm9, %v3564_v35, %v4658_v61 }
 0x403   : > { %v3760_v54 = vsel %vm3758_vm0, %v3727_v52, %v4738_v37  ;;  %v3771_v38 = vsel %vm3758_vm0, %v3738_v56, %v4739_v58  ;;  %v3629_v13 = vsel %vm3626_vm12, %v3596_v22, %v4733_v49  ;;  %v4754_v37 = vunpack.i.h.bf16 %v7515_v25 }
 0x404   : > { %v4747_v1 = vpop.permute.xlu1 %4746  ;;  %v7573_v45 = vpop.permute.xlu0 %4781  ;;  %3982 = vmatmul.mubr.f32.gmra.mxu0 %v3760_v54  ;;  %4037 = vmatmul.mubr.f32.gmra.mxu1 %v3771_v38  ;;  %v3662_v61 = vsel %vm3659_vm13, %v3629_v13, %v4743_v27  ;;  %v5080_v49 = vpack.i.bf16 %v2534_v32, %v2533_v9  ;;  %v4763_v27 = vunpack.i.l.bf16 %v7531_v55  ;;  %v2599_v54 = vld [vmem:[#allocation3 + $0x188] sm:$0xff]  ;;  %v4608_v38 = vunpack.i.l.bf16 %v7358_v7 }
 0x405   : > { %v4749_v40 = vunpack.i.h.bf16 %v4747_v1  ;;  %v4748_v58 = vunpack.i.l.bf16 %v4747_v1  ;;  %4352 = vmatprep.mubr.msk.f32.mxu0 %vm1754_vm2, %v2636_v12  ;;  %4363 = vmatprep.mubr.msk.f32.mxu1 %vm1754_vm2, %v7265_v15  ;;  %v4764_v15 = vunpack.i.h.bf16 %v7531_v55  ;;  %v4659_v22 = vunpack.i.h.bf16 %v7420_v41  ;;  %v2637_v12 = vld [vmem:[#allocation3 + $0x52] sm:$0xff] }
 0x406   : > { %5036 = vrot.lane.b32.xlu1 %v5050_v42, %s5231_s12  ;;  %5071 = vrot.lane.b32.xlu0 %v5070_v59, %s5226_s11  ;;  %v4579_v42 = vunpack.i.h.bf16 %v7331_v10 }
 0x407   : > { %v3695_v18 = vsel %vm3692_vm14, %v3662_v61, %v4748_v58  ;;  %v3706_v52 = vsel %vm3692_vm14, %v3673_v0, %v4749_v40  ;;  %v3576_v40 = vsel %vm1754_vm2, %v7145_v23, %v4608_v38 }
 0x408   : > { %v4757_v56 = vpop.permute.xlu1 %4756  ;;  %v4792_v16 = vpop.permute.xlu0 %4791  ;;  %v3728_v35 = vsel %vm3725_vm15, %v3695_v18, %v4753_v33  ;;  %v3739_v25 = vsel %vm3725_vm15, %v3706_v52, %v4754_v37  ;;  %v3565_v9 = vsel %vm1754_vm2, %v7155_v14, %v4579_v42  ;;  %v7624_v14 = vld [vmem:[#allocation3 + $0x172] sm:$0xff]  ;;  %v4774_v37 = vunpack.i.h.bf16 %v7550_v43  ;;  %v2535_v52 = vld [vmem:[#allocation3 + $0x181] sm:$0xff] }
 0x409   : > { %v3761_v55 = vsel %vm3758_vm0, %v3728_v35, %v4763_v27  ;;  %v3772_v5 = vsel %vm3758_vm0, %v3739_v25, %v4764_v15  ;;  %v4758_v1 = vunpack.i.l.bf16 %v4757_v56  ;;  %v3597_v58 = vsel %vm1886_vm9, %v3565_v9, %v4659_v22 }
 0x40a   : > { %5046 = vrot.lane.b32.xlu1 %v7497_v63, %s5227_s30  ;;  %5081 = vrot.lane.b32.xlu0 %v5080_v49, %s5229_s26  ;;  %v7609_v63 = vpack.i.bf16 %v2599_v54, %v2598_v39  ;;  %v4759_v61 = vunpack.i.h.bf16 %v4757_v56  ;;  %v4773_v33 = vunpack.i.l.bf16 %v7550_v43  ;;  %v4784_v56 = vunpack.i.h.bf16 %v7573_v45  ;;  %v2536_v43 = vld [vmem:[#allocation3 + $0x189] sm:$0xff] }
 0x40b   : > { %3987 = vmatmul.mubr.f32.gmra.mxu0 %v3761_v55  ;;  %4042 = vmatmul.mubr.f32.gmra.mxu1 %v3772_v5  ;;  %v4783_v35 = vunpack.i.l.bf16 %v7573_v45  ;;  %v5110_v39 = vpack.i.bf16 %v2536_v43, %v2535_v52  ;;  %v4794_v22 = vunpack.i.h.bf16 %v4792_v16  ;;  %v4793_v55 = vunpack.i.l.bf16 %v4792_v16 }
 0x40c   : > { %4353 = vmatprep.mubr.msk.f32.mxu0 %vm1754_vm2, %v2637_v12  ;;  %4364 = vmatprep.mubr.msk.f32.mxu1 %vm1754_vm2, %v7283_v36  ;;  %v7605_v10 = vpop.permute.xlu1 %4766  ;;  %v7607_v41 = vpop.permute.xlu0 %4801  ;;  %v3630_v36 = vsel %vm3626_vm12, %v3597_v58, %v4758_v1  ;;  %v4609_v16 = vunpack.i.h.bf16 %v7358_v7  ;;  %v2600_v58 = vld [vmem:[#allocation3 + $0x198] sm:$0xff] }
 0x40d   : > { %v4768_v13 = vunpack.i.l.bf16 %v7605_v10  ;;  %v3663_v25 = vsel %vm3659_vm13, %v3630_v36, %v4773_v33  ;;  %v4769_v36 = vunpack.i.h.bf16 %v7605_v10 }
 0x40e   : > { %5056 = vrot.lane.b32.xlu1 %v5070_v59, %s5228_s13  ;;  %5091 = vrot.lane.b32.xlu0 %v7609_v63, %s5230_s8  ;;  %v5100_v59 = vpack.i.bf16 %v7624_v14, %v7614_v34  ;;  %v3577_v10 = vsel %vm1754_vm2, %v7197_v20, %v4609_v16  ;;  %v4804_v20 = vunpack.i.h.bf16 %v7607_v41 }
 0x40f   : > { %v3608_v0 = vsel %vm1886_vm9, %v3576_v40, %v4768_v13  ;;  %v4583_v13 = vunpack.i.l.bf16 %v7310_v17  ;;  %v2638_v40 = vld [vmem:[#allocation3 + $0x62] sm:$0xff] }
 0x410   : > { %v3641_v23 = vsel %vm3626_vm12, %v3608_v0, %v4759_v61  ;;  %v4777_v32 = vpop.permute.xlu1 %4776  ;;  %v7629_v18 = vpop.permute.xlu0 %4811  ;;  %v4663_v61 = vunpack.i.l.bf16 %v7378_v46 }
 0x411   : > { %v4779_v15 = vunpack.i.h.bf16 %v4777_v32  ;;  %v4778_v27 = vunpack.i.l.bf16 %v4777_v32  ;;  %v3674_v42 = vsel %vm3659_vm13, %v3641_v23, %v4774_v37  ;;  %v3566_v46 = vsel %vm1754_vm2, %v7207_v47, %v4583_v13 }
 0x412   : > { %5066 = vrot.lane.b32.xlu1 %v5080_v49, %s5231_s12  ;;  %5101 = vrot.lane.b32.xlu0 %v5100_v59, %s5226_s11  ;;  %v3598_v23 = vsel %vm1886_vm9, %v3566_v46, %v4663_v61  ;;  %v3609_v32 = vsel %vm1886_vm9, %v3577_v10, %v4769_v36  ;;  %v7701_v36 = vld [vmem:[#allocation3 + $0x182] sm:$0xff] }
 0x413   : > { %v3696_v54 = vsel %vm3692_vm14, %v3663_v25, %v4778_v27  ;;  %v3707_v38 = vsel %vm3692_vm14, %v3674_v42, %v4779_v15  ;;  %v4803_v25 = vunpack.i.l.bf16 %v7607_v41  ;;  %v2633_v42 = vld [vmem:[#allocation3 + $0x1a1] sm:$0xff] }
 0x414   : > { %v4787_v5 = vpop.permute.xlu1 %4786  ;;  %v7641_v1 = vpop.permute.xlu0 %4821  ;;  %v3729_v45 = vsel %vm3725_vm15, %v3696_v54, %v4783_v35  ;;  %v3740_v49 = vsel %vm3725_vm15, %v3707_v38, %v4784_v56  ;;  %v4613_v54 = vunpack.i.l.bf16 %v7333_v62 }
 0x415   : > { %v3762_v12 = vsel %vm3758_vm0, %v3729_v45, %v4793_v55  ;;  %v3773_v9 = vsel %vm3758_vm0, %v3740_v49, %v4794_v22  ;;  %v4789_v37 = vunpack.i.h.bf16 %v4787_v5  ;;  %v4788_v33 = vunpack.i.l.bf16 %v4787_v5 }
 0x416   : > { %5076 = vrot.lane.b32.xlu1 %v7544_v11, %s5227_s30  ;;  %5111 = vrot.lane.b32.xlu0 %v5110_v39, %s5229_s26  ;;  %v3578_v61 = vsel %vm1754_vm2, %v7237_v60, %v4613_v54 }
 0x417   : > { %3992 = vmatmul.mubr.f32.gmra.mxu0 %v3762_v12  ;;  %4047 = vmatmul.mubr.f32.gmra.mxu1 %v3773_v9  ;;  %v3642_v27 = vsel %vm3626_vm12, %v3609_v32, %v4789_v37 }
 0x418   : > { %4354 = vmatprep.mubr.msk.f32.mxu0 %vm1754_vm2, %v2638_v40  ;;  %v4797_v11 = vpop.permute.xlu1 %4796  ;;  %v7655_v0 = vpop.permute.xlu0 %4831  ;;  %4365 = vmatprep.mubr.msk.f32.mxu1 %vm1754_vm2, %v7318_v53  ;;  %v3631_v53 = vsel %vm3626_vm12, %v3598_v23, %v4788_v33 }
 0x419   : > { %v4799_v17 = vunpack.i.h.bf16 %v4797_v11  ;;  %v4798_v7 = vunpack.i.l.bf16 %v4797_v11 }
 0x41a   : > { %5086 = vrot.lane.b32.xlu1 %v5100_v59, %s5228_s13  ;;  %3398 = vrot.lane.b32.xlu0 %v2600_v58, %s5230_s8  ;;  %v7671_v59 = vld [vmem:[#allocation3 + $0x18a] sm:$0xff] }
 0x41b   : > { %v3664_v56 = vsel %vm3659_vm13, %v3631_v53, %v4798_v7  ;;  %v3675_v47 = vsel %vm3659_vm13, %v3642_v27, %v4799_v17  ;;  %v2639_v58 = vld [vmem:[#allocation3 + $0x6a] sm:$0xff]  ;;  %v4814_v17 = vunpack.i.h.bf16 %v7629_v18  ;;  %v2632_v7 = vld [vmem:[#allocation3 + $0x199] sm:$0xff]  ;;  %v4614_v27 = vunpack.i.h.bf16 %v7333_v62 }
 0x41c   : > { %v4807_v52 = vpop.permute.xlu1 %4806  ;;  %v7667_v15 = vpop.permute.xlu0 %4841  ;;  %v3697_v45 = vsel %vm3692_vm14, %v3664_v56, %v4803_v25  ;;  %v3708_v49 = vsel %vm3692_vm14, %v3675_v47, %v4804_v20  ;;  %v4833_v56 = vunpack.i.l.bf16 %v7655_v0  ;;  %v2601_v47 = vld [vmem:[#allocation3 + $0x1a0] sm:$0xff] }
 0x41d   : > { %v4809_v35 = vunpack.i.h.bf16 %v4807_v52  ;;  %v4808_v43 = vunpack.i.l.bf16 %v4807_v52 }
 0x41e   : > { %5096 = vrot.lane.b32.xlu1 %v5110_v39, %s5231_s12  ;;  %3272 = vrot.lane.b32.xlu0 %v7671_v59, %s5228_s13  ;;  %v4823_v39 = vunpack.i.l.bf16 %v7641_v1 }
 0x41f   : > { %v3730_v12 = vsel %vm3725_vm15, %v3697_v45, %v4808_v43  ;;  %v3741_v41 = vsel %vm3725_vm15, %v3708_v49, %v4809_v35  ;;  %v4824_v35 = vunpack.i.h.bf16 %v7641_v1  ;;  %v4843_v43 = vunpack.i.l.bf16 %v7667_v15 }
 0x420   : > { %v4817_v38 = vpop.permute.xlu1 %4816  ;;  %v7681_v22 = vpop.permute.xlu0 %4851  ;;  %v3610_v11 = vsel %vm1886_vm9, %v3578_v61, %v4823_v39 }
 0x421   : > { %v4819_v55 = vunpack.i.h.bf16 %v4817_v38  ;;  %v4818_v5 = vunpack.i.l.bf16 %v4817_v38  ;;  %v3643_v23 = vsel %vm3626_vm12, %v3610_v11, %v4814_v17 }
 0x422   : > { %5106 = vrot.lane.b32.xlu1 %v7609_v63, %s5227_s30  ;;  %3528 = vrot.lane.b32.xlu0 %v2633_v42, %s5231_s12  ;;  %v4813_v63 = vunpack.i.l.bf16 %v7629_v18  ;;  %v4834_v18 = vunpack.i.h.bf16 %v7655_v0  ;;  %v4853_v0 = vunpack.i.l.bf16 %v7681_v22 }
 0x423   : > { %v3763_v9 = vsel %vm3758_vm0, %v3730_v12, %v4818_v5  ;;  %v3774_v13 = vsel %vm3758_vm0, %v3741_v41, %v4819_v55  ;;  %v4854_v55 = vunpack.i.h.bf16 %v7681_v22  ;;  %v2640_v22 = vld [vmem:[#allocation3 + $0x7a] sm:$0xff] }
 0x424   : > { %v4827_v16 = vpop.permute.xlu1 %4826  ;;  %v7693_v40 = vpop.permute.xlu0 %4861  ;;  %3997 = vmatmul.mubr.f32.gmra.mxu0 %v3763_v9  ;;  %4052 = vmatmul.mubr.f32.gmra.mxu1 %v3774_v13  ;;  %v3632_v10 = vsel %vm3626_vm12, %v7387_v4, %v4813_v63  ;;  %v4844_v4 = vunpack.i.h.bf16 %v7667_v15  ;;  %v3579_v15 = vsel %vm1754_vm2, %v7225_v24, %v4614_v27  ;;  %v2651_v9 = vld [vmem:[#allocation3 + $0xfa] sm:$0xff]  ;;  %v3633_v13 = vsel %vm3626_vm12, %v7443_v21, %v4843_v43 }
 0x425   : > { %4355 = vmatprep.mubr.msk.f32.mxu0 %vm1754_vm2, %v2639_v58  ;;  %4366 = vmatprep.mubr.msk.f32.mxu1 %vm1754_vm2, %v7346_v30  ;;  %v4829_v37 = vunpack.i.h.bf16 %v4827_v16  ;;  %v4828_v33 = vunpack.i.l.bf16 %v4827_v16  ;;  %v3611_v39 = vsel %vm1886_vm9, %v3579_v15, %v4824_v35  ;;  %v3666_v24 = vsel %vm3659_vm13, %v3633_v13, %v4853_v0 }
 0x426   : > { %3270 = vrot.lane.b32.xlu1 %v7701_v36, %s5228_s13  ;;  %v3644_v16 = vsel %vm3626_vm12, %v3611_v39, %v4844_v4  ;;  %v4864_v11 = vunpack.i.h.bf16 %v7693_v40  ;;  %s215_s13 = sand.u32 1, %s5208_s19  }
 0x427   : > { %v3665_v30 = vsel %vm3659_vm13, %v3632_v10, %v4828_v33  ;;  %v3676_v32 = vsel %vm3659_vm13, %v3643_v23, %v4829_v37  ;;  %v3677_v63 = vsel %vm3659_vm13, %v3644_v16, %v4854_v55  ;;  %v4863_v37 = vunpack.i.l.bf16 %v7693_v40  ;;  %v2641_v40 = vld [vmem:[#allocation3 + $0x82] sm:$0xff]  ;;  %s216_s15 = scalar_lea.vmem [#allocation4], %s215_s13  ;;  %s4242_s26 = scalar_lea.sflag [#allocation5], %s215_s13 }
 0x428   : > { %v4837_v60 = vpop.permute.xlu1 %4836  ;;  %v4872_v46 = vpop.permute.xlu0 %4871  ;;  %v3698_v38 = vsel %vm3692_vm14, %v3665_v30, %v4833_v56  ;;  %v3709_v62 = vsel %vm3692_vm14, %v3676_v32, %v4834_v18  ;;  %v4618_v32 = vunpack.i.l.bf16 %v7365_v51  ;;  %v2652_v18 = vld [vmem:[#allocation3 + $0x10a] sm:$0xff]  ;;  %s4254_s16 = sshll.u32 %s216_s15, 4  ;;  %s4255_s16 = int_to_ptr.vmem [resolvable:$true] %s4254_s16 }
 0x429   : > { %v4839_v52 = vunpack.i.h.bf16 %v4837_v60  ;;  %v4838_v53 = vunpack.i.l.bf16 %v4837_v60  ;;  %v4874_v17 = vunpack.i.h.bf16 %v4872_v46  ;;  %s5156_s6 = scalar_lea.vmem %s4255_s16, 16 }
 0x42a   : > { %3526 = vrot.lane.b32.xlu1 %v2632_v7, %s5231_s12  ;;  %v4873_v7 = vunpack.i.l.bf16 %v4872_v46  ;;  %v3580_v35 = vsel %vm1754_vm2, %v7250_v6, %v4618_v32  ;;  %p5157_p11 = scmp.ne.s32.totalorder %s4255_s16, %s5156_s6 }
 0x42b   : > { %v3731_v1 = vsel %vm3725_vm15, %v3698_v38, %v4838_v53  ;;  %v3742_v5 = vsel %vm3725_vm15, %v3709_v62, %v4839_v52 }
 0x42c   : > { %v4847_v20 = vpop.permute.xlu1 %4846  ;;  %v7719_v25 = vpop.permute.xlu0 %4881  ;;  %p5158_p12 = pnand %p5157_p11, %p5301_p5 }
 0x42d   : > { %v4849_v42 = vunpack.i.h.bf16 %v4847_v20  ;;  %v4848_v54 = vunpack.i.l.bf16 %v4847_v20 }
 0x42e   : > { %3400 = vrot.lane.b32.xlu1 %v2601_v47, %s5230_s8  ;;  %p5159_p13 = pneg %p5158_p12  ;;  %s5160_s8 = sshll.u32 %s5232_s7, 4  ;;  %s5161_s8 = int_to_ptr.vmem [resolvable:$false] %s5160_s8 }
 0x42f   : > { %v3764_v45 = vsel %vm3758_vm0, %v3731_v1, %v4848_v54  ;;  %v3775_v49 = vsel %vm3758_vm0, %v3742_v5, %v4849_v42  ;;  %v4884_v42 = vunpack.i.h.bf16 %v7719_v25  ;;  %v4883_v54 = vunpack.i.l.bf16 %v7719_v25  ;;  %s5162_s22 = scalar_lea.vmem %s5161_s8, 32  ;;  %p5163_p0 = scmp.lt.s32.totalorder %s4255_s16, %s5161_s8 }
 0x430   : > { %v4857_v12 = vpop.permute.xlu1 %4856  ;;  %v4892_v41 = vpop.permute.xlu0 %4891  ;;  %4002 = vmatmul.mubr.f32.gmra.mxu0 %v3764_v45  ;;  %4057 = vmatmul.mubr.f32.gmra.mxu1 %v3775_v49  ;;  %p5164_p1 = scmp.lt.s32.totalorder %s5162_s22, %s5156_s6 }
 0x431   : > { %v4859_v58 = vunpack.i.h.bf16 %v4857_v12  ;;  %v4858_v61 = vunpack.i.l.bf16 %v4857_v12  ;;  %4356 = vmatprep.mubr.msk.f32.mxu0 %vm1754_vm2, %v2640_v22  ;;  %4367 = vmatprep.mubr.msk.f32.mxu1 %vm1754_vm2, %v2651_v9  ;;  %v4894_v5 = vunpack.i.h.bf16 %v4892_v41  ;;  %v4893_v15 = vunpack.i.l.bf16 %v4892_v41 }
 0x432   : > { %p5165_p2 = por %p5164_p1, %p5163_p0 }
 0x433   : > { %v3699_v33 = vsel %vm3692_vm14, %v3666_v24, %v4858_v61  ;;  %v3710_v21 = vsel %vm3692_vm14, %v3677_v63, %v4859_v58  ;;  %v4619_v58 = vunpack.i.h.bf16 %v7365_v51  ;;  %v2642_v61 = vld [vmem:[#allocation3 + $0x92] sm:$0xff] }
 0x434   : > { %v4867_v60 = vpop.permute.xlu1 %4866  ;;  %v4902_v10 = vpop.permute.xlu0 %4901  ;;  %v3732_v23 = vsel %vm3725_vm15, %v3699_v33, %v4863_v37  ;;  %v3743_v30 = vsel %vm3725_vm15, %v3710_v21, %v4864_v11  ;;  %p5166_p3 = pnand %p5165_p2, %p5159_p13 }
 0x435   : > { %v3765_v52 = vsel %vm3758_vm0, %v3732_v23, %v4873_v7  ;;  %v3776_v53 = vsel %vm3758_vm0, %v3743_v30, %v4874_v17  ;;  %v4868_v27 = vunpack.i.l.bf16 %v4867_v60  ;;  %v4869_v4 = vunpack.i.h.bf16 %v4867_v60  ;;  %v5143_v7 = vld [vmem:[#allocation3 + $0xe0] sm:$0xff] }
 0x436   : > { %4007 = vmatmul.mubr.f32.gmra.mxu0 %v3765_v52  ;;  %4062 = vmatmul.mubr.f32.gmra.mxu1 %v3776_v53  ;;  %v4904_v39 = vunpack.i.h.bf16 %v4902_v10  ;;  %v4903_v12 = vunpack.i.l.bf16 %v4902_v10  ;;  %v3581_v60 = vsel %vm1754_vm2, %v5143_v7, %v4619_v58 }
 0x437   : > { %4357 = vmatprep.mubr.msk.f32.mxu0 %vm1754_vm2, %v2641_v40  ;;  %4368 = vmatprep.mubr.msk.f32.mxu1 %vm1754_vm2, %v2652_v18  ;;  %v3634_v43 = vsel %vm3626_vm12, %v7446_v8, %v4868_v27 }
 0x438   : > { %v4877_v46 = vpop.permute.xlu1 %4876  ;;  %v4912_v56 = vpop.permute.xlu0 %4911  ;;  %v3667_v6 = vsel %vm3659_vm13, %v3634_v43, %v4883_v54 }
 0x439   : > { %v4878_v47 = vunpack.i.l.bf16 %v4877_v46  ;;  %v4879_v24 = vunpack.i.h.bf16 %v4877_v46  ;;  %v4914_v40 = vunpack.i.h.bf16 %v4912_v56  ;;  %v4913_v18 = vunpack.i.l.bf16 %v4912_v56 }
 0x43a   : > { %v4623_v46 = vunpack.i.l.bf16 %v7341_v28 }
 0x43b   : > { %v3612_v20 = vsel %vm1886_vm9, %v3580_v35, %v4878_v47  ;;  %v3613_v51 = vsel %vm1886_vm9, %v3581_v60, %v4879_v24  ;;  %v4624_v24 = vunpack.i.h.bf16 %v7341_v28 }
 0x43c   : > { %v3645_v38 = vsel %vm3626_vm12, %v3612_v20, %v4869_v4  ;;  %v4887_v62 = vpop.permute.xlu1 %4886  ;;  %v7759_v55 = vpop.permute.xlu0 %4921 }
 0x43d   : > { %v4889_v0 = vunpack.i.h.bf16 %v4887_v62  ;;  %v4888_v1 = vunpack.i.l.bf16 %v4887_v62  ;;  %v3678_v45 = vsel %vm3659_vm13, %v3645_v38, %v4884_v42 }
 0x43f   : > { %v3700_v8 = vsel %vm3692_vm14, %v3667_v6, %v4888_v1  ;;  %v3711_v49 = vsel %vm3692_vm14, %v3678_v45, %v4889_v0  ;;  %v4923_v45 = vunpack.i.l.bf16 %v7759_v55 }
 0x440   : > { %v4897_v25 = vpop.permute.xlu1 %4896  ;;  %v7765_v22 = vpop.permute.xlu0 %4931  ;;  %v3733_v9 = vsel %vm3725_vm15, %v3700_v8, %v4893_v15  ;;  %v3744_v13 = vsel %vm3725_vm15, %v3711_v49, %v4894_v5  ;;  %v2643_v5 = vld [vmem:[#allocation3 + $0x9a] sm:$0xff]  ;;  %v5144_v15 = vld [vmem:[#allocation3 + $0xf0] sm:$0xff] }
 0x441   : > { %v3766_v16 = vsel %vm3758_vm0, %v3733_v9, %v4903_v12  ;;  %v3777_v41 = vsel %vm3758_vm0, %v3744_v13, %v4904_v39  ;;  %v4899_v37 = vunpack.i.h.bf16 %v4897_v25  ;;  %v4898_v33 = vunpack.i.l.bf16 %v4897_v25 }
 0x442   : > { %4012 = vmatmul.mubr.f32.gmra.mxu0 %v3766_v16  ;;  %4067 = vmatmul.mubr.f32.gmra.mxu1 %v3777_v41  ;;  %v4933_v42 = vunpack.i.l.bf16 %v7765_v22  ;;  %v3582_v6 = vsel %vm1754_vm2, %v5144_v15, %v4623_v46  ;;  %v4924_v12 = vunpack.i.h.bf16 %v7759_v55  ;;  %v3636_v13 = vsel %vm3626_vm12, %v7405_v2, %v4923_v45 }
 0x443   : > { %4358 = vmatprep.mubr.msk.f32.mxu0 %vm1754_vm2, %v2642_v61  ;;  %4369 = vmatprep.mubr.msk.f32.mxu1 %vm1754_vm2, %v7418_v44  ;;  %v3635_v30 = vsel %vm3626_vm12, %v7402_v26, %v4898_v33  ;;  %v3646_v32 = vsel %vm3626_vm12, %v3613_v51, %v4899_v37  ;;  %v4934_v37 = vunpack.i.h.bf16 %v7765_v22 }
 0x444   : > { %v4907_v63 = vpop.permute.xlu1 %4906  ;;  %v7773_v11 = vpop.permute.xlu0 %4941  ;;  %v3614_v8 = vsel %vm1886_vm9, %v3582_v6, %v4933_v42 }
 0x445   : > { %v4909_v21 = vunpack.i.h.bf16 %v4907_v63  ;;  %v4908_v17 = vunpack.i.l.bf16 %v4907_v63  ;;  %v3647_v16 = vsel %vm3626_vm12, %v3614_v8, %v4924_v12  ;;  %v4944_v63 = vunpack.i.h.bf16 %v7773_v11 }
 0x446   : > { %v4943_v55 = vunpack.i.l.bf16 %v7773_v11 }
 0x447   : > { %v3668_v52 = vsel %vm3659_vm13, %v3635_v30, %v4908_v17  ;;  %v3679_v53 = vsel %vm3659_vm13, %v3646_v32, %v4909_v21  ;;  %v5145_v32 = vld [vmem:[#allocation3 + $0xf8] sm:$0xff] }
 0x448   : > { %v4917_v10 = vpop.permute.xlu1 %4916  ;;  %v7779_v23 = vpop.permute.xlu0 %4951  ;;  %v3701_v20 = vsel %vm3692_vm14, %v3668_v52, %v4913_v18  ;;  %v3712_v26 = vsel %vm3692_vm14, %v3679_v53, %v4914_v40  ;;  %v2644_v18 = vld [vmem:[#allocation3 + $0xaa] sm:$0xff] }
 0x449   : > { %v4919_v44 = vunpack.i.h.bf16 %v4917_v10  ;;  %v4918_v27 = vunpack.i.l.bf16 %v4917_v10  ;;  %v4954_v33 = vunpack.i.h.bf16 %v7779_v23  ;;  %v4953_v2 = vunpack.i.l.bf16 %v7779_v23 }
 0x44a   : > { %v3583_v23 = vsel %vm1754_vm2, %v5145_v32, %v4624_v24 }
 0x44b   : > { %v3734_v54 = vsel %vm3725_vm15, %v3701_v20, %v4918_v27  ;;  %v3745_v38 = vsel %vm3725_vm15, %v3712_v26, %v4919_v44  ;;  %v3615_v44 = vsel %vm1886_vm9, %v3583_v23, %v4934_v37  ;;  %v3637_v46 = vsel %vm3626_vm12, %v7464_v3, %v4953_v2  ;;  %v5147_v37 = vld [vmem:[#allocation3 + $0x110] sm:$0xff] }
 0x44c   : > { %v4927_v47 = vpop.permute.xlu1 %4926  ;;  %v7787_v35 = vpop.permute.xlu0 %4961 }
 0x44d   : > { %v4929_v4 = vunpack.i.h.bf16 %v4927_v47  ;;  %v4928_v43 = vunpack.i.l.bf16 %v4927_v47  ;;  %v4964_v28 = vunpack.i.h.bf16 %v7787_v35  ;;  %v4963_v30 = vunpack.i.l.bf16 %v7787_v35 }
 0x44e   : > { %v3648_v47 = vsel %vm3626_vm12, %v3615_v44, %v4954_v33 }
 0x44f   : > { %v3767_v62 = vsel %vm3758_vm0, %v3734_v54, %v4928_v43  ;;  %v3778_v56 = vsel %vm3758_vm0, %v3745_v38, %v4929_v4  ;;  %v3670_v43 = vsel %vm3659_vm13, %v3637_v46, %v4963_v30  ;;  %v3681_v20 = vsel %vm3659_vm13, %v3648_v47, %v4964_v28 }
 0x450   : > { %v4937_v0 = vpop.permute.xlu1 %4936  ;;  %v7796_v1 = vpop.permute.xlu0 %4971  ;;  %4017 = vmatmul.mubr.f32.gmra.mxu0 %v3767_v62  ;;  %4072 = vmatmul.mubr.f32.gmra.mxu1 %v3778_v56  ;;  %v8393_v56 = vld [vmem:[#allocation12_spill] sm:$0xff] }
 0x451   : > { %4359 = vmatprep.mubr.msk.f32.mxu0 %vm1754_vm2, %v2643_v5  ;;  %4370 = vmatprep.mubr.msk.f32.mxu1 %vm1754_vm2, %v7455_v57  ;;  %v4939_v49 = vunpack.i.h.bf16 %v4937_v0  ;;  %v4938_v39 = vunpack.i.l.bf16 %v4937_v0  ;;  %v4974_v54 = vunpack.i.h.bf16 %v7796_v1  ;;  %v4973_v3 = vunpack.i.l.bf16 %v7796_v1 }
 0x452   : > { %v4628_v0 = vunpack.i.l.bf16 %v8393_v56  ;;  %v4629_v1 = vunpack.i.h.bf16 %v8393_v56 }
 0x453   : > { %v3669_v41 = vsel %vm3659_vm13, %v3636_v13, %v4938_v39  ;;  %v3680_v58 = vsel %vm3659_vm13, %v3647_v16, %v4939_v49 }
 0x454   : > { %v4947_v25 = vpop.permute.xlu1 %4946  ;;  %v7805_v9 = vpop.permute.xlu0 %4981  ;;  %v3702_v51 = vsel %vm3692_vm14, %v3669_v41, %v4943_v55  ;;  %v3713_v10 = vsel %vm3692_vm14, %v3680_v58, %v4944_v63  ;;  %v3585_v33 = vsel %vm1754_vm2, %v5147_v37, %v4629_v1 }
 0x455   : > { %v4949_v61 = vunpack.i.h.bf16 %v4947_v25  ;;  %v4948_v57 = vunpack.i.l.bf16 %v4947_v25  ;;  %v5146_v25 = vld [vmem:[#allocation3 + $0x108] sm:$0xff]  ;;  %v4984_v41 = vunpack.i.h.bf16 %v7805_v9 }
 0x456   : > { %v3584_v13 = vsel %vm1754_vm2, %v5146_v25, %v4628_v0 }
 0x457   : > { %v3735_v11 = vsel %vm3725_vm15, %v3702_v51, %v4948_v57  ;;  %v3746_v22 = vsel %vm3725_vm15, %v3713_v10, %v4949_v61 }
 0x458   : > { %v4957_v21 = vpop.permute.xlu1 %4956  ;;  %v7818_v17 = vpop.permute.xlu0 %4991 }
 0x459   : > { %v4959_v7 = vunpack.i.h.bf16 %v4957_v21  ;;  %v4958_v60 = vunpack.i.l.bf16 %v4957_v21  ;;  %v4993_v24 = vunpack.i.l.bf16 %v7818_v17  ;;  %v3617_v21 = vsel %vm1886_vm9, %v3585_v33, %v4984_v41 }
 0x45a   : > { %v4994_v51 = vunpack.i.h.bf16 %v7818_v17 }
 0x45b   : > { %v3768_v52 = vsel %vm3758_vm0, %v3735_v11, %v4958_v60  ;;  %v3779_v53 = vsel %vm3758_vm0, %v3746_v22, %v4959_v7  ;;  %v8394_v11 = vld [vmem:[#allocation53_spill] sm:$0xff] }
 0x45c   : > { %v4967_v27 = vpop.permute.xlu1 %4966  ;;  %v7830_v40 = vpop.permute.xlu0 %5001  ;;  %4022 = vmatmul.mubr.f32.gmra.mxu0 %v3768_v52  ;;  %4077 = vmatmul.mubr.f32.gmra.mxu1 %v3779_v53  ;;  %v4633_v22 = vunpack.i.l.bf16 %v8394_v11 }
 0x45d   : > { %v4969_v35 = vunpack.i.h.bf16 %v4967_v27  ;;  %v4968_v4 = vunpack.i.l.bf16 %v4967_v27  ;;  %4360 = vmatprep.mubr.msk.f32.mxu0 %vm1754_vm2, %v2644_v18  ;;  %4371 = vmatprep.mubr.msk.f32.mxu1 %vm1754_vm2, %v7466_v29  ;;  %v4983_v29 = vunpack.i.l.bf16 %v7805_v9  ;;  %v5003_v10 = vunpack.i.l.bf16 %v7830_v40 }
 0x45e   : > { %v5004_v17 = vunpack.i.h.bf16 %v7830_v40 }
 0x45f   : > { %v3703_v26 = vsel %vm3692_vm14, %v3670_v43, %v4968_v4  ;;  %v3714_v42 = vsel %vm3692_vm14, %v3681_v20, %v4969_v35  ;;  %v3616_v58 = vsel %vm1886_vm9, %v3584_v13, %v4983_v29  ;;  %v4634_v35 = vunpack.i.h.bf16 %v8394_v11  ;;  %v5148_v4 = vld [vmem:[#allocation3 + $0x120] sm:$0xff] }
 0x460   : > { %v4977_v38 = vpop.permute.xlu1 %4976  ;;  %v7844_v62 = vpop.permute.xlu0 %5011  ;;  %v3736_v6 = vsel %vm3725_vm15, %v3703_v26, %v4973_v3  ;;  %v3747_v45 = vsel %vm3725_vm15, %v3714_v42, %v4974_v54  ;;  %v3586_v43 = vsel %vm1754_vm2, %v5148_v4, %v4633_v22 }
 0x461   : > { %v4979_v5 = vunpack.i.h.bf16 %v4977_v38  ;;  %v4978_v15 = vunpack.i.l.bf16 %v4977_v38  ;;  %v5013_v23 = vunpack.i.l.bf16 %v7844_v62  ;;  %v5014_v26 = vunpack.i.h.bf16 %v7844_v62 }
 0x463   : > { %v3769_v8 = vsel %vm3758_vm0, %v3736_v6, %v4978_v15  ;;  %v3780_v49 = vsel %vm3758_vm0, %v3747_v45, %v4979_v5  ;;  %v3618_v42 = vsel %vm1886_vm9, %v3586_v43, %v5013_v23  ;;  %v5149_v15 = vld [vmem:[#allocation3 + $0x128] sm:$0xff]  ;;  %v5151_v23 = vld [vmem:[#allocation3 + $0x140] sm:$0xff] }
 0x464   : > { %v4987_v39 = vpop.permute.xlu1 %4986  ;;  %v7852_v12 = vpop.permute.xlu0 %5021  ;;  %4027 = vmatmul.mubr.f32.gmra.mxu0 %v3769_v8  ;;  %4082 = vmatmul.mubr.f32.gmra.mxu1 %v3780_v49  ;;  %v8396_v43 = vld [vmem:[#allocation10_spill] sm:$0xff] }
 0x465   : > { %v4988_v16 = vunpack.i.l.bf16 %v4987_v39  ;;  %4372 = vmatprep.mubr.msk.f32.mxu1 %vm1754_vm2, %v7501_v31  ;;  %v4989_v61 = vunpack.i.h.bf16 %v4987_v39  ;;  %v5023_v56 = vunpack.i.l.bf16 %v7852_v12  ;;  %v5024_v39 = vunpack.i.h.bf16 %v7852_v12 }
 0x467   : > { %v3649_v57 = vsel %vm3626_vm12, %v3616_v58, %v4988_v16  ;;  %v3650_v9 = vsel %vm3626_vm12, %v3617_v21, %v4989_v61  ;;  %v8395_v16 = vld [vmem:[#allocation17_spill] sm:$0xff]  ;;  %v5150_v21 = vld [vmem:[#allocation3 + $0x138] sm:$0xff] }
 0x468   : > { %v4997_v63 = vpop.permute.xlu1 %4996  ;;  %v7862_v55 = vpop.permute.xlu0 %5031  ;;  %v3682_v31 = vsel %vm3659_vm13, %v3649_v57, %v4993_v24  ;;  %v3683_v53 = vsel %vm3659_vm13, %v3650_v9, %v4994_v51  ;;  %v4638_v41 = vunpack.i.l.bf16 %v8395_v16 }
 0x469   : > { %v4998_v2 = vunpack.i.l.bf16 %v4997_v63  ;;  %v4999_v7 = vunpack.i.h.bf16 %v4997_v63  ;;  %v5033_v1 = vunpack.i.l.bf16 %v7862_v55  ;;  %v5034_v12 = vunpack.i.h.bf16 %v7862_v55 }
 0x46b   : > { %v3715_v60 = vsel %vm3692_vm14, %v3682_v31, %v4998_v2  ;;  %v3716_v18 = vsel %vm3692_vm14, %v3683_v53, %v4999_v7  ;;  %v4639_v2 = vunpack.i.h.bf16 %v8395_v16  ;;  %v3588_v31 = vsel %vm1754_vm2, %v5150_v21, %v4638_v41  ;;  %v5153_v16 = vld [vmem:[#allocation3 + $0x158] sm:$0xff] }
 0x46c   : > { %v5007_v28 = vpop.permute.xlu1 %5006  ;;  %v7871_v30 = vpop.permute.xlu0 %5041  ;;  %v3748_v52 = vsel %vm3725_vm15, %v3715_v60, %v5003_v10  ;;  %v3749_v54 = vsel %vm3725_vm15, %v3716_v18, %v5004_v17 }
 0x46d   : > { %v5008_v32 = vunpack.i.l.bf16 %v5007_v28  ;;  %v5009_v44 = vunpack.i.h.bf16 %v5007_v28  ;;  %v5044_v60 = vunpack.i.h.bf16 %v7871_v30 }
 0x46f   : > { %v3781_v27 = vsel %vm3758_vm0, %v3748_v52, %v5008_v32  ;;  %v3782_v38 = vsel %vm3758_vm0, %v3749_v54, %v5009_v44  ;;  %v3589_v52 = vsel %vm1754_vm2, %v5151_v23, %v4639_v2 }
 0x470   : > { %v5017_v46 = vpop.permute.xlu1 %5016  ;;  %v7880_v47 = vpop.permute.xlu0 %5051  ;;  %4087 = vmatmul.mubr.f32.gmra.mxu1 %v3781_v27 }
 0x471   : > { %v5018_v20 = vunpack.i.l.bf16 %v5017_v46  ;;  %4373 = vmatprep.mubr.msk.f32.mxu1 %vm1754_vm2, %v7512_v50  ;;  %v5019_v40 = vunpack.i.h.bf16 %v5017_v46  ;;  %v3587_v50 = vsel %vm1754_vm2, %v5149_v15, %v4634_v35  ;;  %v5053_v22 = vunpack.i.l.bf16 %v7880_v47  ;;  %v5152_v15 = vld [vmem:[#allocation3 + $0x150] sm:$0xff] }
 0x472   : > { %v3619_v62 = vsel %vm1886_vm9, %v3587_v50, %v5014_v26  ;;  %v5054_v46 = vunpack.i.h.bf16 %v7880_v47 }
 0x473   : > { %v3651_v3 = vsel %vm3626_vm12, %v3618_v42, %v5018_v20  ;;  %v3652_v45 = vsel %vm3626_vm12, %v3619_v62, %v5019_v40  ;;  %v4643_v20 = vunpack.i.l.bf16 %v8396_v43 }
 0x474   : > { %v5027_v0 = vpop.permute.xlu1 %5026  ;;  %v7892_v5 = vpop.permute.xlu0 %5061  ;;  %4092 = vmatmul.mubr.f32.gmra.mxu1 %v3782_v38  ;;  %v3684_v6 = vsel %vm3659_vm13, %v3651_v3, %v5023_v56  ;;  %v3685_v57 = vsel %vm3659_vm13, %v3652_v45, %v5024_v39 }
 0x475   : > { %v5028_v29 = vunpack.i.l.bf16 %v5027_v0  ;;  %4374 = vmatprep.mubr.msk.f32.mxu1 %vm1754_vm2, %v7554_v19  ;;  %v5029_v8 = vunpack.i.h.bf16 %v5027_v0  ;;  %v5043_v19 = vunpack.i.l.bf16 %v7871_v30  ;;  %v5063_v35 = vunpack.i.l.bf16 %v7892_v5 }
 0x476   : > { %v5064_v56 = vunpack.i.h.bf16 %v7892_v5  ;;  %v4644_v0 = vunpack.i.h.bf16 %v8396_v43  ;;  %v3590_v50 = vsel %vm1754_vm2, %v5152_v15, %v4643_v20 }
 0x477   : > { %v3717_v49 = vsel %vm3692_vm14, %v3684_v6, %v5028_v29  ;;  %v3718_v37 = vsel %vm3692_vm14, %v3685_v57, %v5029_v8  ;;  %v3620_v51 = vsel %vm1886_vm9, %v3588_v31, %v5043_v19 }
 0x478   : > { %v5037_v25 = vpop.permute.xlu1 %5036  ;;  %v7903_v13 = vpop.permute.xlu0 %5071  ;;  %v3750_v61 = vsel %vm3725_vm15, %v3717_v49, %v5033_v1  ;;  %v3751_v10 = vsel %vm3725_vm15, %v3718_v37, %v5034_v12  ;;  %v3591_v41 = vsel %vm1754_vm2, %v5153_v16, %v4644_v0 }
 0x479   : > { %v5038_v58 = vunpack.i.l.bf16 %v5037_v25  ;;  %v5039_v24 = vunpack.i.h.bf16 %v5037_v25  ;;  %v5074_v6 = vunpack.i.h.bf16 %v7903_v13 }
 0x47b   : > { %v3783_v63 = vsel %vm3758_vm0, %v3750_v61, %v5038_v58  ;;  %v3784_v11 = vsel %vm3758_vm0, %v3751_v10, %v5039_v24 }
 0x47c   : > { %v5047_v33 = vpop.permute.xlu1 %5046  ;;  %4097 = vmatmul.mubr.f32.gmra.mxu1 %v3783_v63  ;;  %v7914_v7 = vpop.permute.xlu0 %5081 }
 0x47d   : > { %v5048_v9 = vunpack.i.l.bf16 %v5047_v33  ;;  %4375 = vmatprep.mubr.msk.f32.mxu1 %vm1754_vm2, %v7569_v48  ;;  %v5049_v55 = vunpack.i.h.bf16 %v5047_v33  ;;  %v3621_v48 = vsel %vm1886_vm9, %v3589_v52, %v5044_v60  ;;  %v5083_v1 = vunpack.i.l.bf16 %v7914_v7  ;;  %v8397_v33 = vld [vmem:[#allocation55_spill] sm:$0xff] }
 0x47e   : > { %v5084_v63 = vunpack.i.h.bf16 %v7914_v7  ;;  %v4648_v2 = vunpack.i.l.bf16 %v8397_v33 }
 0x47f   : > { %v3653_v28 = vsel %vm3626_vm12, %v3620_v51, %v5048_v9  ;;  %v3654_v44 = vsel %vm3626_vm12, %v3621_v48, %v5049_v55  ;;  %v4649_v55 = vunpack.i.h.bf16 %v8397_v33 }
 0x480   : > { %v5057_v32 = vpop.permute.xlu1 %5056  ;;  %4102 = vmatmul.mubr.f32.gmra.mxu1 %v3784_v11  ;;  %v3686_v30 = vsel %vm3659_vm13, %v3653_v28, %v5053_v22  ;;  %v7930_v18 = vpop.permute.xlu0 %5091  ;;  %v3687_v54 = vsel %vm3659_vm13, %v3654_v44, %v5054_v46  ;;  %v5154_v11 = vld [vmem:[#allocation3 + $0x168] sm:$0xff]  ;;  %v5155_v46 = vld [vmem:[#allocation3 + $0x170] sm:$0xff] }
 0x481   : > { %v5058_v53 = vunpack.i.l.bf16 %v5057_v32  ;;  %4376 = vmatprep.mubr.msk.f32.mxu1 %vm1754_vm2, %v7614_v34  ;;  %v5059_v27 = vunpack.i.h.bf16 %v5057_v32  ;;  %v5073_v34 = vunpack.i.l.bf16 %v7903_v13  ;;  %v5093_v37 = vunpack.i.l.bf16 %v7930_v18 }
 0x482   : > { %v5094_v7 = vunpack.i.h.bf16 %v7930_v18  ;;  %v3592_v22 = vsel %vm1754_vm2, %v5154_v11, %v4648_v2 }
 0x483   : > { %v3719_v17 = vsel %vm3692_vm14, %v3686_v30, %v5058_v53  ;;  %v3720_v38 = vsel %vm3692_vm14, %v3687_v54, %v5059_v27  ;;  %v3622_v45 = vsel %vm1886_vm9, %v3590_v50, %v5073_v34  ;;  %v2664_v27 = vld [vmem:[#allocation3 + $0x19a] sm:$0xff] }
 0x484   : > { %v5067_v4 = vpop.permute.xlu1 %5066  ;;  %v3752_v42 = vsel %vm3725_vm15, %v3719_v17, %v5063_v35  ;;  %v5102_v29 = vpop.permute.xlu0 %5101  ;;  %v3753_v8 = vsel %vm3725_vm15, %v3720_v38, %v5064_v56  ;;  %v3593_v35 = vsel %vm1754_vm2, %v5155_v46, %v4649_v55 }
 0x485   : > { %v5068_v26 = vunpack.i.l.bf16 %v5067_v4  ;;  %v5069_v40 = vunpack.i.h.bf16 %v5067_v4  ;;  %v5103_v31 = vunpack.i.l.bf16 %v5102_v29  ;;  %v5104_v32 = vunpack.i.h.bf16 %v5102_v29 }
 0x487   : > { %v3785_v3 = vsel %vm3758_vm0, %v3752_v42, %v5068_v26  ;;  %v3786_v39 = vsel %vm3758_vm0, %v3753_v8, %v5069_v40  ;;  %v3624_v53 = vsel %vm1886_vm9, %v3592_v22, %v5103_v31 }
 0x488   : > { %v5077_v47 = vpop.permute.xlu1 %5076  ;;  %4107 = vmatmul.mubr.f32.gmra.mxu1 %v3785_v3  ;;  %v5112_v61 = vpop.permute.xlu0 %5111  ;;  %v2665_v3 = vld [vmem:[#allocation3 + $0x1a2] sm:$0xff] }
 0x489   : > { %v5078_v62 = vunpack.i.l.bf16 %v5077_v47  ;;  %4377 = vmatprep.mubr.msk.f32.mxu1 %vm1754_vm2, %v7624_v14  ;;  %v5079_v49 = vunpack.i.h.bf16 %v5077_v47  ;;  %v3623_v14 = vsel %vm1886_vm9, %v3591_v41, %v5074_v6  ;;  %v5113_v48 = vunpack.i.l.bf16 %v5112_v61 }
 0x48a   : > { %v5114_v34 = vunpack.i.h.bf16 %v5112_v61 }
 0x48b   : > { %v3655_v5 = vsel %vm3626_vm12, %v3622_v45, %v5078_v62  ;;  %v3656_v19 = vsel %vm3626_vm12, %v3623_v14, %v5079_v49  ;;  %v7993_v49 = vld [vmem:[%s8116_s4] ss:$0 sm:$0xff] }
 0x48c   : > { %v5087_v25 = vpop.permute.xlu1 %5086  ;;  %4112 = vmatmul.mubr.f32.gmra.mxu1 %v3786_v39  ;;  %v3688_v13 = vsel %vm3659_vm13, %v3655_v5, %v5083_v1  ;;  %v3689_v9 = vsel %vm3659_vm13, %v3656_v19, %v5084_v63  ;;  %v3399_v23 = vpop.permute.xlu0 %3398 }
 0x48d   : > { %v5088_v58 = vunpack.i.l.bf16 %v5087_v25  ;;  %4378 = vmatprep.mubr.msk.f32.mxu1 %vm1754_vm2, %v7701_v36  ;;  %v5089_v57 = vunpack.i.h.bf16 %v5087_v25 }
 0x48f   : > { %v3721_v24 = vsel %vm3692_vm14, %v3688_v13, %v5088_v58  ;;  %v3722_v10 = vsel %vm3692_vm14, %v3689_v9, %v5089_v57 }
 0x490   : > { %v5097_v12 = vpop.permute.xlu1 %5096  ;;  %v3754_v36 = vsel %vm3725_vm15, %v3721_v24, %v5093_v37  ;;  %v3755_v44 = vsel %vm3725_vm15, %v3722_v10, %v5094_v7  ;;  %v3273_v42 = vpop.permute.xlu0 %3272 }
 0x491   : > { %v5098_v21 = vunpack.i.l.bf16 %v5097_v12  ;;  %v5099_v60 = vunpack.i.h.bf16 %v5097_v12 }
 0x493   : > { %v3787_v51 = vsel %vm3758_vm0, %v3754_v36, %v5098_v21  ;;  %v3788_v17 = vsel %vm3758_vm0, %v3755_v44, %v5099_v60 }
 0x494   : > { %v5107_v28 = vpop.permute.xlu1 %5106  ;;  %4117 = vmatmul.mubr.f32.gmra.mxu1 %v3787_v51  ;;  %v3529_v47 = vpop.permute.xlu0 %3528 }
 0x495   : > { %v5108_v52 = vunpack.i.l.bf16 %v5107_v28  ;;  %4379 = vmatprep.mubr.msk.f32.mxu1 %vm1754_vm2, %v7671_v59  ;;  %v5109_v30 = vunpack.i.h.bf16 %v5107_v28  ;;  %v3625_v59 = vsel %vm1886_vm9, %v3593_v35, %v5104_v32 }
 0x497   : > { %v3657_v18 = vsel %vm3626_vm12, %v3624_v53, %v5108_v52  ;;  %v3658_v26 = vsel %vm3626_vm12, %v3625_v59, %v5109_v30 }
 0x498   : > { %v3271_v4 = vpop.permute.xlu1 %3270  ;;  %v3690_v43 = vsel %vm3659_vm13, %v3657_v18, %v5113_v48  ;;  %4122 = vmatmul.mubr.f32.gmra.mxu1 %v3788_v17  ;;  %v3691_v56 = vsel %vm3659_vm13, %v3658_v26, %v5114_v34 }
 0x499   : > { %v3723_v20 = vsel %vm3692_vm14, %v3690_v43, %v3271_v4  ;;  %4380 = vmatprep.mubr.msk.f32.mxu1 %vm1754_vm2, %v2664_v27  ;;  %v3724_v15 = vsel %vm3692_vm14, %v3691_v56, %v3273_v42 }
 0x49a   : > { %v3756_v40 = vsel %vm3725_vm15, %v3723_v20, %v3399_v23 }
 0x49c   : > { %v3527_v54 = vpop.permute.xlu1 %3526 }
 0x49d   : > { %v3789_v38 = vsel %vm3758_vm0, %v3756_v40, %v3527_v54 }
 0x49e   : > { %4127 = vmatmul.mubr.f32.gmra.mxu1 %v3789_v38 }
 0x49f   : > { %4381 = vmatprep.mubr.msk.f32.mxu1 %vm1754_vm2, %v2665_v3 }
 0x4a0   : > { %v3401_v0 = vpop.permute.xlu1 %3400 }
 0x4a1   : > { %v3757_v50 = vsel %vm3725_vm15, %v3724_v15, %v3401_v0 }
 0x4a2   : > { %v3790_v29 = vsel %vm3758_vm0, %v3757_v50, %v3529_v47 }
 0x4a3   : > { %4132 = vmatmul.mubr.f32.gmra.mxu1 %v3790_v29 }
 0x4b8   : > { %v3978_v62 = vpop.f32.mrf.mxu0  ;;  %v7988_v6 = vpop.f32.mrf.mxu1 }
 0x4b9   : > { %v3979_v5 = vadd.f32 %v7993_v49, %v3978_v62 }
 0x4ba   : > { %v3980_v45 = vpop.f32.mrf.mxu0  ;;  %v4035_v8 = vpop.f32.mrf.mxu1 }
 0x4bb   : > { %v4137_v25 = vmax.f32 %v3979_v5, 0.0 }
 0x4bd   : > { %v4169_v13 = vsel %vm1886_vm9, %v4137_v25, 0.0 }
 0x4c4   : > { %v3983_v39 = vpop.f32.mrf.mxu0  ;;  %v7996_v1 = vpop.f32.mrf.mxu1 }
 0x4c5   : > { %v3984_v16 = vadd.f32 %v7993_v49, %v3983_v39 }
 0x4c6   : > { %v3985_v41 = vpop.f32.mrf.mxu0  ;;  %v4040_v58 = vpop.f32.mrf.mxu1 }
 0x4c7   : > { %v4138_v14 = vmax.f32 %v3984_v16, 0.0 }
 0x4c9   : > { %v4170_v19 = vsel %vm1886_vm9, %v4138_v14, 0.0 }
 0x4ca   : > { %v4171_v61 = vadd.f32 %v4170_v19, %v4169_v13  ;;  %v4034_v19 = vadd.f32 %v7993_v49, %v7988_v6 }
 0x4cb   : > { %v3988_v57 = vpop.f32.mrf.mxu0  ;;  %v8001_v24 = vpop.f32.mrf.mxu1 }
 0x4cc   : > { %v3989_v63 = vadd.f32 %v7993_v49, %v3988_v57 }
 0x4cd   : > { %v3990_v37 = vpop.f32.mrf.mxu0  ;;  %v4045_v12 = vpop.f32.mrf.mxu1 }
 0x4ce   : > { %v4139_v33 = vmax.f32 %v3989_v63, 0.0  ;;  %v4039_v12 = vadd.f32 %v7993_v49, %v7996_v1 }
 0x4d0   : > { %v4172_v2 = vsel %vm1886_vm9, %v4139_v33, 0.0 }
 0x4d1   : > { %v4173_v21 = vadd.f32 %v4172_v2, %v4171_v61 }
 0x4d7   : > { %v3993_v31 = vpop.f32.mrf.mxu0  ;;  %v8006_v9 = vpop.f32.mrf.mxu1 }
 0x4d8   : > { %v3994_v36 = vadd.f32 %v7993_v49, %v3993_v31 }
 0x4d9   : > { %v3995_v60 = vpop.f32.mrf.mxu0  ;;  %v4050_v10 = vpop.f32.mrf.mxu1 }
 0x4da   : > { %v4140_v51 = vmax.f32 %v3994_v36, 0.0  ;;  %v4148_v60 = vmax.f32 %v4034_v19, 0.0 }
 0x4dc   : > { %v4174_v55 = vsel %vm1886_vm9, %v4140_v51, 0.0  ;;  %v4044_v51 = vadd.f32 %v7993_v49, %v8001_v24 }
 0x4dd   : > { %v4175_v7 = vadd.f32 %v4174_v55, %v4173_v21  ;;  %v4149_v55 = vmax.f32 %v4039_v12, 0.0 }
 0x4e4   : > { %v3998_v28 = vpop.f32.mrf.mxu0  ;;  %v8009_v11 = vpop.f32.mrf.mxu1 }
 0x4e5   : > { %v3999_v22 = vadd.f32 %v7993_v49, %v3998_v28 }
 0x4e6   : > { %v4000_v32 = vpop.f32.mrf.mxu0  ;;  %v4055_v23 = vpop.f32.mrf.mxu1 }
 0x4e7   : > { %v4141_v52 = vmax.f32 %v3999_v22, 0.0  ;;  %v4190_v22 = vsel %vm1886_vm9, %v4148_v60, 0.0  ;;  %v4150_v32 = vmax.f32 %v4044_v51, 0.0  ;;  %v4054_v23 = vadd.f32 %v7993_v49, %v8009_v11 }
 0x4e9   : > { %v4176_v53 = vsel %vm1886_vm9, %v4141_v52, 0.0 }
 0x4ea   : > { %v4177_v48 = vadd.f32 %v4176_v53, %v4175_v7  ;;  %v4049_v7 = vadd.f32 %v7993_v49, %v8006_v9  ;;  %v4192_v53 = vsel %vm1886_vm9, %v4149_v55, 0.0 }
 0x4f0   : > { %v4003_v30 = vpop.f32.mrf.mxu0  ;;  %v4058_v44 = vpop.f32.mrf.mxu1 }
 0x4f1   : > { %v4004_v3 = vadd.f32 %v7993_v49, %v4003_v30  ;;  %v4059_v24 = vadd.f32 %v7993_v49, %v4058_v44 }
 0x4f2   : > { %v4005_v27 = vpop.f32.mrf.mxu0  ;;  %v4060_v18 = vpop.f32.mrf.mxu1 }
 0x4f3   : > { %v4142_v56 = vmax.f32 %v4004_v3, 0.0  ;;  %v4194_v27 = vsel %vm1886_vm9, %v4150_v32, 0.0  ;;  %v4152_v18 = vmax.f32 %v4054_v23, 0.0 }
 0x4f5   : > { %v4178_v62 = vsel %vm1886_vm9, %v4142_v56, 0.0 }
 0x4f6   : > { %v4008_v17 = vpop.f32.mrf.mxu0  ;;  %v4063_v46 = vpop.f32.mrf.mxu1  ;;  %v4179_v41 = vadd.f32 %v4178_v62, %v4177_v48  ;;  %v4151_v48 = vmax.f32 %v4049_v7, 0.0 }
 0x4f7   : > { %v4009_v38 = vadd.f32 %v7993_v49, %v4008_v17  ;;  %v4064_v9 = vadd.f32 %v7993_v49, %v4063_v46 }
 0x4f8   : > { %v4010_v35 = vpop.f32.mrf.mxu0  ;;  %v4065_v4 = vpop.f32.mrf.mxu1 }
 0x4f9   : > { %v4143_v0 = vmax.f32 %v4009_v38, 0.0  ;;  %v4196_v4 = vsel %vm1886_vm9, %v4151_v48, 0.0 }
 0x4fb   : > { %v4180_v25 = vsel %vm1886_vm9, %v4143_v0, 0.0 }
 0x4fc   : > { %v4181_v13 = vadd.f32 %v4180_v25, %v4179_v41 }
 0x502   : > { %v4013_v43 = vpop.f32.mrf.mxu0  ;;  %v4068_v59 = vpop.f32.mrf.mxu1 }
 0x503   : > { %v4014_v47 = vadd.f32 %v7993_v49, %v4013_v43  ;;  %v4153_v43 = vmax.f32 %v4059_v24, 0.0 }
 0x504   : > { %v4015_v20 = vpop.f32.mrf.mxu0  ;;  %v4070_v26 = vpop.f32.mrf.mxu1 }
 0x505   : > { %v4144_v45 = vmax.f32 %v4014_v47, 0.0  ;;  %v4069_v20 = vadd.f32 %v7993_v49, %v4068_v59  ;;  %v4200_v3 = vsel %vm1886_vm9, %v4153_v43, 0.0 }
 0x507   : > { %v4182_v58 = vsel %vm1886_vm9, %v4144_v45, 0.0  ;;  %v4155_v38 = vmax.f32 %v4069_v20, 0.0 }
 0x508   : > { %v4183_v57 = vadd.f32 %v4182_v58, %v4181_v13 }
 0x510   : > { %v4018_v34 = vpop.f32.mrf.mxu0  ;;  %v8013_v42 = vpop.f32.mrf.mxu1 }
 0x511   : > { %v4019_v15 = vadd.f32 %v7993_v49, %v4018_v34  ;;  %v4198_v34 = vsel %vm1886_vm9, %v4152_v18, 0.0  ;;  %v4074_v59 = vadd.f32 %v7993_v49, %v8013_v42 }
 0x512   : > { %v4020_v54 = vpop.f32.mrf.mxu0  ;;  %v4075_v40 = vpop.f32.mrf.mxu1 }
 0x513   : > { %v4145_v16 = vmax.f32 %v4019_v15, 0.0  ;;  %v4154_v54 = vmax.f32 %v4064_v9, 0.0  ;;  %v4204_v15 = vsel %vm1886_vm9, %v4155_v38, 0.0 }
 0x515   : > { %v4184_v61 = vsel %vm1886_vm9, %v4145_v16, 0.0  ;;  %v4202_v46 = vsel %vm1886_vm9, %v4154_v54, 0.0 }
 0x516   : > { %v4185_v21 = vadd.f32 %v4184_v61, %v4183_v57 }
 0x51c   : > { %v4023_v50 = vpop.f32.mrf.mxu0  ;;  %v8019_v29 = vpop.f32.mrf.mxu1 }
 0x51d   : > { %v4024_v8 = vadd.f32 %v7993_v49, %v4023_v50 }
 0x51e   : > { %v4025_v5 = vpop.f32.mrf.mxu0  ;;  %v4080_v39 = vpop.f32.mrf.mxu1 }
 0x51f   : > { %v4146_v14 = vmax.f32 %v4024_v8, 0.0  ;;  %v4156_v8 = vmax.f32 %v4074_v59, 0.0  ;;  %v4079_v5 = vadd.f32 %v7993_v49, %v8019_v29 }
 0x521   : > { %v4186_v33 = vsel %vm1886_vm9, %v4146_v14, 0.0  ;;  %v4206_v16 = vsel %vm1886_vm9, %v4156_v8, 0.0  ;;  %v4157_v41 = vmax.f32 %v4079_v5, 0.0 }
 0x522   : > { %v4187_v10 = vadd.f32 %v4186_v33, %v4185_v21 }
 0x523   : > { %v4208_v13 = vsel %vm1886_vm9, %v4157_v41, 0.0 }
 0x524   : > { %v4028_v63 = vpop.f32.mrf.mxu0  ;;  %v4083_v37 = vpop.f32.mrf.mxu1 }
 0x525   : > { %v4029_v2 = vadd.f32 %v7993_v49, %v4028_v63  ;;  %v4084_v58 = vadd.f32 %v7993_v49, %v4083_v37 }
 0x526   : > { %v4030_v31 = vpop.f32.mrf.mxu0  ;;  %v4085_v36 = vpop.f32.mrf.mxu1 }
 0x527   : > { %v4147_v6 = vmax.f32 %v4029_v2, 0.0  ;;  %v4158_v19 = vmax.f32 %v4084_v58, 0.0 }
 0x529   : > { %v4188_v28 = vsel %vm1886_vm9, %v4147_v6, 0.0  ;;  %v4210_v12 = vsel %vm1886_vm9, %v4158_v19, 0.0 }
 0x52a   : > { %v4189_v1 = vadd.f32 %v4188_v28, %v4187_v10 }
 0x52c   : > { %v4191_v52 = vadd.f32 %v4190_v22, %v4189_v1 }
 0x52e   : > { %v4193_v30 = vadd.f32 %v4192_v53, %v4191_v52 }
 0x530   : > { %v4195_v17 = vadd.f32 %v4194_v27, %v4193_v30  ;;  %v4088_v35 = vpop.f32.mrf.mxu1 }
 0x531   : > { %v4089_v61 = vadd.f32 %v7993_v49, %v4088_v35 }
 0x532   : > { %v4197_v11 = vadd.f32 %v4196_v4, %v4195_v17  ;;  %v4090_v26 = vpop.f32.mrf.mxu1 }
 0x533   : > { %v4159_v33 = vmax.f32 %v4089_v61, 0.0 }
 0x534   : > { %v4199_v40 = vadd.f32 %v4198_v34, %v4197_v11  ;;  %v4093_v44 = vpop.f32.mrf.mxu1 }
 0x535   : > { %v4094_v29 = vadd.f32 %v7993_v49, %v4093_v44  ;;  %v4212_v36 = vsel %vm1886_vm9, %v4159_v33, 0.0 }
 0x536   : > { %v4201_v56 = vadd.f32 %v4200_v3, %v4199_v40  ;;  %v4095_v47 = vpop.f32.mrf.mxu1 }
 0x537   : > { %v4160_v37 = vmax.f32 %v4094_v29, 0.0 }
 0x538   : > { %v4203_v0 = vadd.f32 %v4202_v46, %v4201_v56 }
 0x539   : > { %v4214_v6 = vsel %vm1886_vm9, %v4160_v37, 0.0 }
 0x53a   : > { %v4205_v50 = vadd.f32 %v4204_v15, %v4203_v0 }
 0x53c   : > { %v4098_v62 = vpop.f32.mrf.mxu1  ;;  %v4207_v14 = vadd.f32 %v4206_v16, %v4205_v50 }
 0x53d   : > { %v4099_v60 = vadd.f32 %v7993_v49, %v4098_v62 }
 0x53e   : > { %v4100_v45 = vpop.f32.mrf.mxu1  ;;  %v4209_v57 = vadd.f32 %v4208_v13, %v4207_v14 }
 0x53f   : > { %v4161_v10 = vmax.f32 %v4099_v60, 0.0 }
 0x540   : > { %v4103_v39 = vpop.f32.mrf.mxu1  ;;  %v4211_v21 = vadd.f32 %v4210_v12, %v4209_v57 }
 0x541   : > { %v4104_v55 = vadd.f32 %v7993_v49, %v4103_v39  ;;  %v4216_v23 = vsel %vm1886_vm9, %v4161_v10, 0.0 }
 0x542   : > { %v4105_v25 = vpop.f32.mrf.mxu1  ;;  %v4213_v51 = vadd.f32 %v4212_v36, %v4211_v21 }
 0x543   : > { %v4162_v52 = vmax.f32 %v4104_v55, 0.0 }
 0x544   : > { %v4215_v1 = vadd.f32 %v4214_v6, %v4213_v51 }
 0x545   : > { %v4218_v17 = vsel %vm1886_vm9, %v4162_v52, 0.0 }
 0x546   : > { %v4217_v30 = vadd.f32 %v4216_v23, %v4215_v1 }
 0x548   : > { %v4108_v42 = vpop.f32.mrf.mxu1  ;;  %v4219_v43 = vadd.f32 %v4218_v17, %v4217_v30 }
 0x549   : > { %v4109_v7 = vadd.f32 %v7993_v49, %v4108_v42 }
 0x54a   : > { %v4110_v63 = vpop.f32.mrf.mxu1 }
 0x54b   : > { %v4163_v53 = vmax.f32 %v4109_v7, 0.0 }
 0x54c   : > { %v4113_v2 = vpop.f32.mrf.mxu1 }
 0x54d   : > { %v4114_v22 = vadd.f32 %v7993_v49, %v4113_v2  ;;  %v4220_v35 = vsel %vm1886_vm9, %v4163_v53, 0.0 }
 0x54e   : > { %v4115_v31 = vpop.f32.mrf.mxu1  ;;  %v4221_v34 = vadd.f32 %v4220_v35, %v4219_v43 }
 0x54f   : > { %v4164_v27 = vmax.f32 %v4114_v22, 0.0 }
 0x551   : > { %v4222_v20 = vsel %vm1886_vm9, %v4164_v27, 0.0 }
 0x552   : > { %v4223_v3 = vadd.f32 %v4222_v20, %v4221_v34 }
 0x554   : > { %v4118_v28 = vpop.f32.mrf.mxu1 }
 0x555   : > { %v4119_v48 = vadd.f32 %v7993_v49, %v4118_v28 }
 0x556   : > { %v4120_v32 = vpop.f32.mrf.mxu1 }
 0x557   : > { %v4165_v4 = vmax.f32 %v4119_v48, 0.0 }
 0x558   : > { %v4123_v24 = vpop.f32.mrf.mxu1 }
 0x559   : > { %v4124_v18 = vadd.f32 %v7993_v49, %v4123_v24  ;;  %v4224_v40 = vsel %vm1886_vm9, %v4165_v4, 0.0 }
 0x55a   : > { %v4125_v9 = vpop.f32.mrf.mxu1  ;;  %v4225_v47 = vadd.f32 %v4224_v40, %v4223_v3 }
 0x55b   : > { %v4166_v11 = vmax.f32 %v4124_v18, 0.0 }
 0x55d   : > { %v4226_v56 = vsel %vm1886_vm9, %v4166_v11, 0.0 }
 0x55e   : > { %v4128_v26 = vpop.f32.mrf.mxu1  ;;  %v4227_v50 = vadd.f32 %v4226_v56, %v4225_v47 }
 0x55f   : > { %v4129_v54 = vadd.f32 %v7993_v49, %v4128_v26 }
 0x560   : > { %v4130_v44 = vpop.f32.mrf.mxu1 }
 0x561   : > { %v4167_v38 = vmax.f32 %v4129_v54, 0.0 }
 0x563   : > { %v4133_v46 = vpop.f32.mrf.mxu1  ;;  %v4228_v0 = vsel %vm1886_vm9, %v4167_v38, 0.0 }
 0x564   : > { %v4134_v15 = vadd.f32 %v7993_v49, %v4133_v46  ;;  %v4229_v45 = vadd.f32 %v4228_v0, %v4227_v50 }
 0x565   : > { %v4135_v59 = vpop.f32.mrf.mxu1 }
 0x566   : > { %v4168_v62 = vmax.f32 %v4134_v15, 0.0 }
 0x568   : > { %v4230_v8 = vsel %vm1886_vm9, %v4168_v62, 0.0 }
 0x569   : > { %v4231_v5 = vadd.f32 %v4230_v8, %v4229_v45 }
 0x56b   : > { %v4232_v39 = vrot.slane %v4231_v5, 4 }
 0x56d   : > { %v4233_v25 = vadd.f32 %v4232_v39, %v4231_v5 }
 0x56f   : > { %v4234_v16 = vrot.slane %v4233_v25, 2 }
 0x571   : > { %v4235_v41 = vadd.f32 %v4234_v16, %v4233_v25 }
 0x573   : > { %v4236_v58 = vrot.slane %v4235_v41, 1 }
 0x575   : > { %v4237_v14 = vadd.f32 %v4236_v58, %v4235_v41 }
 0x577   : > { %v4238_v49 = vmul.f32 0.00390625, %v4237_v14 }
 0x579   : > { %4240 = vst.msk [vmem:[%s216_s15] sm:$0x1] %vm4239_vm1, %v4238_v49 }
 0x57a   : > { %5169 = shalt.err (!%p5166_p3)
}
 0x57b   : > { %s5170_s9 = scalar_lea.hbm %s4252_s25, 16  ;;  %s5174_s11 = scalar_lea.hbm %s8117_s5, 32 }
 0x57c   : > { %p5171_p4 = scmp.ne.s32.totalorder %s4252_s25, %s5170_s9  ;;  %p5175_p9 = scmp.lt.s32.totalorder %s4252_s25, %s8117_s5 }
 0x57d   : > { %p5176_p10 = scmp.lt.s32.totalorder %s5174_s11, %s5170_s9 }
 0x57e   : > { %p5172_p7 = pnand %p5171_p4, %p5301_p5 }
 0x57f   : > { %p5177_p11 = por %p5176_p10, %p5175_p9 }
 0x580   : > { %p5173_p8 = pneg %p5172_p7 }
 0x582   : > { %p5178_p12 = pnand %p5177_p11, %p5173_p8 }
 0x584   : > { %5181 = shalt.err (!%p5178_p12)
}
 0x585   : > { %4517 = dma.vmem_to_hbm [thread:$0]  (%p5301_p5), %s4255_s16, 16, %s4252_s25, %s4242_s26  }
 0x586 PF: > { %p4523_p13 = scmp.ge.s32.totalorder %s5216_s21, 2  ;;  %s4266_s14 = sand.u32 1, %s5204_s18  }
 0x587   : > { %s4267_s15 = scalar_lea.sflag [#allocation5], %s4266_s14 }
 0x588   : > { %p4520_p0 = pnand %p4523_p13, %p5305_p6 }
 0x58a   : > { %p4521_p1 = pneg %p4520_p0 }
 0x58c   : > { %5199 = dma.done.wait (%p4521_p1), %s4267_s15, 16  }
 0x58d   : > { %5201 = vsyncadd (%p4521_p1), %s4267_s15, 4294967280  ;;  %p15_p2 = scmp.ge.s32.totalorder %s5288_s24, 4   ;;  %s8398_s18 = smov %s5208_s19 }
 0x58e   : > { %s8399_s19 = smov %s5212_s20  ;;  %s8400_s20 = smov %s5299_s27 }
 0x58f   : > { %s8401_s21 = smov %s5288_s24  ;;  %17 = sbr.rel (!%p15_p2) target bundleno = 3 (0x3), region = 79 }
 0x594   :  { %4271 = vsyncpa [#allocation5], 1 }
 0x595   :  { %4273 = vsyncpa [#allocation5 + $0x1], 1 }

</bundles_post_ra>
